<compile_context>
chip_gen: v7x
topology: tpu7x:2x2x1
jax: 0.10.0
libtpu: 0.0.40
codegen_flags: <defaults>
</compile_context>

<pallas_src>
import math
from functools import partial

import jax
import jax.numpy as jnp
import numpy as np
from jax import lax
from jax.experimental import pallas as pl
from jax.experimental.pallas import tpu as pltpu


# ----------------------------- in-kernel math -------------------------------

def _snake(x, alpha, inv_alpha):
    # DAC Snake1d: x + (alpha + 1e-9)^-1 * sin(alpha * x)^2   (inv_alpha precomputed)
    s = jnp.sin(alpha * x)
    return x + inv_alpha * (s * s)


def _encoder_block_kernel(x_ref,
                          a1_ref, ia1_ref, w7_ref, b7_ref,
                          a2_ref, ia2_ref, w1_ref, b1_ref,
                          af_ref, iaf_ref, wf_ref, bf_ref,
                          out_ref, hsT_scr,
                          *, dilations, B, C, C_out, L, stride, K, pad_f, L_out):
    """Fused EncoderBlock forward, lane-major (B, C, L) activations, f32."""
    h = x_ref[...]                                            # (B, C, L)

    # ---- 3x ResidualUnit: snake -> dilated conv7 -> snake -> conv1x1 -> +residual ----
    for u, d in enumerate(dilations):
        pad = 3 * d                                           # (7-1)*d//2, 'same' padding
        hs = _snake(h, a1_ref[u], ia1_ref[u])                 # (B, C, L)
        zpad = jnp.zeros((B, C, pad), jnp.float32)
        hs_pad = jnp.concatenate([zpad, hs, zpad], axis=2)    # the conv's zero padding
        # Tap k = hs shifted by (k*d - pad); stack taps along the contraction axis.
        stacked = jnp.concatenate(
            [hs_pad[:, :, k * d:k * d + L] for k in range(7)], axis=1)      # (B, 7C, L)
        w7b = jnp.broadcast_to(w7_ref[u], (B, C, 7 * C))
        y = lax.dot_general(w7b, stacked, (((2,), (1,)), ((0,), (0,))),
                            preferred_element_type=jnp.float32) + b7_ref[u]  # (B, C, L)
        ys = _snake(y, a2_ref[u], ia2_ref[u])
        w1b = jnp.broadcast_to(w1_ref[u], (B, C, C))
        y2 = lax.dot_general(w1b, ys, (((2,), (1,)), ((0,), (0,))),
                             preferred_element_type=jnp.float32) + b1_ref[u]
        h = h + y2                                            # 'same' length -> no crop

    # ---- final: snake -> WNConv1d(kernel=2*stride, stride=stride, pad=ceil(stride/2)) ----
    hs = _snake(h, af_ref[...], iaf_ref[...])                 # (B, C, L)
    # Small channels-last, zero-padded copy so the K strided taps are plain
    # sublane-strided pl.ds reads (no O(L^2) selection matrix, no lane gather).
    hsT = jnp.stack([hs[b].T for b in range(B)], axis=0)      # (B, L, C), 2-D transposes
    zrow = jnp.zeros((B, pad_f, C), jnp.float32)
    hsT_scr[...] = jnp.concatenate([zrow, hsT, zrow], axis=1)  # (B, L + 2*pad_f, C)

    # Build the K taps directly at the strided output positions.
    imf = jnp.concatenate(
        [hsT_scr[:, pl.ds(k, L_out, stride), :] for k in range(K)], axis=2)  # (B, L_out, K*C)
    wfb = jnp.broadcast_to(wf_ref[...], (B, K * C, C_out))
    yT = lax.dot_general(imf, wfb, (((2,), (1,)), ((0,), (0,))),
                         preferred_element_type=jnp.float32) + bf_ref[...]   # (B, L_out, C_out)
    for b in range(B):                                        # lane-dense (C_out, L_out) store
        out_ref[b] = yT[b].T


# ----------------------------- pallas wrapper --------------------------------

def encoder_block_pallas(x_ncl, packed, *, stride, dilations):
    """x_ncl: (B, C, L) in the PyTorch NCL convention; returns (B, 2C, L_out)."""
    B, C, L = x_ncl.shape
    C_out = packed["wf"].shape[-1]
    K = 2 * stride
    pad_f = math.ceil(stride / 2)
    L_out = (L + 2 * pad_f - K) // stride + 1
    nu = len(dilations)

    kernel = partial(_encoder_block_kernel, dilations=dilations, B=B, C=C, C_out=C_out,
                     L=L, stride=stride, K=K, pad_f=pad_f, L_out=L_out)

    def full(shape):                                          # whole-array block
        nd = len(shape)
        return pl.BlockSpec(shape, lambda i: (0,) * nd)

    return pl.pallas_call(
        kernel,
        out_shape=jax.ShapeDtypeStruct((B, C_out, L_out), jnp.float32),
        grid=(1,),                                            # single step: whole batch at once
        in_specs=[
            full((B, C, L)),                                  # x (lane-major, native NCL)
            full((nu, C, 1)), full((nu, C, 1)),               # alpha1, 1/alpha1
            full((nu, C, 7 * C)), full((nu, C, 1)),           # conv7 weights (o, k*i), bias
            full((nu, C, 1)), full((nu, C, 1)),               # alpha2, 1/alpha2
            full((nu, C, C)), full((nu, C, 1)),               # conv1x1 weights, bias
            full((C, 1)), full((C, 1)),                       # final alpha, 1/alpha
            full((K * C, C_out)), full((1, C_out)),           # final conv weights (k*i, o), bias
        ],
        out_specs=full((B, C_out, L_out)),                    # lane-dense output slab
        scratch_shapes=[
            pltpu.VMEM((B, L + 2 * pad_f, C), jnp.float32),   # padded channels-last hs
        ],
        compiler_params=pltpu.CompilerParams(
            dimension_semantics=("arbitrary",),
        ),
    )(x_ncl, packed["a1"], packed["ia1"], packed["w7"], packed["b7"],
      packed["a2"], packed["ia2"], packed["w1"], packed["b1"],
      packed["af"], packed["iaf"], packed["wf"], packed["bf"])


def pack_params(params):
    """One-time packing: stack per-RU params, fold conv weights into matmul form,
    precompute 1/(alpha + 1e-9).  All shapes are (sublane, lane)-friendly."""
    def lhs_mat(w_oik):                                       # (O, I, K) -> (O, K*I), k-major cols
        o, i, k = w_oik.shape
        return jnp.transpose(w_oik, (0, 2, 1)).reshape(o, k * i)

    def rhs_mat(w_oik):                                       # (O, I, K) -> (K*I, O), k-major rows
        o, i, k = w_oik.shape
        return jnp.transpose(w_oik, (2, 1, 0)).reshape(k * i, o)

    rus = params["residual_units"]
    fp = params["final"]
    a1 = jnp.stack([ru["alpha1"].reshape(-1, 1) for ru in rus])      # (nu, C, 1)
    a2 = jnp.stack([ru["alpha2"].reshape(-1, 1) for ru in rus])
    af = fp["alpha"].reshape(-1, 1)                                  # (C, 1)
    return {
        "a1": a1, "ia1": 1.0 / (a1 + 1e-9),
        "a2": a2, "ia2": 1.0 / (a2 + 1e-9),
        "w7": jnp.stack([lhs_mat(ru["w7_oik"]) for ru in rus]),      # (nu, C, 7C)
        "b7": jnp.stack([ru["b7"].reshape(-1, 1) for ru in rus]),    # (nu, C, 1)
        "w1": jnp.stack([ru["w1_oik"][:, :, 0] for ru in rus]),      # (nu, C, C)
        "b1": jnp.stack([ru["b1"].reshape(-1, 1) for ru in rus]),    # (nu, C, 1)
        "af": af, "iaf": 1.0 / (af + 1e-9),
        "wf": rhs_mat(fp["w_oik"]),                                  # (2*stride*C, C_out)
        "bf": fp["b"].reshape(1, -1),                                # (1, C_out)
    }


# ----------------------------- params (deterministic) ------------------------

def _fold_weight_norm(v, g):
    # torch weight_norm: w = g * v / ||v||, norm per out-channel over (in, k)
    norm = jnp.sqrt(jnp.sum(v * v, axis=(1, 2), keepdims=True))
    return v * (g.reshape(-1, 1, 1) / norm)


def init_params(key, dim=16, stride=1):
    C = dim // 2
    kit = iter(jax.random.split(key, 40))

    def conv_params(c_in, c_out, k):
        v = 0.3 * jax.random.normal(next(kit), (c_out, c_in, k), jnp.float32)
        g = jax.random.uniform(next(kit), (c_out,), jnp.float32, 0.5, 1.5)
        b = 0.1 * jax.random.normal(next(kit), (c_out,), jnp.float32)
        return _fold_weight_norm(v, g), b

    params = {"residual_units": []}
    for dil in (1, 3, 9):
        w7, b7 = conv_params(C, C, 7)
        w1, b1 = conv_params(C, C, 1)
        params["residual_units"].append({
            "dilation": dil,
            "alpha1": jax.random.uniform(next(kit), (1, C), jnp.float32, 0.5, 1.5),
            "alpha2": jax.random.uniform(next(kit), (1, C), jnp.float32, 0.5, 1.5),
            "w7_oik": w7, "b7": b7, "w1_oik": w1, "b1": b1,
        })
    wf, bf = conv_params(C, dim, 2 * stride)
    params["final"] = {
        "alpha": jax.random.uniform(next(kit), (1, C), jnp.float32, 0.5, 1.5),
        "w_oik": wf, "b": bf,
    }
    return params


# ----------------------------- pure-JAX reference ----------------------------

def _conv1d_ncl(x, w, b, stride=1, dilation=1, padding=0):
    dn = lax.conv_dimension_numbers(x.shape, w.shape, ("NCH", "OIH", "NCH"))
    y = lax.conv_general_dilated(x, w, window_strides=(stride,),
                                 padding=[(padding, padding)],
                                 rhs_dilation=(dilation,), dimension_numbers=dn)
    return y + b[None, :, None]


def _snake_ncl(x, alpha_c):
    a = alpha_c[None, :, None]
    return x + (1.0 / (a + 1e-9)) * jnp.square(jnp.sin(a * x))


def encoder_block_ref(x_ncl, params, stride):
    h = x_ncl
    for ru in params["residual_units"]:
        dil = ru["dilation"]
        y = _snake_ncl(h, ru["alpha1"][0])
        y = _conv1d_ncl(y, ru["w7_oik"], ru["b7"], dilation=dil, padding=3 * dil)
        y = _snake_ncl(y, ru["alpha2"][0])
        y = _conv1d_ncl(y, ru["w1_oik"], ru["b1"])
        h = h + y
    y = _snake_ncl(h, params["final"]["alpha"][0])
    y = _conv1d_ncl(y, params["final"]["w_oik"], params["final"]["b"],
                    stride=stride, padding=math.ceil(stride / 2))
    return y


# ----------------------------- main -------------------------------------------

if __name__ == "__main__":
    dim, stride = 16, 2          # EncoderBlock(dim=16, stride=2)
    B, L = 2, 16
    key = jax.random.PRNGKey(0)
    k_params, k_x = jax.random.split(key)
    params = init_params(k_params, dim=dim, stride=stride)

    # PyTorch-convention input: (batch, channels=dim//2, length)
    x = jax.random.normal(k_x, (B, dim // 2, L), jnp.float32)

    packed = pack_params(params)                             # one-time weight packing
    dilations = tuple(ru["dilation"] for ru in params["residual_units"])
    fwd = jax.jit(partial(encoder_block_pallas, stride=stride, dilations=dilations))

    out = jax.block_until_ready(fwd(x, packed))
    ref = jax.block_until_ready(encoder_block_ref(x, params, stride))

    expected_lout = (L + 2 * math.ceil(stride / 2) - 2 * stride) // stride + 1
    assert out.shape == (B, dim, expected_lout), out.shape
    np.testing.assert_allclose(np.asarray(out), np.asarray(ref), rtol=2e-4, atol=2e-4)
    print("KERNEL_OK")
</pallas_src>

<mosaic_0001>
module attributes {stable_mosaic.version = 11 : i64} {
  func.func @_encoder_block_kernel(%arg0: i32, %arg1: memref<2x8x16xf32, #tpu.memory_space<vmem>>, %arg2: memref<3x8x1xf32, #tpu.memory_space<vmem>>, %arg3: memref<3x8x1xf32, #tpu.memory_space<vmem>>, %arg4: memref<3x8x56xf32, #tpu.memory_space<vmem>>, %arg5: memref<3x8x1xf32, #tpu.memory_space<vmem>>, %arg6: memref<3x8x1xf32, #tpu.memory_space<vmem>>, %arg7: memref<3x8x1xf32, #tpu.memory_space<vmem>>, %arg8: memref<3x8x8xf32, #tpu.memory_space<vmem>>, %arg9: memref<3x8x1xf32, #tpu.memory_space<vmem>>, %arg10: memref<8x1xf32, #tpu.memory_space<vmem>>, %arg11: memref<8x1xf32, #tpu.memory_space<vmem>>, %arg12: memref<32x16xf32, #tpu.memory_space<vmem>>, %arg13: memref<1x16xf32, #tpu.memory_space<vmem>>, %arg14: memref<2x16x8xf32, #tpu.memory_space<vmem>>, %arg15: memref<2x18x8xf32, #tpu.memory_space<vmem>>) attributes {dimension_semantics = [#tpu.dimension_semantics<arbitrary>], iteration_bounds = array<i64: 1>, scalar_prefetch = 0 : i64, scratch_operands = 1 : i64, tpu.core_type = #tpu.core_type<tc>, window_params = [{pipeline_mode = #tpu.pipeline_mode<synchronous>, transform_indices = @transform_0, window_bounds = array<i64: 2, 8, 16>}, {pipeline_mode = #tpu.pipeline_mode<synchronous>, transform_indices = @transform_1, window_bounds = array<i64: 3, 8, 1>}, {pipeline_mode = #tpu.pipeline_mode<synchronous>, transform_indices = @transform_2, window_bounds = array<i64: 3, 8, 1>}, {pipeline_mode = #tpu.pipeline_mode<synchronous>, transform_indices = @transform_3, window_bounds = array<i64: 3, 8, 56>}, {pipeline_mode = #tpu.pipeline_mode<synchronous>, transform_indices = @transform_4, window_bounds = array<i64: 3, 8, 1>}, {pipeline_mode = #tpu.pipeline_mode<synchronous>, transform_indices = @transform_5, window_bounds = array<i64: 3, 8, 1>}, {pipeline_mode = #tpu.pipeline_mode<synchronous>, transform_indices = @transform_6, window_bounds = array<i64: 3, 8, 1>}, {pipeline_mode = #tpu.pipeline_mode<synchronous>, transform_indices = @transform_7, window_bounds = array<i64: 3, 8, 8>}, {pipeline_mode = #tpu.pipeline_mode<synchronous>, transform_indices = @transform_8, window_bounds = array<i64: 3, 8, 1>}, {pipeline_mode = #tpu.pipeline_mode<synchronous>, transform_indices = @transform_9, window_bounds = array<i64: 8, 1>}, {pipeline_mode = #tpu.pipeline_mode<synchronous>, transform_indices = @transform_10, window_bounds = array<i64: 8, 1>}, {pipeline_mode = #tpu.pipeline_mode<synchronous>, transform_indices = @transform_11, window_bounds = array<i64: 32, 16>}, {pipeline_mode = #tpu.pipeline_mode<synchronous>, transform_indices = @transform_12, window_bounds = array<i64: 1, 16>}, {pipeline_mode = #tpu.pipeline_mode<synchronous>, transform_indices = @transform_13, window_bounds = array<i64: 2, 16, 8>}]} {
    %c0 = arith.constant 0 : index
    %c0_0 = arith.constant 0 : index
    %c0_1 = arith.constant 0 : index
    %0 = vector.load %arg1[%c0, %c0_0, %c0_1] : memref<2x8x16xf32, #tpu.memory_space<vmem>>, vector<2x8x16xf32>
    %c0_2 = arith.constant 0 : index
    %c0_3 = arith.constant 0 : index
    %c0_4 = arith.constant 0 : index
    %1 = vector.load %arg2[%c0_2, %c0_3, %c0_4] : memref<3x8x1xf32, #tpu.memory_space<vmem>>, vector<1x8x1xf32>
    %2 = vector.shape_cast %1 : vector<1x8x1xf32> to vector<8x1xf32>
    %c0_5 = arith.constant 0 : index
    %c0_6 = arith.constant 0 : index
    %c0_7 = arith.constant 0 : index
    %3 = vector.load %arg3[%c0_5, %c0_6, %c0_7] : memref<3x8x1xf32, #tpu.memory_space<vmem>>, vector<1x8x1xf32>
    %4 = vector.shape_cast %3 : vector<1x8x1xf32> to vector<8x1xf32>
    %5 = vector.shape_cast %2 : vector<8x1xf32> to vector<1x8x1xf32>
    %6 = vector.broadcast %5 : vector<1x8x1xf32> to vector<2x8x16xf32>
    %7 = arith.mulf %6, %0 : vector<2x8x16xf32>
    %8 = math.sin %7 : vector<2x8x16xf32>
    %9 = arith.mulf %8, %8 : vector<2x8x16xf32>
    %10 = vector.shape_cast %4 : vector<8x1xf32> to vector<1x8x1xf32>
    %11 = vector.broadcast %10 : vector<1x8x1xf32> to vector<2x8x16xf32>
    %12 = arith.mulf %11, %9 : vector<2x8x16xf32>
    %13 = arith.addf %0, %12 : vector<2x8x16xf32>
    %cst = arith.constant 0.000000e+00 : f32
    %14 = vector.broadcast %cst : f32 to vector<2x8x3xf32>
    %15 = tpu.concatenate %14, %13, %14 in 2 : vector<2x8x3xf32>, vector<2x8x16xf32>, vector<2x8x3xf32> -> vector<2x8x22xf32>
    %16 = vector.extract_strided_slice %15 {offsets = [0, 0, 0], sizes = [2, 8, 16], strides = [1, 1, 1]} : vector<2x8x22xf32> to vector<2x8x16xf32>
    %17 = vector.extract_strided_slice %15 {offsets = [0, 0, 1], sizes = [2, 8, 16], strides = [1, 1, 1]} : vector<2x8x22xf32> to vector<2x8x16xf32>
    %18 = vector.extract_strided_slice %15 {offsets = [0, 0, 2], sizes = [2, 8, 16], strides = [1, 1, 1]} : vector<2x8x22xf32> to vector<2x8x16xf32>
    %19 = vector.extract_strided_slice %15 {offsets = [0, 0, 3], sizes = [2, 8, 16], strides = [1, 1, 1]} : vector<2x8x22xf32> to vector<2x8x16xf32>
    %20 = vector.extract_strided_slice %15 {offsets = [0, 0, 4], sizes = [2, 8, 16], strides = [1, 1, 1]} : vector<2x8x22xf32> to vector<2x8x16xf32>
    %21 = vector.extract_strided_slice %15 {offsets = [0, 0, 5], sizes = [2, 8, 16], strides = [1, 1, 1]} : vector<2x8x22xf32> to vector<2x8x16xf32>
    %22 = vector.extract_strided_slice %15 {offsets = [0, 0, 6], sizes = [2, 8, 16], strides = [1, 1, 1]} : vector<2x8x22xf32> to vector<2x8x16xf32>
    %23 = tpu.concatenate %16, %17, %18, %19, %20, %21, %22 in 1 : vector<2x8x16xf32>, vector<2x8x16xf32>, vector<2x8x16xf32>, vector<2x8x16xf32>, vector<2x8x16xf32>, vector<2x8x16xf32>, vector<2x8x16xf32> -> vector<2x56x16xf32>
    %c0_8 = arith.constant 0 : index
    %c0_9 = arith.constant 0 : index
    %c0_10 = arith.constant 0 : index
    %24 = vector.load %arg4[%c0_8, %c0_9, %c0_10] : memref<3x8x56xf32, #tpu.memory_space<vmem>>, vector<1x8x56xf32>
    %25 = vector.shape_cast %24 : vector<1x8x56xf32> to vector<8x56xf32>
    %26 = vector.shape_cast %25 : vector<8x56xf32> to vector<1x8x56xf32>
    %27 = vector.broadcast %26 : vector<1x8x56xf32> to vector<2x8x56xf32>
    %cst_11 = arith.constant dense<0.000000e+00> : vector<2x8x16xf32>
    %28 = tpu.matmul %27, %23, %cst_11 {dimension_numbers = #tpu.dot_dimension_numbers<[2], [1], [1], [2], [0, 0, 0, 1, 1, 2], [0], [0]>} : vector<2x8x56xf32>, vector<2x56x16xf32>, vector<2x8x16xf32> -> vector<2x8x16xf32>
    %c0_12 = arith.constant 0 : index
    %c0_13 = arith.constant 0 : index
    %c0_14 = arith.constant 0 : index
    %29 = vector.load %arg5[%c0_12, %c0_13, %c0_14] : memref<3x8x1xf32, #tpu.memory_space<vmem>>, vector<1x8x1xf32>
    %30 = vector.shape_cast %29 : vector<1x8x1xf32> to vector<8x1xf32>
    %31 = vector.shape_cast %30 : vector<8x1xf32> to vector<1x8x1xf32>
    %32 = vector.broadcast %31 : vector<1x8x1xf32> to vector<2x8x16xf32>
    %33 = arith.addf %28, %32 : vector<2x8x16xf32>
    %c0_15 = arith.constant 0 : index
    %c0_16 = arith.constant 0 : index
    %c0_17 = arith.constant 0 : index
    %34 = vector.load %arg6[%c0_15, %c0_16, %c0_17] : memref<3x8x1xf32, #tpu.memory_space<vmem>>, vector<1x8x1xf32>
    %35 = vector.shape_cast %34 : vector<1x8x1xf32> to vector<8x1xf32>
    %c0_18 = arith.constant 0 : index
    %c0_19 = arith.constant 0 : index
    %c0_20 = arith.constant 0 : index
    %36 = vector.load %arg7[%c0_18, %c0_19, %c0_20] : memref<3x8x1xf32, #tpu.memory_space<vmem>>, vector<1x8x1xf32>
    %37 = vector.shape_cast %36 : vector<1x8x1xf32> to vector<8x1xf32>
    %38 = vector.shape_cast %35 : vector<8x1xf32> to vector<1x8x1xf32>
    %39 = vector.broadcast %38 : vector<1x8x1xf32> to vector<2x8x16xf32>
    %40 = arith.mulf %39, %33 : vector<2x8x16xf32>
    %41 = math.sin %40 : vector<2x8x16xf32>
    %42 = arith.mulf %41, %41 : vector<2x8x16xf32>
    %43 = vector.shape_cast %37 : vector<8x1xf32> to vector<1x8x1xf32>
    %44 = vector.broadcast %43 : vector<1x8x1xf32> to vector<2x8x16xf32>
    %45 = arith.mulf %44, %42 : vector<2x8x16xf32>
    %46 = arith.addf %33, %45 : vector<2x8x16xf32>
    %c0_21 = arith.constant 0 : index
    %c0_22 = arith.constant 0 : index
    %c0_23 = arith.constant 0 : index
    %47 = vector.load %arg8[%c0_21, %c0_22, %c0_23] : memref<3x8x8xf32, #tpu.memory_space<vmem>>, vector<1x8x8xf32>
    %48 = vector.shape_cast %47 : vector<1x8x8xf32> to vector<8x8xf32>
    %49 = vector.shape_cast %48 : vector<8x8xf32> to vector<1x8x8xf32>
    %50 = vector.broadcast %49 : vector<1x8x8xf32> to vector<2x8x8xf32>
    %cst_24 = arith.constant dense<0.000000e+00> : vector<2x8x16xf32>
    %51 = tpu.matmul %50, %46, %cst_24 {dimension_numbers = #tpu.dot_dimension_numbers<[2], [1], [1], [2], [0, 0, 0, 1, 1, 2], [0], [0]>} : vector<2x8x8xf32>, vector<2x8x16xf32>, vector<2x8x16xf32> -> vector<2x8x16xf32>
    %c0_25 = arith.constant 0 : index
    %c0_26 = arith.constant 0 : index
    %c0_27 = arith.constant 0 : index
    %52 = vector.load %arg9[%c0_25, %c0_26, %c0_27] : memref<3x8x1xf32, #tpu.memory_space<vmem>>, vector<1x8x1xf32>
    %53 = vector.shape_cast %52 : vector<1x8x1xf32> to vector<8x1xf32>
    %54 = vector.shape_cast %53 : vector<8x1xf32> to vector<1x8x1xf32>
    %55 = vector.broadcast %54 : vector<1x8x1xf32> to vector<2x8x16xf32>
    %56 = arith.addf %51, %55 : vector<2x8x16xf32>
    %57 = arith.addf %0, %56 : vector<2x8x16xf32>
    %c1 = arith.constant 1 : index
    %c0_28 = arith.constant 0 : index
    %c0_29 = arith.constant 0 : index
    %58 = vector.load %arg2[%c1, %c0_28, %c0_29] : memref<3x8x1xf32, #tpu.memory_space<vmem>>, vector<1x8x1xf32>
    %59 = vector.shape_cast %58 : vector<1x8x1xf32> to vector<8x1xf32>
    %c1_30 = arith.constant 1 : index
    %c0_31 = arith.constant 0 : index
    %c0_32 = arith.constant 0 : index
    %60 = vector.load %arg3[%c1_30, %c0_31, %c0_32] : memref<3x8x1xf32, #tpu.memory_space<vmem>>, vector<1x8x1xf32>
    %61 = vector.shape_cast %60 : vector<1x8x1xf32> to vector<8x1xf32>
    %62 = vector.shape_cast %59 : vector<8x1xf32> to vector<1x8x1xf32>
    %63 = vector.broadcast %62 : vector<1x8x1xf32> to vector<2x8x16xf32>
    %64 = arith.mulf %63, %57 : vector<2x8x16xf32>
    %65 = math.sin %64 : vector<2x8x16xf32>
    %66 = arith.mulf %65, %65 : vector<2x8x16xf32>
    %67 = vector.shape_cast %61 : vector<8x1xf32> to vector<1x8x1xf32>
    %68 = vector.broadcast %67 : vector<1x8x1xf32> to vector<2x8x16xf32>
    %69 = arith.mulf %68, %66 : vector<2x8x16xf32>
    %70 = arith.addf %57, %69 : vector<2x8x16xf32>
    %cst_33 = arith.constant 0.000000e+00 : f32
    %71 = vector.broadcast %cst_33 : f32 to vector<2x8x9xf32>
    %72 = tpu.concatenate %71, %70, %71 in 2 : vector<2x8x9xf32>, vector<2x8x16xf32>, vector<2x8x9xf32> -> vector<2x8x34xf32>
    %73 = vector.extract_strided_slice %72 {offsets = [0, 0, 0], sizes = [2, 8, 16], strides = [1, 1, 1]} : vector<2x8x34xf32> to vector<2x8x16xf32>
    %74 = vector.extract_strided_slice %72 {offsets = [0, 0, 3], sizes = [2, 8, 16], strides = [1, 1, 1]} : vector<2x8x34xf32> to vector<2x8x16xf32>
    %75 = vector.extract_strided_slice %72 {offsets = [0, 0, 6], sizes = [2, 8, 16], strides = [1, 1, 1]} : vector<2x8x34xf32> to vector<2x8x16xf32>
    %76 = vector.extract_strided_slice %72 {offsets = [0, 0, 9], sizes = [2, 8, 16], strides = [1, 1, 1]} : vector<2x8x34xf32> to vector<2x8x16xf32>
    %77 = vector.extract_strided_slice %72 {offsets = [0, 0, 12], sizes = [2, 8, 16], strides = [1, 1, 1]} : vector<2x8x34xf32> to vector<2x8x16xf32>
    %78 = vector.extract_strided_slice %72 {offsets = [0, 0, 15], sizes = [2, 8, 16], strides = [1, 1, 1]} : vector<2x8x34xf32> to vector<2x8x16xf32>
    %79 = vector.extract_strided_slice %72 {offsets = [0, 0, 18], sizes = [2, 8, 16], strides = [1, 1, 1]} : vector<2x8x34xf32> to vector<2x8x16xf32>
    %80 = tpu.concatenate %73, %74, %75, %76, %77, %78, %79 in 1 : vector<2x8x16xf32>, vector<2x8x16xf32>, vector<2x8x16xf32>, vector<2x8x16xf32>, vector<2x8x16xf32>, vector<2x8x16xf32>, vector<2x8x16xf32> -> vector<2x56x16xf32>
    %c1_34 = arith.constant 1 : index
    %c0_35 = arith.constant 0 : index
    %c0_36 = arith.constant 0 : index
    %81 = vector.load %arg4[%c1_34, %c0_35, %c0_36] : memref<3x8x56xf32, #tpu.memory_space<vmem>>, vector<1x8x56xf32>
    %82 = vector.shape_cast %81 : vector<1x8x56xf32> to vector<8x56xf32>
    %83 = vector.shape_cast %82 : vector<8x56xf32> to vector<1x8x56xf32>
    %84 = vector.broadcast %83 : vector<1x8x56xf32> to vector<2x8x56xf32>
    %cst_37 = arith.constant dense<0.000000e+00> : vector<2x8x16xf32>
    %85 = tpu.matmul %84, %80, %cst_37 {dimension_numbers = #tpu.dot_dimension_numbers<[2], [1], [1], [2], [0, 0, 0, 1, 1, 2], [0], [0]>} : vector<2x8x56xf32>, vector<2x56x16xf32>, vector<2x8x16xf32> -> vector<2x8x16xf32>
    %c1_38 = arith.constant 1 : index
    %c0_39 = arith.constant 0 : index
    %c0_40 = arith.constant 0 : index
    %86 = vector.load %arg5[%c1_38, %c0_39, %c0_40] : memref<3x8x1xf32, #tpu.memory_space<vmem>>, vector<1x8x1xf32>
    %87 = vector.shape_cast %86 : vector<1x8x1xf32> to vector<8x1xf32>
    %88 = vector.shape_cast %87 : vector<8x1xf32> to vector<1x8x1xf32>
    %89 = vector.broadcast %88 : vector<1x8x1xf32> to vector<2x8x16xf32>
    %90 = arith.addf %85, %89 : vector<2x8x16xf32>
    %c1_41 = arith.constant 1 : index
    %c0_42 = arith.constant 0 : index
    %c0_43 = arith.constant 0 : index
    %91 = vector.load %arg6[%c1_41, %c0_42, %c0_43] : memref<3x8x1xf32, #tpu.memory_space<vmem>>, vector<1x8x1xf32>
    %92 = vector.shape_cast %91 : vector<1x8x1xf32> to vector<8x1xf32>
    %c1_44 = arith.constant 1 : index
    %c0_45 = arith.constant 0 : index
    %c0_46 = arith.constant 0 : index
    %93 = vector.load %arg7[%c1_44, %c0_45, %c0_46] : memref<3x8x1xf32, #tpu.memory_space<vmem>>, vector<1x8x1xf32>
    %94 = vector.shape_cast %93 : vector<1x8x1xf32> to vector<8x1xf32>
    %95 = vector.shape_cast %92 : vector<8x1xf32> to vector<1x8x1xf32>
    %96 = vector.broadcast %95 : vector<1x8x1xf32> to vector<2x8x16xf32>
    %97 = arith.mulf %96, %90 : vector<2x8x16xf32>
    %98 = math.sin %97 : vector<2x8x16xf32>
    %99 = arith.mulf %98, %98 : vector<2x8x16xf32>
    %100 = vector.shape_cast %94 : vector<8x1xf32> to vector<1x8x1xf32>
    %101 = vector.broadcast %100 : vector<1x8x1xf32> to vector<2x8x16xf32>
    %102 = arith.mulf %101, %99 : vector<2x8x16xf32>
    %103 = arith.addf %90, %102 : vector<2x8x16xf32>
    %c1_47 = arith.constant 1 : index
    %c0_48 = arith.constant 0 : index
    %c0_49 = arith.constant 0 : index
    %104 = vector.load %arg8[%c1_47, %c0_48, %c0_49] : memref<3x8x8xf32, #tpu.memory_space<vmem>>, vector<1x8x8xf32>
    %105 = vector.shape_cast %104 : vector<1x8x8xf32> to vector<8x8xf32>
    %106 = vector.shape_cast %105 : vector<8x8xf32> to vector<1x8x8xf32>
    %107 = vector.broadcast %106 : vector<1x8x8xf32> to vector<2x8x8xf32>
    %cst_50 = arith.constant dense<0.000000e+00> : vector<2x8x16xf32>
    %108 = tpu.matmul %107, %103, %cst_50 {dimension_numbers = #tpu.dot_dimension_numbers<[2], [1], [1], [2], [0, 0, 0, 1, 1, 2], [0], [0]>} : vector<2x8x8xf32>, vector<2x8x16xf32>, vector<2x8x16xf32> -> vector<2x8x16xf32>
    %c1_51 = arith.constant 1 : index
    %c0_52 = arith.constant 0 : index
    %c0_53 = arith.constant 0 : index
    %109 = vector.load %arg9[%c1_51, %c0_52, %c0_53] : memref<3x8x1xf32, #tpu.memory_space<vmem>>, vector<1x8x1xf32>
    %110 = vector.shape_cast %109 : vector<1x8x1xf32> to vector<8x1xf32>
    %111 = vector.shape_cast %110 : vector<8x1xf32> to vector<1x8x1xf32>
    %112 = vector.broadcast %111 : vector<1x8x1xf32> to vector<2x8x16xf32>
    %113 = arith.addf %108, %112 : vector<2x8x16xf32>
    %114 = arith.addf %57, %113 : vector<2x8x16xf32>
    %c2 = arith.constant 2 : index
    %c0_54 = arith.constant 0 : index
    %c0_55 = arith.constant 0 : index
    %115 = vector.load %arg2[%c2, %c0_54, %c0_55] : memref<3x8x1xf32, #tpu.memory_space<vmem>>, vector<1x8x1xf32>
    %116 = vector.shape_cast %115 : vector<1x8x1xf32> to vector<8x1xf32>
    %c2_56 = arith.constant 2 : index
    %c0_57 = arith.constant 0 : index
    %c0_58 = arith.constant 0 : index
    %117 = vector.load %arg3[%c2_56, %c0_57, %c0_58] : memref<3x8x1xf32, #tpu.memory_space<vmem>>, vector<1x8x1xf32>
    %118 = vector.shape_cast %117 : vector<1x8x1xf32> to vector<8x1xf32>
    %119 = vector.shape_cast %116 : vector<8x1xf32> to vector<1x8x1xf32>
    %120 = vector.broadcast %119 : vector<1x8x1xf32> to vector<2x8x16xf32>
    %121 = arith.mulf %120, %114 : vector<2x8x16xf32>
    %122 = math.sin %121 : vector<2x8x16xf32>
    %123 = arith.mulf %122, %122 : vector<2x8x16xf32>
    %124 = vector.shape_cast %118 : vector<8x1xf32> to vector<1x8x1xf32>
    %125 = vector.broadcast %124 : vector<1x8x1xf32> to vector<2x8x16xf32>
    %126 = arith.mulf %125, %123 : vector<2x8x16xf32>
    %127 = arith.addf %114, %126 : vector<2x8x16xf32>
    %cst_59 = arith.constant 0.000000e+00 : f32
    %128 = vector.broadcast %cst_59 : f32 to vector<2x8x27xf32>
    %129 = tpu.concatenate %128, %127, %128 in 2 : vector<2x8x27xf32>, vector<2x8x16xf32>, vector<2x8x27xf32> -> vector<2x8x70xf32>
    %130 = vector.extract_strided_slice %129 {offsets = [0, 0, 0], sizes = [2, 8, 16], strides = [1, 1, 1]} : vector<2x8x70xf32> to vector<2x8x16xf32>
    %131 = vector.extract_strided_slice %129 {offsets = [0, 0, 9], sizes = [2, 8, 16], strides = [1, 1, 1]} : vector<2x8x70xf32> to vector<2x8x16xf32>
    %132 = vector.extract_strided_slice %129 {offsets = [0, 0, 18], sizes = [2, 8, 16], strides = [1, 1, 1]} : vector<2x8x70xf32> to vector<2x8x16xf32>
    %133 = vector.extract_strided_slice %129 {offsets = [0, 0, 27], sizes = [2, 8, 16], strides = [1, 1, 1]} : vector<2x8x70xf32> to vector<2x8x16xf32>
    %134 = vector.extract_strided_slice %129 {offsets = [0, 0, 36], sizes = [2, 8, 16], strides = [1, 1, 1]} : vector<2x8x70xf32> to vector<2x8x16xf32>
    %135 = vector.extract_strided_slice %129 {offsets = [0, 0, 45], sizes = [2, 8, 16], strides = [1, 1, 1]} : vector<2x8x70xf32> to vector<2x8x16xf32>
    %136 = vector.extract_strided_slice %129 {offsets = [0, 0, 54], sizes = [2, 8, 16], strides = [1, 1, 1]} : vector<2x8x70xf32> to vector<2x8x16xf32>
    %137 = tpu.concatenate %130, %131, %132, %133, %134, %135, %136 in 1 : vector<2x8x16xf32>, vector<2x8x16xf32>, vector<2x8x16xf32>, vector<2x8x16xf32>, vector<2x8x16xf32>, vector<2x8x16xf32>, vector<2x8x16xf32> -> vector<2x56x16xf32>
    %c2_60 = arith.constant 2 : index
    %c0_61 = arith.constant 0 : index
    %c0_62 = arith.constant 0 : index
    %138 = vector.load %arg4[%c2_60, %c0_61, %c0_62] : memref<3x8x56xf32, #tpu.memory_space<vmem>>, vector<1x8x56xf32>
    %139 = vector.shape_cast %138 : vector<1x8x56xf32> to vector<8x56xf32>
    %140 = vector.shape_cast %139 : vector<8x56xf32> to vector<1x8x56xf32>
    %141 = vector.broadcast %140 : vector<1x8x56xf32> to vector<2x8x56xf32>
    %cst_63 = arith.constant dense<0.000000e+00> : vector<2x8x16xf32>
    %142 = tpu.matmul %141, %137, %cst_63 {dimension_numbers = #tpu.dot_dimension_numbers<[2], [1], [1], [2], [0, 0, 0, 1, 1, 2], [0], [0]>} : vector<2x8x56xf32>, vector<2x56x16xf32>, vector<2x8x16xf32> -> vector<2x8x16xf32>
    %c2_64 = arith.constant 2 : index
    %c0_65 = arith.constant 0 : index
    %c0_66 = arith.constant 0 : index
    %143 = vector.load %arg5[%c2_64, %c0_65, %c0_66] : memref<3x8x1xf32, #tpu.memory_space<vmem>>, vector<1x8x1xf32>
    %144 = vector.shape_cast %143 : vector<1x8x1xf32> to vector<8x1xf32>
    %145 = vector.shape_cast %144 : vector<8x1xf32> to vector<1x8x1xf32>
    %146 = vector.broadcast %145 : vector<1x8x1xf32> to vector<2x8x16xf32>
    %147 = arith.addf %142, %146 : vector<2x8x16xf32>
    %c2_67 = arith.constant 2 : index
    %c0_68 = arith.constant 0 : index
    %c0_69 = arith.constant 0 : index
    %148 = vector.load %arg6[%c2_67, %c0_68, %c0_69] : memref<3x8x1xf32, #tpu.memory_space<vmem>>, vector<1x8x1xf32>
    %149 = vector.shape_cast %148 : vector<1x8x1xf32> to vector<8x1xf32>
    %c2_70 = arith.constant 2 : index
    %c0_71 = arith.constant 0 : index
    %c0_72 = arith.constant 0 : index
    %150 = vector.load %arg7[%c2_70, %c0_71, %c0_72] : memref<3x8x1xf32, #tpu.memory_space<vmem>>, vector<1x8x1xf32>
    %151 = vector.shape_cast %150 : vector<1x8x1xf32> to vector<8x1xf32>
    %152 = vector.shape_cast %149 : vector<8x1xf32> to vector<1x8x1xf32>
    %153 = vector.broadcast %152 : vector<1x8x1xf32> to vector<2x8x16xf32>
    %154 = arith.mulf %153, %147 : vector<2x8x16xf32>
    %155 = math.sin %154 : vector<2x8x16xf32>
    %156 = arith.mulf %155, %155 : vector<2x8x16xf32>
    %157 = vector.shape_cast %151 : vector<8x1xf32> to vector<1x8x1xf32>
    %158 = vector.broadcast %157 : vector<1x8x1xf32> to vector<2x8x16xf32>
    %159 = arith.mulf %158, %156 : vector<2x8x16xf32>
    %160 = arith.addf %147, %159 : vector<2x8x16xf32>
    %c2_73 = arith.constant 2 : index
    %c0_74 = arith.constant 0 : index
    %c0_75 = arith.constant 0 : index
    %161 = vector.load %arg8[%c2_73, %c0_74, %c0_75] : memref<3x8x8xf32, #tpu.memory_space<vmem>>, vector<1x8x8xf32>
    %162 = vector.shape_cast %161 : vector<1x8x8xf32> to vector<8x8xf32>
    %163 = vector.shape_cast %162 : vector<8x8xf32> to vector<1x8x8xf32>
    %164 = vector.broadcast %163 : vector<1x8x8xf32> to vector<2x8x8xf32>
    %cst_76 = arith.constant dense<0.000000e+00> : vector<2x8x16xf32>
    %165 = tpu.matmul %164, %160, %cst_76 {dimension_numbers = #tpu.dot_dimension_numbers<[2], [1], [1], [2], [0, 0, 0, 1, 1, 2], [0], [0]>} : vector<2x8x8xf32>, vector<2x8x16xf32>, vector<2x8x16xf32> -> vector<2x8x16xf32>
    %c2_77 = arith.constant 2 : index
    %c0_78 = arith.constant 0 : index
    %c0_79 = arith.constant 0 : index
    %166 = vector.load %arg9[%c2_77, %c0_78, %c0_79] : memref<3x8x1xf32, #tpu.memory_space<vmem>>, vector<1x8x1xf32>
    %167 = vector.shape_cast %166 : vector<1x8x1xf32> to vector<8x1xf32>
    %168 = vector.shape_cast %167 : vector<8x1xf32> to vector<1x8x1xf32>
    %169 = vector.broadcast %168 : vector<1x8x1xf32> to vector<2x8x16xf32>
    %170 = arith.addf %165, %169 : vector<2x8x16xf32>
    %171 = arith.addf %114, %170 : vector<2x8x16xf32>
    %c0_80 = arith.constant 0 : index
    %c0_81 = arith.constant 0 : index
    %172 = vector.load %arg10[%c0_80, %c0_81] : memref<8x1xf32, #tpu.memory_space<vmem>>, vector<8x1xf32>
    %c0_82 = arith.constant 0 : index
    %c0_83 = arith.constant 0 : index
    %173 = vector.load %arg11[%c0_82, %c0_83] : memref<8x1xf32, #tpu.memory_space<vmem>>, vector<8x1xf32>
    %174 = vector.shape_cast %172 : vector<8x1xf32> to vector<1x8x1xf32>
    %175 = vector.broadcast %174 : vector<1x8x1xf32> to vector<2x8x16xf32>
    %176 = arith.mulf %175, %171 : vector<2x8x16xf32>
    %177 = math.sin %176 : vector<2x8x16xf32>
    %178 = arith.mulf %177, %177 : vector<2x8x16xf32>
    %179 = vector.shape_cast %173 : vector<8x1xf32> to vector<1x8x1xf32>
    %180 = vector.broadcast %179 : vector<1x8x1xf32> to vector<2x8x16xf32>
    %181 = arith.mulf %180, %178 : vector<2x8x16xf32>
    %182 = arith.addf %171, %181 : vector<2x8x16xf32>
    %183 = vector.extract_strided_slice %182 {offsets = [0, 0, 0], sizes = [1, 8, 16], strides = [1, 1, 1]} : vector<2x8x16xf32> to vector<1x8x16xf32>
    %184 = vector.shape_cast %183 : vector<1x8x16xf32> to vector<8x16xf32>
    %185 = tpu.transpose %184, [1, 0] : vector<8x16xf32> -> vector<16x8xf32>
    %186 = vector.extract_strided_slice %182 {offsets = [1, 0, 0], sizes = [1, 8, 16], strides = [1, 1, 1]} : vector<2x8x16xf32> to vector<1x8x16xf32>
    %187 = vector.shape_cast %186 : vector<1x8x16xf32> to vector<8x16xf32>
    %188 = tpu.transpose %187, [1, 0] : vector<8x16xf32> -> vector<16x8xf32>
    %189 = vector.shape_cast %185 : vector<16x8xf32> to vector<1x16x8xf32>
    %190 = vector.shape_cast %188 : vector<16x8xf32> to vector<1x16x8xf32>
    %191 = tpu.concatenate %189, %190 in 0 : vector<1x16x8xf32>, vector<1x16x8xf32> -> vector<2x16x8xf32>
    %cst_84 = arith.constant 0.000000e+00 : f32
    %192 = vector.broadcast %cst_84 : f32 to vector<2x1x8xf32>
    %193 = tpu.concatenate %192, %191, %192 in 1 : vector<2x1x8xf32>, vector<2x16x8xf32>, vector<2x1x8xf32> -> vector<2x18x8xf32>
    %c0_85 = arith.constant 0 : index
    %c0_86 = arith.constant 0 : index
    %c0_87 = arith.constant 0 : index
    %194 = vector.load %arg15[%c0_85, %c0_86, %c0_87] : memref<2x18x8xf32, #tpu.memory_space<vmem>>, vector<2x18x8xf32>
    tpu.vector_store %arg15[%c0_85, %c0_86, %c0_87], %193 {strides = array<i32>} : memref<2x18x8xf32, #tpu.memory_space<vmem>>, vector<2x18x8xf32>,
    %c0_88 = arith.constant 0 : index
    %c0_89 = arith.constant 0 : index
    %c0_90 = arith.constant 0 : index
    %195 = tpu.strided_load %arg15[%c0_88, %c0_89, %c0_90] {strides = array<i32: 1, 2, 1>} : memref<2x18x8xf32, #tpu.memory_space<vmem>>, vector<2x8x8xf32>
    %c0_91 = arith.constant 0 : index
    %c1_92 = arith.constant 1 : index
    %c0_93 = arith.constant 0 : index
    %196 = tpu.strided_load %arg15[%c0_91, %c1_92, %c0_93] {strides = array<i32: 1, 2, 1>} : memref<2x18x8xf32, #tpu.memory_space<vmem>>, vector<2x8x8xf32>
    %c0_94 = arith.constant 0 : index
    %c2_95 = arith.constant 2 : index
    %c0_96 = arith.constant 0 : index
    %197 = tpu.strided_load %arg15[%c0_94, %c2_95, %c0_96] {strides = array<i32: 1, 2, 1>} : memref<2x18x8xf32, #tpu.memory_space<vmem>>, vector<2x8x8xf32>
    %c0_97 = arith.constant 0 : index
    %c3 = arith.constant 3 : index
    %c0_98 = arith.constant 0 : index
    %198 = tpu.strided_load %arg15[%c0_97, %c3, %c0_98] {strides = array<i32: 1, 2, 1>} : memref<2x18x8xf32, #tpu.memory_space<vmem>>, vector<2x8x8xf32>
    %199 = tpu.concatenate %195, %196, %197, %198 in 2 : vector<2x8x8xf32>, vector<2x8x8xf32>, vector<2x8x8xf32>, vector<2x8x8xf32> -> vector<2x8x32xf32>
    %c0_99 = arith.constant 0 : index
    %c0_100 = arith.constant 0 : index
    %200 = vector.load %arg12[%c0_99, %c0_100] : memref<32x16xf32, #tpu.memory_space<vmem>>, vector<32x16xf32>
    %201 = vector.shape_cast %200 : vector<32x16xf32> to vector<1x32x16xf32>
    %202 = vector.broadcast %201 : vector<1x32x16xf32> to vector<2x32x16xf32>
    %cst_101 = arith.constant dense<0.000000e+00> : vector<2x8x16xf32>
    %203 = tpu.matmul %199, %202, %cst_101 {dimension_numbers = #tpu.dot_dimension_numbers<[2], [1], [1], [2], [0, 0, 0, 1, 1, 2], [0], [0]>} : vector<2x8x32xf32>, vector<2x32x16xf32>, vector<2x8x16xf32> -> vector<2x8x16xf32>
    %c0_102 = arith.constant 0 : index
    %c0_103 = arith.constant 0 : index
    %204 = vector.load %arg13[%c0_102, %c0_103] : memref<1x16xf32, #tpu.memory_space<vmem>>, vector<1x16xf32>
    %205 = vector.shape_cast %204 : vector<1x16xf32> to vector<1x1x16xf32>
    %206 = vector.broadcast %205 : vector<1x1x16xf32> to vector<2x8x16xf32>
    %207 = arith.addf %203, %206 : vector<2x8x16xf32>
    %208 = vector.extract_strided_slice %207 {offsets = [0, 0, 0], sizes = [1, 8, 16], strides = [1, 1, 1]} : vector<2x8x16xf32> to vector<1x8x16xf32>
    %209 = vector.shape_cast %208 : vector<1x8x16xf32> to vector<8x16xf32>
    %210 = tpu.transpose %209, [1, 0] : vector<8x16xf32> -> vector<16x8xf32>
    %c0_104 = arith.constant 0 : index
    %c0_105 = arith.constant 0 : index
    %c0_106 = arith.constant 0 : index
    %211 = vector.load %arg14[%c0_104, %c0_105, %c0_106] : memref<2x16x8xf32, #tpu.memory_space<vmem>>, vector<1x16x8xf32>
    %212 = vector.shape_cast %211 : vector<1x16x8xf32> to vector<16x8xf32>
    %213 = vector.shape_cast %210 : vector<16x8xf32> to vector<1x16x8xf32>
    tpu.vector_store %arg14[%c0_104, %c0_105, %c0_106], %213 {strides = array<i32>} : memref<2x16x8xf32, #tpu.memory_space<vmem>>, vector<1x16x8xf32>,
    %214 = vector.extract_strided_slice %207 {offsets = [1, 0, 0], sizes = [1, 8, 16], strides = [1, 1, 1]} : vector<2x8x16xf32> to vector<1x8x16xf32>
    %215 = vector.shape_cast %214 : vector<1x8x16xf32> to vector<8x16xf32>
    %216 = tpu.transpose %215, [1, 0] : vector<8x16xf32> -> vector<16x8xf32>
    %c1_107 = arith.constant 1 : index
    %c0_108 = arith.constant 0 : index
    %c0_109 = arith.constant 0 : index
    %217 = vector.load %arg14[%c1_107, %c0_108, %c0_109] : memref<2x16x8xf32, #tpu.memory_space<vmem>>, vector<1x16x8xf32>
    %218 = vector.shape_cast %217 : vector<1x16x8xf32> to vector<16x8xf32>
    %219 = vector.shape_cast %216 : vector<16x8xf32> to vector<1x16x8xf32>
    tpu.vector_store %arg14[%c1_107, %c0_108, %c0_109], %219 {strides = array<i32>} : memref<2x16x8xf32, #tpu.memory_space<vmem>>, vector<1x16x8xf32>,
    return
  }
  func.func @transform_0(%arg0: i32) -> (i32, i32, i32) {
    %c0_i32 = arith.constant 0 : i32
    %c0_i32_0 = arith.constant 0 : i32
    %c0_i32_1 = arith.constant 0 : i32
    %c0_i32_2 = arith.constant 0 : i32
    return %c0_i32, %c0_i32_0, %c0_i32_1 : i32, i32, i32
  }
  func.func @transform_1(%arg0: i32) -> (i32, i32, i32) {
    %c0_i32 = arith.constant 0 : i32
    %c0_i32_0 = arith.constant 0 : i32
    %c0_i32_1 = arith.constant 0 : i32
    %c0_i32_2 = arith.constant 0 : i32
    return %c0_i32, %c0_i32_0, %c0_i32_1 : i32, i32, i32
  }
  func.func @transform_2(%arg0: i32) -> (i32, i32, i32) {
    %c0_i32 = arith.constant 0 : i32
    %c0_i32_0 = arith.constant 0 : i32
    %c0_i32_1 = arith.constant 0 : i32
    %c0_i32_2 = arith.constant 0 : i32
    return %c0_i32, %c0_i32_0, %c0_i32_1 : i32, i32, i32
  }
  func.func @transform_3(%arg0: i32) -> (i32, i32, i32) {
    %c0_i32 = arith.constant 0 : i32
    %c0_i32_0 = arith.constant 0 : i32
    %c0_i32_1 = arith.constant 0 : i32
    %c0_i32_2 = arith.constant 0 : i32
    return %c0_i32, %c0_i32_0, %c0_i32_1 : i32, i32, i32
  }
  func.func @transform_4(%arg0: i32) -> (i32, i32, i32) {
    %c0_i32 = arith.constant 0 : i32
    %c0_i32_0 = arith.constant 0 : i32
    %c0_i32_1 = arith.constant 0 : i32
    %c0_i32_2 = arith.constant 0 : i32
    return %c0_i32, %c0_i32_0, %c0_i32_1 : i32, i32, i32
  }
  func.func @transform_5(%arg0: i32) -> (i32, i32, i32) {
    %c0_i32 = arith.constant 0 : i32
    %c0_i32_0 = arith.constant 0 : i32
    %c0_i32_1 = arith.constant 0 : i32
    %c0_i32_2 = arith.constant 0 : i32
    return %c0_i32, %c0_i32_0, %c0_i32_1 : i32, i32, i32
  }
  func.func @transform_6(%arg0: i32) -> (i32, i32, i32) {
    %c0_i32 = arith.constant 0 : i32
    %c0_i32_0 = arith.constant 0 : i32
    %c0_i32_1 = arith.constant 0 : i32
    %c0_i32_2 = arith.constant 0 : i32
    return %c0_i32, %c0_i32_0, %c0_i32_1 : i32, i32, i32
  }
  func.func @transform_7(%arg0: i32) -> (i32, i32, i32) {
    %c0_i32 = arith.constant 0 : i32
    %c0_i32_0 = arith.constant 0 : i32
    %c0_i32_1 = arith.constant 0 : i32
    %c0_i32_2 = arith.constant 0 : i32
    return %c0_i32, %c0_i32_0, %c0_i32_1 : i32, i32, i32
  }
  func.func @transform_8(%arg0: i32) -> (i32, i32, i32) {
    %c0_i32 = arith.constant 0 : i32
    %c0_i32_0 = arith.constant 0 : i32
    %c0_i32_1 = arith.constant 0 : i32
    %c0_i32_2 = arith.constant 0 : i32
    return %c0_i32, %c0_i32_0, %c0_i32_1 : i32, i32, i32
  }
  func.func @transform_9(%arg0: i32) -> (i32, i32) {
    %c0_i32 = arith.constant 0 : i32
    %c0_i32_0 = arith.constant 0 : i32
    %c0_i32_1 = arith.constant 0 : i32
    return %c0_i32, %c0_i32_0 : i32, i32
  }
  func.func @transform_10(%arg0: i32) -> (i32, i32) {
    %c0_i32 = arith.constant 0 : i32
    %c0_i32_0 = arith.constant 0 : i32
    %c0_i32_1 = arith.constant 0 : i32
    return %c0_i32, %c0_i32_0 : i32, i32
  }
  func.func @transform_11(%arg0: i32) -> (i32, i32) {
    %c0_i32 = arith.constant 0 : i32
    %c0_i32_0 = arith.constant 0 : i32
    %c0_i32_1 = arith.constant 0 : i32
    return %c0_i32, %c0_i32_0 : i32, i32
  }
  func.func @transform_12(%arg0: i32) -> (i32, i32) {
    %c0_i32 = arith.constant 0 : i32
    %c0_i32_0 = arith.constant 0 : i32
    %c0_i32_1 = arith.constant 0 : i32
    return %c0_i32, %c0_i32_0 : i32, i32
  }
  func.func @transform_13(%arg0: i32) -> (i32, i32, i32) {
    %c0_i32 = arith.constant 0 : i32
    %c0_i32_0 = arith.constant 0 : i32
    %c0_i32_1 = arith.constant 0 : i32
    %c0_i32_2 = arith.constant 0 : i32
    return %c0_i32, %c0_i32_0, %c0_i32_1 : i32, i32, i32
  }
}

</mosaic_0001>

<bundles_post_ra>
// kernel: encoder_block_pallas.1
= control target key start
LH: loop header
LB: loop body
LE: loop exit
PB: predicated region body
PF: predicated region fallthrough
CT: control target
= control target key end

     0   :  { %v3705_v0 = vmov 0   ;;  %v3706_v28 = vmov 683565275   ;;  %v3707_v32 = vmov 2475754826   ;;  %s3712_s16 = smov 3   ;;  %s4700_s1 = inlined_call_operand.vmem [shape: f32[3,8,1], index: 1, kind: input, shape index: {}]   ;;  %s4701_s2 = inlined_call_operand.vmem [shape: f32[3,8,1], index: 2, kind: input, shape index: {}]   ;;  %s4702_s0 = inlined_call_operand.vmem [shape: f32[2,8,16], index: 0, kind: input, shape index: {}]   ;;  %s4703_s5 = inlined_call_operand.vmem [shape: f32[3,8,1], index: 5, kind: input, shape index: {}]   ;;  %s4704_s8 = inlined_call_operand.vmem [shape: f32[3,8,1], index: 8, kind: input, shape index: {}]   ;;  %s4705_s4 = inlined_call_operand.vmem [shape: f32[3,8,1], index: 4, kind: input, shape index: {}]   ;;  %s4706_s6 = inlined_call_operand.vmem [shape: f32[3,8,1], index: 6, kind: input, shape index: {}]   ;;  %s4707_s3 = inlined_call_operand.vmem [shape: f32[3,8,56], index: 3, kind: input, shape index: {}]   ;;  %s4708_s7 = inlined_call_operand.vmem [shape: f32[3,8,8], index: 7, kind: input, shape index: {}]   ;;  %s4709_s9 = inlined_call_operand.vmem [shape: f32[8,1], index: 9, kind: input, shape index: {}]   ;;  %s4710_s10 = inlined_call_operand.vmem [shape: f32[8,1], index: 10, kind: input, shape index: {}]   ;;  %s4711_s11 = inlined_call_operand.vmem [shape: f32[32,16], index: 11, kind: input, shape index: {}]   ;;  %s4712_s12 = inlined_call_operand.vmem [shape: f32[1,16], index: 12, kind: input, shape index: {}]   ;;  %s4713_s13 = inlined_call_operand.vmem [shape: f32[2,16,8], index: 13, kind: output, shape index: {}]  }
   0x1   :  { %3570 = vset.pattern.permute.xlu0 %v3705_v0  ;;  %v46_v1 = vld [vmem:[%s4700_s1] sm:$0xff]  ;;  %3596 = vset.pattern.permute.xlu1 %v3705_v0  ;;  %v3820_v4 = vld [vmem:[%s4702_s0 + $0x8] sm:$0xff]  ;;  %v3708_v34 = vmov 2131351028   ;;  %v3709_v36 = vmov 2102212464  }
   0x2   :  { %50 = vperm.xlu0 %3570, %v46_v1   ;;  %v47_v2 = vld [vmem:[%s4701_s2] sm:$0xff]  ;;  %v3710_v38 = vmov 920167782   ;;  %v3711_v45 = vmov 1326507024   ;;  %s3714_s17 = smov 126  }
   0x3   :  { %v3815_v3 = vld [vmem:[%s4702_s0] sm:$0xff]  ;;  %s3715_s18 = smov 127   ;;  %s3716_s19 = smov 124  }
   0x4   :  { %s3717_s20 = smov 125   ;;  %s3720_s21 = smov 122  }
   0x5   :  { %s3721_s22 = smov 123   ;;  %s3724_s28 = smov 116  }
   0x6   :  { %267 = vperm.xlu0 %3570, %v47_v2   ;;  %s3725_s29 = smov 119   ;;  %s3726_s30 = smov 110  }
   0x7   :  { %s3727_s14 = smov 113   ;;  %s3730_s15 = smov 101  }
  0x81   :  { %v51_v5 = vpop.permute.xlu0 %50 }
  0x82   :  { %v3823_v6 = vmul.f32 %v51_v5, %v3815_v3  ;;  %v3826_v7 = vmul.f32 %v51_v5, %v3820_v4 }
  0x84   :  { %v55_v8 = vand.u32 2147483647, %v3823_v6  ;;  %v58_v9 = vand.u32 2139095040, %v3823_v6  ;;  %v162_v10 = vand.u32 2139095040, %v3826_v7  ;;  %v159_v13 = vand.u32 2147483647, %v3826_v7 }
  0x85   :  { %vm57_vm14 = vcmp.lt.s32.totalorder %v3823_v6, 0 }
  0x86   :  { %v59_v11 = vshrl.u32 %v58_v9, 23  ;;  %v62_v12 = vand.u32 8388607, %v55_v8  ;;  %v163_v14 = vshrl.u32 %v162_v10, 23  ;;  %v3836_v19 = vand.u32 8388607, %v159_v13 }
  0x87   :  { %vm56_vm15 = vcmp.le.f32.partialorder %v55_v8, 0.7853982 }
  0x88   :  { %v3092_v15 = vadd.s32 4294967169, %v59_v11  ;;  %v3096_v16 = vadd.s32 4294967169, %v163_v14  ;;  %v63_v18 = vor.u32 8388608, %v62_v12  ;;  %v167_v26 = vor.u32 8388608, %v3836_v19 }
  0x8a   :  { %v65_v17 = vadd.s32 1, %v3092_v15  ;;  %v169_v20 = vadd.s32 1, %v3096_v16  ;;  %v3838_v25 = vshll.u32 %v63_v18, 8 }
  0x8c   :  { %vm66_vm0 = vcmp.gt.s32.totalorder %v65_v17, 0  ;;  %vm170_vm1 = vcmp.gt.s32.totalorder %v169_v20, 0 }
  0x8d   :  { %v67_v21 = vsel %vm66_vm0, %v65_v17, 0  ;;  %v171_v24 = vsel %vm170_vm1, %v169_v20, 0  ;;  %vm161_vm0 = vcmp.lt.s32.totalorder %v3826_v7, 0  ;;  %vm160_vm1 = vcmp.le.f32.partialorder %v159_v13, 0.7853982 }
  0x8e   :  { %v68_v22 = vshrl.u32 %v67_v21, 5  ;;  %v69_v23 = vand.u32 31, %v67_v21  ;;  %v3842_v30 = vshrl.u32 %v171_v24, 5  ;;  %v173_v31 = vand.u32 31, %v171_v24 }
  0x90   :  { %v70_v27 = vsub.s32 32, %v69_v23  ;;  %v72_v29 = vshll.u32 %v3706_v28, %v69_v23  ;;  %v75_v33 = vshll.u32 %v3707_v32, %v69_v23  ;;  %v78_v35 = vshll.u32 %v3708_v34, %v69_v23 }
  0x91   :  { %v81_v37 = vshll.u32 %v3709_v36, %v69_v23  ;;  %v84_v39 = vshll.u32 %v3710_v38, %v69_v23  ;;  %vm87_vm2 = vcmp.lt.s32.totalorder %v68_v22, 1  ;;  %vm88_vm3 = vcmp.lt.s32.totalorder %v68_v22, 2 }
  0x92   :  { %v73_v40 = vshrl.u32 %v3707_v32, %v70_v27  ;;  %v76_v41 = vshrl.u32 %v3708_v34, %v70_v27  ;;  %v79_v42 = vshrl.u32 %v3709_v36, %v70_v27  ;;  %v71_v43 = vshrl.u32 %v3706_v28, %v70_v27 }
  0x93   :  { %v82_v44 = vshrl.u32 %v3710_v38, %v70_v27  ;;  %v85_v46 = vshrl.u32 %v3711_v45, %v70_v27  ;;  %v174_v50 = vsub.s32 32, %v173_v31  ;;  %vm89_vm4 = vcmp.lt.s32.totalorder %v68_v22, 3 }
  0x94   :  { %v74_v47 = vor.u32 %v73_v40, %v72_v29  ;;  %v77_v48 = vor.u32 %v76_v41, %v75_v33  ;;  %v80_v49 = vor.u32 %v79_v42, %v78_v35  ;;  %vm90_vm5 = vcmp.lt.s32.totalorder %v68_v22, 4 }
  0x95   :  { %v83_v51 = vor.u32 %v82_v44, %v81_v37  ;;  %v86_v52 = vor.u32 %v85_v46, %v84_v39  ;;  %v176_v60 = vshll.u32 %v3706_v28, %v173_v31  ;;  %v177_v63 = vshrl.u32 %v3707_v32, %v174_v50 }
  0x96   :  { %v91_v53 = vsel %vm87_vm2, %v71_v43, %v74_v47  ;;  %v92_v54 = vsel %vm90_vm5, %v80_v49, 2102212464  ;;  %v95_v55 = vsel %vm87_vm2, %v74_v47, %v77_v48  ;;  %v99_v56 = vsel %vm87_vm2, %v77_v48, %v80_v49 }
  0x97   :  { %v93_v57 = vsel %vm89_vm4, %v77_v48, %v92_v54  ;;  %v96_v58 = vsel %vm90_vm5, %v83_v51, 920167782  ;;  %v100_v59 = vsel %vm90_vm5, %v86_v52, 1326507024  ;;  %v179_v0 = vshll.u32 %v3707_v32, %v173_v31 }
  0x98   :  { %v97_v61 = vsel %vm89_vm4, %v80_v49, %v96_v58  ;;  %v101_v62 = vsel %vm89_vm4, %v83_v51, %v100_v59  ;;  %v94_v1 = vsel %vm88_vm3, %v91_v53, %v93_v57  ;;  %v180_v9 = vshrl.u32 %v3708_v34, %v174_v50 }
  0x99   :  { %v98_v2 = vsel %vm88_vm3, %v95_v55, %v97_v61  ;;  %v102_v5 = vsel %vm88_vm3, %v99_v56, %v101_v62  ;;  %v178_v15 = vor.u32 %v177_v63, %v176_v60  ;;  %v182_v17 = vshll.u32 %v3708_v34, %v173_v31 }
  0x9a   :  { %v3865_v10 = vmul.u32.u64.low %v3838_v25, %v102_v5  ;;  %v3866_v11 = vmul.u32.u64.high %v3838_v25, %v102_v5, %v3865_v10  ;;  %v3869_v12 = vmul.u32.u64.low %v3838_v25, %v98_v2  ;;  %v3870_v14 = vmul.u32.u64.high %v3838_v25, %v98_v2, %v3869_v12 }
  0x9b   :  { %v181_v16 = vor.u32 %v180_v9, %v179_v0  ;;  %v183_v18 = vshrl.u32 %v3709_v36, %v174_v50  ;;  %v185_v19 = vshll.u32 %v3709_v36, %v173_v31  ;;  %v186_v20 = vshrl.u32 %v3710_v38, %v174_v50 }
  0x9c   :  { %v189_v21 = vshrl.u32 %v3711_v45, %v174_v50  ;;  %v207_v22 = vshll.u32 %v167_v26, 8  ;;  %v110_v23 = vmul.u32 %v3838_v25, %v94_v1  ;;  %v175_v24 = vshrl.u32 %v3706_v28, %v174_v50 }
  0x9d   :  { %v184_v27 = vor.u32 %v183_v18, %v182_v17  ;;  %v188_v29 = vshll.u32 %v3710_v38, %v173_v31  ;;  %vm112_vm6 = vc.u32 %v3866_v11, %v3869_v12  ;;  %v113_v33 = vadd.s32 1, %v3870_v14 }
  0x9e   :  { %v187_v35 = vor.u32 %v186_v20, %v185_v19  ;;  %vm191_vm7 = vcmp.lt.s32.totalorder %v3842_v30, 1  ;;  %vm193_vm8 = vcmp.lt.s32.totalorder %v3842_v30, 3  ;;  %vm194_vm9 = vcmp.lt.s32.totalorder %v3842_v30, 4 }
  0x9f   :  { %v190_v37 = vor.u32 %v189_v21, %v188_v29  ;;  %v199_v26 = vsel %vm191_vm7, %v178_v15, %v181_v16  ;;  %v114_v25 = vsel %vm112_vm6, %v113_v33, %v3870_v14  ;;  %v196_v39 = vsel %vm194_vm9, %v184_v27, 2102212464 }
  0xa0   :  { %v200_v40 = vsel %vm194_vm9, %v187_v35, 920167782  ;;  %v203_v41 = vsel %vm191_vm7, %v181_v16, %v184_v27  ;;  %v115_v42 = vadd.s32 %v114_v25, %v110_v23  ;;  %vm192_vm10 = vcmp.lt.s32.totalorder %v3842_v30, 2 }
  0xa1   :  { %v201_v31 = vsel %vm193_vm8, %v184_v27, %v200_v40  ;;  %v204_v43 = vsel %vm194_vm9, %v190_v37, 1326507024  ;;  %v195_v44 = vsel %vm191_vm7, %v175_v24, %v178_v15  ;;  %v197_v46 = vsel %vm193_vm8, %v181_v16, %v196_v39 }
  0xa2   :  { %v202_v47 = vsel %vm192_vm10, %v199_v26, %v201_v31  ;;  %v205_v48 = vsel %vm193_vm8, %v187_v35, %v204_v43  ;;  %v116_v49 = vadd.s32 536870912, %v115_v42  ;;  %v198_v56 = vsel %vm192_vm10, %v195_v44, %v197_v46 }
  0xa3   :  { %v206_v50 = vsel %vm192_vm10, %v203_v41, %v205_v48  ;;  %v3887_v51 = vmul.u32.u64.low %v207_v22, %v202_v47  ;;  %v3888_v52 = vmul.u32.u64.high %v207_v22, %v202_v47, %v3887_v51  ;;  %v214_v30 = vmul.u32 %v207_v22, %v198_v56 }
  0xa4   :  { %v3890_v53 = vmul.u32.u64.low %v207_v22, %v206_v50  ;;  %v3891_v54 = vmul.u32.u64.high %v207_v22, %v206_v50, %v3890_v53  ;;  %v117_v55 = vshrl.u32 %v116_v49, 30  ;;  %v111_v16 = vadd.s32 %v3869_v12, %v3866_v11 }
  0xa5   :  { %v217_v58 = vadd.s32 1, %v3888_v52  ;;  %vm147_vm5 = vweird.f32 %v3823_v6  ;;  %vm251_vm9 = vweird.f32 %v3826_v7  ;;  %vm282_vm10 = vcmask 23552  }
  0xa6   :  { %v118_v57 = vshll.u32 %v117_v55, 30  ;;  %vm216_vm11 = vc.u32 %v3891_v54, %v3887_v51  ;;  %v215_v25 = vadd.s32 %v3887_v51, %v3891_v54  ;;  %v141_v12 = vsub.s32 4, %v117_v55 }
  0xa7   :  { %v218_v60 = vsel %vm216_vm11, %v217_v58, %v3888_v52  ;;  %vm285_vm11 = vcmask 154624  }
  0xa8   :  { %v119_v59 = vsub.s32 %v115_v42, %v118_v57  ;;  %v219_v61 = vadd.s32 %v218_v60, %v214_v30  ;;  %v142_v48 = vsel %vm57_vm14, %v141_v12, %v117_v55  ;;  %v706_v12 = vld [vmem:[%s4704_s8] sm:$0xff] }
  0xa9   :  { %v144_v53 = vsel %vm56_vm15, 0, %v142_v48 }
  0xaa   :  { %v121_v62 = vsub.s32 0, %v119_v59  ;;  %v220_v63 = vadd.s32 536870912, %v219_v61  ;;  %v148_v57 = vadd.s32 3, %v144_v53 }
  0xac   :  { %v3093_v0 = vmin.u32 %v121_v62, %v119_v59  ;;  %v221_v1 = vshrl.u32 %v220_v63, 30  ;;  %v149_v55 = vand.u32 3, %v148_v57 }
  0xae   :  { %v123_v2 = vclz %v3093_v0  ;;  %v222_v5 = vshll.u32 %v221_v1, 30  ;;  %v245_v56 = vsub.s32 4, %v221_v1  ;;  %vm154_vm2 = vcmp.eq.s32.totalorder %v149_v55, 2 }
  0xaf   :  { %vm151_vm3 = vcmp.eq.s32.totalorder %v149_v55, 0  ;;  %vm150_vm4 = vcmp.lt.s32.totalorder %v149_v55, 2 }
  0xb0   :  { %v3094_v9 = vadd.s32 4294967294, %v123_v2  ;;  %v223_v10 = vsub.s32 %v219_v61, %v222_v5  ;;  %v246_v8 = vsel %vm161_vm0, %v245_v56, %v221_v1 }
  0xb1   :  { %v248_v61 = vsel %vm160_vm1, 0, %v246_v8 }
  0xb2   :  { %vm3095_vm12 = vcmp.lt.s32.totalorder %v3094_v9, 0  ;;  %v225_v15 = vsub.s32 0, %v223_v10  ;;  %v252_v5 = vadd.s32 3, %v248_v61 }
  0xb3   :  { %v126_v14 = vsel %vm3095_vm12, 0, %v3094_v9  ;;  %vm3718_vm12 = vmmov 0  }
  0xb4   :  { %v127_v17 = vsub.s32 32, %v126_v14  ;;  %v131_v18 = vsub.s32 4294967266, %v126_v14  ;;  %v3097_v19 = vmin.u32 %v225_v15, %v223_v10  ;;  %v128_v20 = vshll.u32 %v119_v59, %v126_v14  ;;  %v268_v15 = vpop.permute.xlu0 %267 }
  0xb6   :  { %v129_v21 = vshrl.u32 %v111_v16, %v127_v17  ;;  %v132_v22 = vadd.s32 127, %v131_v18  ;;  %v227_v23 = vclz %v3097_v19 }
  0xb8   :  { %v130_v24 = vor.u32 %v129_v21, %v128_v20  ;;  %v133_v27 = vshll.u32 %v132_v22, 23  ;;  %v3098_v29 = vadd.s32 4294967294, %v227_v23 }
  0xba   :  { %v134_v33 = vor.u32 4788187, %v133_v27  ;;  %vm3099_vm13 = vcmp.lt.s32.totalorder %v3098_v29, 0  ;;  %v137_v37 = vcvt.s32.f32 %v130_v24 }
  0xbb   :  { %v230_v26 = vsel %vm3099_vm13, 0, %v3098_v29  ;;  %vm3722_vm13 = vmmov 1  }
  0xbc   :  { %v135_v35 = vand.u32 2147483647, %v134_v33  ;;  %v231_v39 = vsub.s32 32, %v230_v26  ;;  %v235_v40 = vsub.s32 4294967266, %v230_v26  ;;  %v232_v41 = vshll.u32 %v223_v10, %v230_v26 }
  0xbd   :  { %v253_v10 = vand.u32 3, %v252_v5 }
  0xbe   :  { %v138_v11 = vmul.f32 %v137_v37, %v135_v35  ;;  %v233_v42 = vshrl.u32 %v215_v25, %v231_v39  ;;  %v236_v31 = vadd.s32 127, %v235_v40  ;;  %v3713_v37 = vmov 0.0|0.0  }
  0xbf   :  { %vm258_vm6 = vcmp.eq.s32.totalorder %v253_v10, 2  ;;  %vm255_vm7 = vcmp.eq.s32.totalorder %v253_v10, 0  ;;  %vm254_vm8 = vcmp.lt.s32.totalorder %v253_v10, 2  ;;  %3411 = vmatprep.subr.bf16.mxu0 %v3713_v37  ;;  %3421 = vmatprep.subr.bf16.mxu1 %v3713_v37 }
  0xc0   :  { %v139_v43 = vxor.u32 2147483648, %v138_v11  ;;  %v234_v44 = vor.u32 %v233_v42, %v232_v41  ;;  %v237_v46 = vshll.u32 %v236_v31, 23  ;;  %v3115_v41 = vld [vmem:[%s4701_s2 + $0x8] sm:$0xff]  ;;  %v327_v42 = vld [vmem:[%s4705_s4] sm:$0xff] }
  0xc1   :  { %v478_v31 = vld [vmem:[%s4706_s6] sm:$0xff] }
  0xc2   :  { %v140_v47 = vsel %vm57_vm14, %v139_v43, %v138_v11  ;;  %v238_v49 = vor.u32 4788187, %v237_v46  ;;  %v241_v52 = vcvt.s32.f32 %v234_v44  ;;  %v477_v11 = vld [vmem:[%s4703_s5] sm:$0xff]  ;;  %v3114_v43 = vld [vmem:[%s4700_s1 + $0x8] sm:$0xff]  ;;  %vm3413_vm14 = vmpackc.low %vm3722_vm13, %vm285_vm11 }
  0xc3   :  { %v143_v50 = vsel %vm56_vm15, %v3823_v6, %v140_v47  ;;  %vm333_vm15 = vcmask 457728  }
  0xc4   :  { %3647 = vcosq.f32 %v143_v50  ;;  %v239_v51 = vand.u32 2147483647, %v238_v49 }
  0xc5   :  { %3649 = vsinq.f32 %v143_v50 }
  0xc6   :  { %v242_v54 = vmul.f32 %v241_v52, %v239_v51 }
  0xc8   :  { %v243_v58 = vxor.u32 2147483648, %v242_v54 }
  0xca   :  { %v244_v30 = vsel %vm161_vm0, %v243_v58, %v242_v54 }
  0xcb   :  { %v247_v59 = vsel %vm160_vm1, %v3826_v7, %v244_v30 }
  0xcc   :  { %3651 = vcosq.f32 %v247_v59 }
  0xcd   :  { %3653 = vsinq.f32 %v247_v59 }
  0xce   :  { %v3648_v60 = vpop.eup %3647 }
  0xcf   :  { %v3650_v62 = vpop.eup %3649  ;;  %v155_v63 = vxor.u32 2147483648, %v3648_v60 }
  0xd0   :  { %v152_v0 = vxor.u32 2147483648, %v3650_v62 }
  0xd1   :  { %v156_v2 = vsel %vm154_vm2, %v155_v63, %v3650_v62 }
  0xd2   :  { %v153_v9 = vsel %vm151_vm3, %v3648_v60, %v152_v0  ;;  %v326_v0 = vld [vmem:[%s4707_s3] sm:$0xff] }
  0xd3   :  { %v157_v13 = vsel %vm150_vm4, %v153_v9, %v156_v2 }
  0xd4   :  { %v158_v1 = vsel %vm147_vm5, nan, %v157_v13 }
  0xd5   :  { %v263_v14 = vmul.f32 %v158_v1, %v158_v1 }
  0xd6   :  { %v3652_v16 = vpop.eup %3651 }
  0xd7   :  { %v270_v17 = vmul.f32 %v268_v15, %v263_v14  ;;  %v3654_v18 = vpop.eup %3653  ;;  %v259_v19 = vxor.u32 2147483648, %v3652_v16 }
  0xd8   :  { %v256_v20 = vxor.u32 2147483648, %v3654_v18 }
  0xd9   :  { %v272_v21 = vadd.f32 %v270_v17, %v3815_v3  ;;  %v260_v22 = vsel %vm258_vm6, %v259_v19, %v3654_v18 }
  0xda   :  { %v257_v23 = vsel %vm255_vm7, %v3652_v16, %v256_v20 }
  0xdb   :  { %276 = vrot.lane.b32.xlu1 %v272_v21, %s3712_s16  ;;  %v261_v6 = vsel %vm254_vm8, %v257_v23, %v260_v22 }
  0xdc   :  { %v262_v24 = vsel %vm251_vm9, nan, %v261_v6 }
  0xdd   :  { %v264_v27 = vmul.f32 %v262_v24, %v262_v24 }
  0xdf   :  { %v271_v29 = vmul.f32 %v268_v15, %v264_v27 }
  0xe1   :  { %v273_v33 = vadd.f32 %v271_v29, %v3820_v4  ;;  %v3719_v4 = vmov 0.0  }
  0xe2   :  { %3271 = vmatprep.mubr.msk.f32.mxu0 %vm3718_vm12, %v3719_v4  ;;  %3288 = vmatprep.mubr.msk.f32.mxu1 %vm3718_vm12, %v3719_v4 }
  0xe3   :  { %278 = vrot.lane.b32.xlu1 %v273_v33, %s3712_s16  ;;  %s3731_s16 = smov 74  }
 0x14d   :  { %v277_v35 = vpop.permute.xlu1 %276 }
 0x14e   :  { %v283_v3 = vsel %vm282_vm10, 0.0, %v277_v35 }
 0x14f   :  { %v286_v7 = vsel %vm285_vm11, %v283_v3, 0.0 }
 0x155   :  { %v279_v26 = vpop.permute.xlu1 %278 }
 0x156   :  { %v284_v25 = vsel %vm282_vm10, 0.0, %v279_v26 }
 0x157   :  { %v287_v39 = vsel %vm285_vm11, %v284_v25, 0.0 }
 0x158   :  { %v3576_v40 = vpack.i.bf16 %v287_v39, %v286_v7 }
 0x15a   :  { %3577 = vrot.lane.b32.xlu1 %v3576_v40, %s3714_s17  ;;  %3572 = vrot.lane.b32.xlu0 %v3576_v40, %s3715_s18 }
 0x15e   :  { %3587 = vrot.lane.b32.xlu1 %v3576_v40, %s3716_s19  ;;  %3582 = vrot.lane.b32.xlu0 %v3576_v40, %s3717_s20 }
 0x162   :  { %320 = vrot.lane.b32.xlu1 %v286_v7, %s3720_s21  ;;  %3592 = vrot.lane.b32.xlu0 %v3576_v40, %s3721_s22 }
 0x166   :  { %322 = vrot.lane.b32.xlu0 %v287_v39, %s3720_s21  ;;  %330 = vperm.xlu1 %3596, %v327_v42  }
 0x16a   :  { %481 = vperm.xlu0 %3570, %v477_v11   ;;  %698 = vperm.xlu1 %3596, %v478_v31  }
 0x16e   :  { %709 = vperm.xlu0 %3570, %v706_v12   ;;  %864 = vperm.xlu1 %3596, %v3114_v43  }
 0x172   :  { %1081 = vperm.xlu0 %3570, %v3115_v41  }
 0x1cc   :  { %v3578_v44 = vpop.permute.xlu1 %3577  ;;  %v3573_v46 = vpop.permute.xlu0 %3572 }
 0x1cd   :  { %v3575_v47 = vunpack.i.h.bf16 %v3573_v46  ;;  %v3574_v48 = vunpack.i.l.bf16 %v3573_v46  ;;  %v3580_v52 = vunpack.i.h.bf16 %v3578_v44  ;;  %v3579_v53 = vunpack.i.l.bf16 %v3578_v44 }
 0x1cf   :  { %v3422_v49 = vpack.c.bf16 %v3575_v47, %v284_v25  ;;  %v3412_v50 = vpack.c.bf16 %v3574_v48, %v283_v3 }
 0x1d0   :  { %v3583_v51 = vpop.permute.xlu0 %3582  ;;  %v3588_v57 = vpop.permute.xlu1 %3587 }
 0x1d1   :  { %v3585_v54 = vunpack.i.h.bf16 %v3583_v51  ;;  %v3584_v56 = vunpack.i.l.bf16 %v3583_v51  ;;  %3414 = vmatpush3.bf16.msk.msra.mxu0 %vm3413_vm14, %v3412_v50  ;;  %3424 = vmatpush3.bf16.msk.msra.mxu1 %vm3413_vm14, %v3422_v49  ;;  %v3590_v55 = vunpack.i.h.bf16 %v3588_v57  ;;  %v3589_v59 = vunpack.i.l.bf16 %v3588_v57 }
 0x1d2   :  { %3415 = vmatprep.subr.bf16.mxu0 %v3713_v37  ;;  %3425 = vmatprep.subr.bf16.mxu1 %v3713_v37 }
 0x1d3   :  { %v3426_v58 = vpack.c.bf16 %v3585_v54, %v3580_v52  ;;  %v3416_v30 = vpack.c.bf16 %v3584_v56, %v3579_v53 }
 0x1d4   :  { %v3593_v8 = vpop.permute.xlu0 %3592  ;;  %v321_v2 = vpop.permute.xlu1 %320 }
 0x1d5   :  { %v3595_v60 = vunpack.i.h.bf16 %v3593_v8  ;;  %v3594_v61 = vunpack.i.l.bf16 %v3593_v8  ;;  %3417 = vmatpush3.bf16.msra.mxu0 %v3416_v30  ;;  %3427 = vmatpush3.bf16.msra.mxu1 %v3426_v58 }
 0x1d6   :  { %3418 = vmatprep.subr.bf16.mxu0 %v3713_v37  ;;  %3428 = vmatprep.subr.bf16.mxu1 %v3713_v37 }
 0x1d7   :  { %v3429_v62 = vpack.c.bf16 %v3595_v60, %v3590_v55  ;;  %v3419_v63 = vpack.c.bf16 %v3594_v61, %v3589_v59 }
 0x1d8   :  { %v323_v5 = vpop.permute.xlu0 %322 }
 0x1d9   :  { %3420 = vmatpush3.bf16.msra.mxu0 %v3419_v63  ;;  %3430 = vmatpush3.bf16.msra.mxu1 %v3429_v62 }
 0x1da   :  { %3269 = vmatprep.subr.mxu0 %v3719_v4  ;;  %3286 = vmatprep.subr.mxu1 %v3719_v4 }
 0x1dd   :  { %3270 = vmatpush3.msra.mxu0 %v321_v2  ;;  %3287 = vmatpush3.msra.mxu1 %v323_v5 }
 0x1de   :  { %3272 = vmatmul.mubr.msk.f32.vlgmr.msra.gmra.mrb[0].mxu0 %vm333_vm15, %v326_v0  ;;  %3289 = vmatmul.mubr.msk.f32.vlgmr.msra.gmra.mrb[0].mxu1 %vm333_vm15, %v326_v0 }
 0x1df   :  { %3291 = vmatprep.subr.mxu0 %v3719_v4  ;;  %3296 = vmatprep.subr.mxu1 %v3719_v4 }
 0x1e0   :  { %3293 = vmatprep.mubr.msk.f32.mxu0 %vm3718_vm12, %v3719_v4  ;;  %3298 = vmatprep.mubr.msk.f32.mxu1 %vm3718_vm12, %v3719_v4 }
 0x1e5   :  { %v331_v9 = vpop.permute.xlu1 %330 }
 0x1e9   :  { %v482_v17 = vpop.permute.xlu0 %481 }
 0x2b1   :  { %v403_v13 = vpop.f32.mrb[0].mxu0  ;;  %v473_v1 = vpop.f32.mrb[0].mxu1 }
 0x2b2   :  { %v3958_v10 = vadd.f32 %v403_v13, %v331_v9  ;;  %v3960_v14 = vadd.f32 %v473_v1, %v331_v9  ;;  %v3273_v15 = vpop.f32.mrb[1].mxu0  ;;  %v3290_v16 = vpop.f32.mrb[1].mxu1 }
 0x2b4   :  { %v3963_v18 = vmul.f32 %v482_v17, %v3958_v10  ;;  %v3966_v19 = vmul.f32 %v482_v17, %v3960_v14 }
 0x2b6   :  { %v486_v20 = vand.u32 2147483647, %v3963_v18  ;;  %v489_v21 = vand.u32 2139095040, %v3963_v18  ;;  %v593_v22 = vand.u32 2139095040, %v3966_v19  ;;  %v590_v24 = vand.u32 2147483647, %v3966_v19 }
 0x2b8   :  { %v490_v23 = vshrl.u32 %v489_v21, 23  ;;  %v493_v6 = vand.u32 8388607, %v486_v20  ;;  %v594_v27 = vshrl.u32 %v593_v22, 23  ;;  %v597_v26 = vand.u32 8388607, %v590_v24 }
 0x2ba   :  { %v3104_v29 = vadd.s32 4294967169, %v490_v23  ;;  %v3108_v33 = vadd.s32 4294967169, %v594_v27  ;;  %v494_v3 = vor.u32 8388608, %v493_v6  ;;  %v598_v41 = vor.u32 8388608, %v597_v26 }
 0x2bc   :  { %v496_v35 = vadd.s32 1, %v3104_v29  ;;  %v600_v25 = vadd.s32 1, %v3108_v33  ;;  %v3976_v12 = vshll.u32 %v494_v3, 8 }
 0x2be   :  { %vm497_vm0 = vcmp.gt.s32.totalorder %v496_v35, 0  ;;  %vm601_vm1 = vcmp.gt.s32.totalorder %v600_v25, 0 }
 0x2bf   :  { %v498_v7 = vsel %vm497_vm0, %v496_v35, 0  ;;  %v602_v11 = vsel %vm601_vm1, %v600_v25, 0  ;;  %vm488_vm1 = vcmp.lt.s32.totalorder %v3963_v18, 0 }
 0x2c0   :  { %v499_v39 = vshrl.u32 %v498_v7, 5  ;;  %v500_v40 = vand.u32 31, %v498_v7  ;;  %v3979_v43 = vshrl.u32 %v602_v11, 5  ;;  %v604_v44 = vand.u32 31, %v602_v11 }
 0x2c1   :  { %v638_v11 = vshll.u32 %v598_v41, 8 }
 0x2c2   :  { %v501_v42 = vsub.s32 32, %v500_v40  ;;  %v503_v31 = vshll.u32 %v3706_v28, %v500_v40  ;;  %v506_v46 = vshll.u32 %v3707_v32, %v500_v40  ;;  %v509_v47 = vshll.u32 %v3708_v34, %v500_v40 }
 0x2c3   :  { %v512_v48 = vshll.u32 %v3709_v36, %v500_v40  ;;  %v515_v49 = vshll.u32 %v3710_v38, %v500_v40  ;;  %vm518_vm2 = vcmp.lt.s32.totalorder %v499_v39, 1  ;;  %vm519_vm3 = vcmp.lt.s32.totalorder %v499_v39, 2 }
 0x2c4   :  { %v504_v50 = vshrl.u32 %v3707_v32, %v501_v42  ;;  %v507_v51 = vshrl.u32 %v3708_v34, %v501_v42  ;;  %v510_v52 = vshrl.u32 %v3709_v36, %v501_v42  ;;  %v502_v53 = vshrl.u32 %v3706_v28, %v501_v42 }
 0x2c5   :  { %v513_v54 = vshrl.u32 %v3710_v38, %v501_v42  ;;  %v516_v56 = vshrl.u32 %v3711_v45, %v501_v42  ;;  %v605_v8 = vsub.s32 32, %v604_v44  ;;  %vm520_vm4 = vcmp.lt.s32.totalorder %v499_v39, 3 }
 0x2c6   :  { %v505_v57 = vor.u32 %v504_v50, %v503_v31  ;;  %v508_v58 = vor.u32 %v507_v51, %v506_v46  ;;  %v511_v30 = vor.u32 %v510_v52, %v509_v47  ;;  %vm521_vm5 = vcmp.lt.s32.totalorder %v499_v39, 4 }
 0x2c7   :  { %v514_v55 = vor.u32 %v513_v54, %v512_v48  ;;  %v517_v59 = vor.u32 %v516_v56, %v515_v49  ;;  %v607_v9 = vshll.u32 %v3706_v28, %v604_v44  ;;  %v608_v15 = vshrl.u32 %v3707_v32, %v605_v8 }
 0x2c8   :  { %v522_v60 = vsel %vm518_vm2, %v502_v53, %v505_v57  ;;  %v523_v61 = vsel %vm521_vm5, %v511_v30, 2102212464  ;;  %v526_v62 = vsel %vm518_vm2, %v505_v57, %v508_v58  ;;  %v530_v63 = vsel %vm518_vm2, %v508_v58, %v511_v30 }
 0x2c9   :  { %v524_v0 = vsel %vm520_vm4, %v508_v58, %v523_v61  ;;  %v527_v2 = vsel %vm521_vm5, %v514_v55, 920167782  ;;  %v531_v5 = vsel %vm521_vm5, %v517_v59, 1326507024  ;;  %v610_v16 = vshll.u32 %v3707_v32, %v604_v44 }
 0x2ca   :  { %v528_v13 = vsel %vm520_vm4, %v511_v30, %v527_v2  ;;  %v532_v1 = vsel %vm520_vm4, %v514_v55, %v531_v5  ;;  %v525_v17 = vsel %vm519_vm3, %v522_v60, %v524_v0  ;;  %v611_v23 = vshrl.u32 %v3708_v34, %v605_v8 }
 0x2cb   :  { %v529_v21 = vsel %vm519_vm3, %v526_v62, %v528_v13  ;;  %v533_v22 = vsel %vm519_vm3, %v530_v63, %v532_v1  ;;  %v609_v35 = vor.u32 %v608_v15, %v607_v9  ;;  %v613_v26 = vshll.u32 %v3708_v34, %v604_v44 }
 0x2cc   :  { %v4002_v6 = vmul.u32.u64.low %v3976_v12, %v533_v22  ;;  %v4003_v27 = vmul.u32.u64.high %v3976_v12, %v533_v22, %v4002_v6  ;;  %v4006_v29 = vmul.u32.u64.low %v3976_v12, %v529_v21  ;;  %v4007_v33 = vmul.u32.u64.high %v3976_v12, %v529_v21, %v4006_v29 }
 0x2cd   :  { %v612_v3 = vor.u32 %v611_v23, %v610_v16  ;;  %v614_v25 = vshrl.u32 %v3709_v36, %v605_v8  ;;  %v616_v7 = vshll.u32 %v3709_v36, %v604_v44  ;;  %v617_v39 = vshrl.u32 %v3710_v38, %v605_v8 }
 0x2ce   :  { %v620_v40 = vshrl.u32 %v3711_v45, %v605_v8  ;;  %v541_v42 = vmul.u32 %v3976_v12, %v525_v17  ;;  %v606_v31 = vshrl.u32 %v3706_v28, %v605_v8  ;;  %v619_v47 = vshll.u32 %v3710_v38, %v604_v44 }
 0x2cf   :  { %v615_v46 = vor.u32 %v614_v25, %v613_v26  ;;  %vm543_vm6 = vc.u32 %v4003_v27, %v4006_v29  ;;  %v544_v48 = vadd.s32 1, %v4007_v33  ;;  %v618_v49 = vor.u32 %v617_v39, %v616_v7 }
 0x2d0   :  { %vm622_vm7 = vcmp.lt.s32.totalorder %v3979_v43, 1  ;;  %v621_v50 = vor.u32 %v620_v40, %v619_v47  ;;  %vm624_vm8 = vcmp.lt.s32.totalorder %v3979_v43, 3  ;;  %vm625_vm9 = vcmp.lt.s32.totalorder %v3979_v43, 4 }
 0x2d1   :  { %v630_v41 = vsel %vm622_vm7, %v609_v35, %v612_v3  ;;  %v545_v12 = vsel %vm543_vm6, %v544_v48, %v4007_v33  ;;  %v627_v51 = vsel %vm625_vm9, %v615_v46, 2102212464  ;;  %v631_v52 = vsel %vm625_vm9, %v618_v49, 920167782 }
 0x2d2   :  { %v634_v53 = vsel %vm622_vm7, %v612_v3, %v615_v46  ;;  %v546_v54 = vadd.s32 %v545_v12, %v541_v42  ;;  %vm623_vm10 = vcmp.lt.s32.totalorder %v3979_v43, 2  ;;  %v632_v44 = vsel %vm624_vm8, %v615_v46, %v631_v52 }
 0x2d3   :  { %v635_v56 = vsel %vm625_vm9, %v621_v50, 1326507024  ;;  %v626_v57 = vsel %vm622_vm7, %v606_v31, %v609_v35  ;;  %v628_v58 = vsel %vm624_vm8, %v612_v3, %v627_v51  ;;  %v633_v30 = vsel %vm623_vm10, %v630_v41, %v632_v44 }
 0x2d4   :  { %v636_v8 = vsel %vm624_vm8, %v618_v49, %v635_v56  ;;  %v547_v55 = vadd.s32 536870912, %v546_v54  ;;  %v4024_v60 = vmul.u32.u64.low %v638_v11, %v633_v30  ;;  %v4025_v61 = vmul.u32.u64.high %v638_v11, %v633_v30, %v4024_v60 }
 0x2d5   :  { %v637_v59 = vsel %vm623_vm10, %v634_v53, %v636_v8  ;;  %v629_v2 = vsel %vm623_vm10, %v626_v57, %v628_v58  ;;  %v542_v25 = vadd.s32 %v4006_v29, %v4003_v27  ;;  %vm487_vm2 = vcmp.le.f32.partialorder %v486_v20, 0.7853982 }
 0x2d6   :  { %v4027_v62 = vmul.u32.u64.low %v638_v11, %v637_v59  ;;  %v4028_v63 = vmul.u32.u64.high %v638_v11, %v637_v59, %v4027_v62  ;;  %v548_v0 = vshrl.u32 %v547_v55, 30  ;;  %v648_v9 = vadd.s32 1, %v4025_v61 }
 0x2d7   :  { %v645_v43 = vmul.u32 %v638_v11, %v629_v2  ;;  %vm592_vm3 = vcmp.lt.s32.totalorder %v3966_v19, 0  ;;  %vm591_vm4 = vcmp.le.f32.partialorder %v590_v24, 0.7853982  ;;  %vm578_vm8 = vweird.f32 %v3963_v18 }
 0x2d8   :  { %v549_v5 = vshll.u32 %v548_v0, 30  ;;  %vm647_vm11 = vc.u32 %v4028_v63, %v4024_v60  ;;  %v646_v52 = vadd.s32 %v4024_v60, %v4028_v63  ;;  %v572_v29 = vsub.s32 4, %v548_v0 }
 0x2d9   :  { %v649_v1 = vsel %vm647_vm11, %v648_v9, %v4025_v61  ;;  %vm712_vm10 = vcmask 64512  }
 0x2da   :  { %v550_v13 = vsub.s32 %v546_v54, %v549_v5  ;;  %v650_v15 = vadd.s32 %v649_v1, %v645_v43  ;;  %v573_v59 = vsel %vm488_vm1, %v572_v29, %v548_v0 }
 0x2db   :  { %v575_v62 = vsel %vm487_vm2, 0, %v573_v59 }
 0x2dc   :  { %v552_v16 = vsub.s32 0, %v550_v13  ;;  %v651_v17 = vadd.s32 536870912, %v650_v15  ;;  %v579_v43 = vadd.s32 3, %v575_v62 }
 0x2de   :  { %v3105_v21 = vmin.u32 %v552_v16, %v550_v13  ;;  %v652_v22 = vshrl.u32 %v651_v17, 30  ;;  %v580_v0 = vand.u32 3, %v579_v43 }
 0x2e0   :  { %v554_v23 = vclz %v3105_v21  ;;  %v653_v6 = vshll.u32 %v652_v22, 30  ;;  %v676_v9 = vsub.s32 4, %v652_v22  ;;  %vm585_vm5 = vcmp.eq.s32.totalorder %v580_v0, 2 }
 0x2e1   :  { %vm582_vm6 = vcmp.eq.s32.totalorder %v580_v0, 0  ;;  %vm581_vm7 = vcmp.lt.s32.totalorder %v580_v0, 2 }
 0x2e2   :  { %v3106_v33 = vadd.s32 4294967294, %v554_v23  ;;  %v654_v35 = vsub.s32 %v650_v15, %v653_v6  ;;  %v677_v1 = vsel %vm592_vm3, %v676_v9, %v652_v22 }
 0x2e3   :  { %v679_v17 = vsel %vm591_vm4, 0, %v677_v1 }
 0x2e4   :  { %vm3107_vm14 = vcmp.lt.s32.totalorder %v3106_v33, 0  ;;  %v656_v26 = vsub.s32 0, %v654_v35 }
 0x2e5   :  { %v557_v3 = vsel %vm3107_vm14, 0, %v3106_v33 }
 0x2e6   :  { %v558_v7 = vsub.s32 32, %v557_v3  ;;  %v562_v39 = vsub.s32 4294967266, %v557_v3  ;;  %v3109_v40 = vmin.u32 %v656_v26, %v654_v35  ;;  %v559_v11 = vshll.u32 %v550_v13, %v557_v3 }
 0x2e8   :  { %v560_v42 = vshrl.u32 %v542_v25, %v558_v7  ;;  %v563_v31 = vadd.s32 127, %v562_v39  ;;  %v658_v46 = vclz %v3109_v40  ;;  %v699_v7 = vpop.permute.xlu1 %698 }
 0x2ea   :  { %v561_v47 = vor.u32 %v560_v42, %v559_v11  ;;  %v564_v48 = vshll.u32 %v563_v31, 23  ;;  %v3110_v49 = vadd.s32 4294967294, %v658_v46 }
 0x2ec   :  { %v565_v50 = vor.u32 4788187, %v564_v48  ;;  %vm3111_vm0 = vcmp.lt.s32.totalorder %v3110_v49, 0  ;;  %v568_v12 = vcvt.s32.f32 %v561_v47  ;;  %v705_v47 = vld [vmem:[%s4708_s7] sm:$0xff]  ;;  %v865_v29 = vpop.permute.xlu1 %864 }
 0x2ed   :  { %v661_v51 = vsel %vm3111_vm0, 0, %v3110_v49  ;;  %vm682_vm0 = vweird.f32 %v3966_v19 }
 0x2ee   :  { %v566_v41 = vand.u32 2147483647, %v565_v50  ;;  %v662_v53 = vsub.s32 32, %v661_v51  ;;  %v666_v54 = vsub.s32 4294967266, %v661_v51  ;;  %v663_v44 = vshll.u32 %v654_v35, %v661_v51 }
 0x2ef   :  { %v683_v35 = vadd.s32 3, %v679_v17 }
 0x2f0   :  { %v569_v27 = vmul.f32 %v568_v12, %v566_v41  ;;  %v664_v56 = vshrl.u32 %v646_v52, %v662_v53  ;;  %v667_v57 = vadd.s32 127, %v666_v54  ;;  %v3703_v54 = vld [vmem:[%s4702_s0] sm:$0xff] }
 0x2f1   :  { %v684_v25 = vand.u32 3, %v683_v35 }
 0x2f2   :  { %v570_v58 = vxor.u32 2147483648, %v569_v27  ;;  %v665_v30 = vor.u32 %v664_v56, %v663_v44  ;;  %v668_v8 = vshll.u32 %v667_v57, 23 }
 0x2f3   :  { %vm689_vm9 = vcmp.eq.s32.totalorder %v684_v25, 2  ;;  %vm686_vm11 = vcmp.eq.s32.totalorder %v684_v25, 0  ;;  %vm685_vm14 = vcmp.lt.s32.totalorder %v684_v25, 2 }
 0x2f4   :  { %v571_v55 = vsel %vm488_vm1, %v570_v58, %v569_v27  ;;  %v669_v60 = vor.u32 4788187, %v668_v8  ;;  %v672_v2 = vcvt.s32.f32 %v665_v30 }
 0x2f5   :  { %v574_v61 = vsel %vm487_vm2, %v3963_v18, %v571_v55 }
 0x2f6   :  { %3655 = vcosq.f32 %v574_v61  ;;  %v670_v63 = vand.u32 2147483647, %v669_v60 }
 0x2f7   :  { %3657 = vsinq.f32 %v574_v61  ;;  %v3704_v61 = vld [vmem:[%s4702_s0 + $0x8] sm:$0xff]  ;;  %s3723_s0 = smov 9  }
 0x2f8   :  { %v673_v5 = vmul.f32 %v672_v2, %v670_v63 }
 0x2fa   :  { %v674_v13 = vxor.u32 2147483648, %v673_v5 }
 0x2fc   :  { %v675_v20 = vsel %vm592_vm3, %v674_v13, %v673_v5 }
 0x2fd   :  { %v678_v15 = vsel %vm591_vm4, %v3966_v19, %v675_v20  ;;  %v710_v19 = vpop.permute.xlu0 %709 }
 0x2fe   :  { %3659 = vcosq.f32 %v678_v15 }
 0x2ff   :  { %3661 = vsinq.f32 %v678_v15 }
 0x300   :  { %v3656_v16 = vpop.eup %3655 }
 0x301   :  { %v3658_v21 = vpop.eup %3657  ;;  %v586_v23 = vxor.u32 2147483648, %v3656_v16 }
 0x302   :  { %v583_v6 = vxor.u32 2147483648, %v3658_v21 }
 0x303   :  { %v587_v33 = vsel %vm585_vm5, %v586_v23, %v3658_v21 }
 0x304   :  { %v584_v3 = vsel %vm582_vm6, %v3656_v16, %v583_v6 }
 0x305   :  { %v588_v24 = vsel %vm581_vm7, %v584_v3, %v587_v33 }
 0x306   :  { %v589_v22 = vsel %vm578_vm8, nan, %v588_v24 }
 0x307   :  { %v694_v26 = vmul.f32 %v589_v22, %v589_v22 }
 0x308   :  { %v3660_v39 = vpop.eup %3659 }
 0x309   :  { %v701_v40 = vmul.f32 %v699_v7, %v694_v26  ;;  %v3662_v11 = vpop.eup %3661  ;;  %v690_v42 = vxor.u32 2147483648, %v3660_v39 }
 0x30a   :  { %v687_v46 = vxor.u32 2147483648, %v3662_v11 }
 0x30b   :  { %v703_v31 = vadd.f32 %v701_v40, %v3958_v10  ;;  %v691_v18 = vsel %vm689_vm9, %v690_v42, %v3662_v11 }
 0x30c   :  { %v688_v48 = vsel %vm686_vm11, %v3660_v39, %v687_v46 }
 0x30d   :  { %3292 = vmatpush3.msra.mxu0 %v703_v31  ;;  %v692_v49 = vsel %vm685_vm14, %v688_v48, %v691_v18 }
 0x30e   :  { %3294 = vmatmul.mubr.msk.f32.vlgmr.msra.gmra.mrb[2].mxu0 %vm712_vm10, %v705_v47  ;;  %3431 = vmatprep.subr.bf16.mxu0 %v3713_v37  ;;  %v693_v10 = vsel %vm682_vm0, nan, %v692_v49 }
 0x30f   :  { %3315 = vmatprep.mubr.msk.f32.mxu0 %vm3718_vm12, %v3719_v4  ;;  %v695_v50 = vmul.f32 %v693_v10, %v693_v10 }
 0x311   :  { %v702_v41 = vmul.f32 %v699_v7, %v695_v50 }
 0x313   :  { %v704_v12 = vadd.f32 %v702_v41, %v3960_v14 }
 0x315   :  { %3297 = vmatpush3.msra.mxu1 %v704_v12 }
 0x316   :  { %3299 = vmatmul.mubr.msk.f32.vlgmr.msra.gmra.mrb[2].mxu1 %vm712_vm10, %v705_v47  ;;  %3441 = vmatprep.subr.bf16.mxu1 %v3713_v37 }
 0x317   :  { %3332 = vmatprep.mubr.msk.f32.mxu1 %vm3718_vm12, %v3719_v4 }
 0x3e1   :  { %v782_v51 = vpop.f32.mrb[2].mxu0 }
 0x3e2   :  { %v783_v52 = vadd.f32 %v782_v51, %v710_v19  ;;  %v3295_v53 = vpop.f32.mrb[3].mxu0 }
 0x3e4   :  { %v4061_v27 = vadd.f32 %v3703_v54, %v783_v52 }
 0x3e6   :  { %v4064_v14 = vmul.f32 %v865_v29, %v4061_v27 }
 0x3e8   :  { %v869_v44 = vand.u32 2147483647, %v4064_v14  ;;  %v872_v56 = vand.u32 2139095040, %v4064_v14 }
 0x3e9   :  { %v852_v58 = vpop.f32.mrb[2].mxu1 }
 0x3ea   :  { %v873_v57 = vshrl.u32 %v872_v56, 23  ;;  %v853_v30 = vadd.f32 %v852_v58, %v710_v19  ;;  %v3300_v8 = vpop.f32.mrb[3].mxu1  ;;  %v876_v59 = vand.u32 8388607, %v869_v44 }
 0x3ec   :  { %v3116_v55 = vadd.s32 4294967169, %v873_v57  ;;  %v4073_v60 = vadd.f32 %v3704_v61, %v853_v30  ;;  %v877_v2 = vor.u32 8388608, %v876_v59 }
 0x3ee   :  { %v879_v62 = vadd.s32 1, %v3116_v55  ;;  %v4076_v63 = vmul.f32 %v865_v29, %v4073_v60  ;;  %v917_v0 = vshll.u32 %v877_v2, 8 }
 0x3f0   :  { %vm880_vm1 = vcmp.gt.s32.totalorder %v879_v62, 0  ;;  %v973_v9 = vand.u32 2147483647, %v4076_v63  ;;  %v976_v43 = vand.u32 2139095040, %v4076_v63 }
 0x3f1   :  { %v881_v5 = vsel %vm880_vm1, %v879_v62, 0 }
 0x3f2   :  { %v883_v13 = vand.u32 31, %v881_v5  ;;  %v882_v20 = vshrl.u32 %v881_v5, 5  ;;  %v977_v15 = vshrl.u32 %v976_v43, 23  ;;  %v980_v23 = vand.u32 8388607, %v973_v9 }
 0x3f4   :  { %v884_v1 = vsub.s32 32, %v883_v13  ;;  %v886_v16 = vshll.u32 %v3706_v28, %v883_v13  ;;  %v889_v17 = vshll.u32 %v3707_v32, %v883_v13  ;;  %v892_v21 = vshll.u32 %v3708_v34, %v883_v13 }
 0x3f5   :  { %v895_v3 = vshll.u32 %v3709_v36, %v883_v13  ;;  %v898_v22 = vshll.u32 %v3710_v38, %v883_v13  ;;  %vm901_vm2 = vcmp.lt.s32.totalorder %v882_v20, 1  ;;  %v3120_v40 = vadd.s32 4294967169, %v977_v15 }
 0x3f6   :  { %v887_v6 = vshrl.u32 %v3707_v32, %v884_v1  ;;  %v890_v33 = vshrl.u32 %v3708_v34, %v884_v1  ;;  %v893_v35 = vshrl.u32 %v3709_v36, %v884_v1  ;;  %v896_v24 = vshrl.u32 %v3710_v38, %v884_v1 }
 0x3f7   :  { %v899_v26 = vshrl.u32 %v3711_v45, %v884_v1  ;;  %vm902_vm3 = vcmp.lt.s32.totalorder %v882_v20, 2  ;;  %vm904_vm4 = vcmp.lt.s32.totalorder %v882_v20, 4  ;;  %v885_v31 = vshrl.u32 %v3706_v28, %v884_v1 }
 0x3f8   :  { %v888_v25 = vor.u32 %v887_v6, %v886_v16  ;;  %v891_v7 = vor.u32 %v890_v33, %v889_v17  ;;  %v894_v39 = vor.u32 %v893_v35, %v892_v21  ;;  %v897_v11 = vor.u32 %v896_v24, %v895_v3 }
 0x3f9   :  { %v900_v42 = vor.u32 %v899_v26, %v898_v22  ;;  %vm903_vm5 = vcmp.lt.s32.totalorder %v882_v20, 3  ;;  %v983_v10 = vadd.s32 1, %v3120_v40  ;;  %v981_v53 = vor.u32 8388608, %v980_v23 }
 0x3fa   :  { %v906_v46 = vsel %vm904_vm4, %v894_v39, 2102212464  ;;  %v909_v47 = vsel %vm901_vm2, %v888_v25, %v891_v7  ;;  %v913_v18 = vsel %vm901_vm2, %v891_v7, %v894_v39  ;;  %v910_v48 = vsel %vm904_vm4, %v897_v11, 920167782 }
 0x3fb   :  { %v914_v49 = vsel %vm904_vm4, %v900_v42, 1326507024  ;;  %v905_v50 = vsel %vm901_vm2, %v885_v31, %v888_v25  ;;  %v907_v41 = vsel %vm903_vm5, %v891_v7, %v906_v46  ;;  %v911_v12 = vsel %vm903_vm5, %v894_v39, %v910_v48 }
 0x3fc   :  { %v915_v19 = vsel %vm903_vm5, %v897_v11, %v914_v49  ;;  %v912_v51 = vsel %vm902_vm3, %v909_v47, %v911_v12  ;;  %vm984_vm6 = vcmp.gt.s32.totalorder %v983_v10, 0  ;;  %v908_v58 = vsel %vm902_vm3, %v905_v50, %v907_v41 }
 0x3fd   :  { %v916_v52 = vsel %vm902_vm3, %v913_v18, %v915_v19  ;;  %v4101_v56 = vmul.u32.u64.low %v917_v0, %v912_v51  ;;  %v4102_v57 = vmul.u32.u64.high %v917_v0, %v912_v51, %v4101_v56  ;;  %v985_v30 = vsel %vm984_vm6, %v983_v10, 0 }
 0x3fe   :  { %v4098_v54 = vmul.u32.u64.low %v917_v0, %v916_v52  ;;  %v4099_v29 = vmul.u32.u64.high %v917_v0, %v916_v52, %v4098_v54  ;;  %v987_v8 = vand.u32 31, %v985_v30  ;;  %v1021_v55 = vshll.u32 %v981_v53, 8 }
 0x3ff   :  { %v924_v59 = vmul.u32 %v917_v0, %v908_v58  ;;  %v927_v61 = vadd.s32 1, %v4102_v57  ;;  %v986_v2 = vshrl.u32 %v985_v30, 5  ;;  %vm871_vm2 = vcmp.lt.s32.totalorder %v4064_v14, 0 }
 0x400   :  { %vm926_vm7 = vc.u32 %v4099_v29, %v4101_v56  ;;  %v988_v62 = vsub.s32 32, %v987_v8  ;;  %v990_v5 = vshll.u32 %v3706_v28, %v987_v8  ;;  %v993_v43 = vshll.u32 %v3707_v32, %v987_v8 }
 0x401   :  { %v996_v13 = vshll.u32 %v3708_v34, %v987_v8  ;;  %v928_v20 = vsel %vm926_vm7, %v927_v61, %v4102_v57  ;;  %v999_v0 = vshll.u32 %v3709_v36, %v987_v8  ;;  %v1002_v35 = vshll.u32 %v3710_v38, %v987_v8 }
 0x402   :  { %v991_v1 = vshrl.u32 %v3707_v32, %v988_v62  ;;  %v994_v15 = vshrl.u32 %v3708_v34, %v988_v62  ;;  %v929_v16 = vadd.s32 %v928_v20, %v924_v59  ;;  %v989_v17 = vshrl.u32 %v3706_v28, %v988_v62 }
 0x403   :  { %v997_v21 = vshrl.u32 %v3709_v36, %v988_v62  ;;  %v1000_v23 = vshrl.u32 %v3710_v38, %v988_v62  ;;  %v1003_v3 = vshrl.u32 %v3711_v45, %v988_v62  ;;  %vm1005_vm8 = vcmp.lt.s32.totalorder %v986_v2, 1 }
 0x404   :  { %v992_v6 = vor.u32 %v991_v1, %v990_v5  ;;  %v995_v33 = vor.u32 %v994_v15, %v993_v43  ;;  %v930_v24 = vadd.s32 536870912, %v929_v16  ;;  %vm1006_vm9 = vcmp.lt.s32.totalorder %v986_v2, 2 }
 0x405   :  { %v998_v22 = vor.u32 %v997_v21, %v996_v13  ;;  %v1001_v26 = vor.u32 %v1000_v23, %v999_v0  ;;  %v1004_v25 = vor.u32 %v1003_v3, %v1002_v35  ;;  %vm1007_vm11 = vcmp.lt.s32.totalorder %v986_v2, 3 }
 0x406   :  { %vm1008_vm14 = vcmp.lt.s32.totalorder %v986_v2, 4  ;;  %v931_v7 = vshrl.u32 %v930_v24, 30  ;;  %v1013_v40 = vsel %vm1005_vm8, %v992_v6, %v995_v33  ;;  %v1009_v42 = vsel %vm1005_vm8, %v989_v17, %v992_v6 }
 0x407   :  { %v1010_v39 = vsel %vm1008_vm14, %v998_v22, 2102212464  ;;  %v1014_v11 = vsel %vm1008_vm14, %v1001_v26, 920167782  ;;  %v1017_v46 = vsel %vm1005_vm8, %v995_v33, %v998_v22  ;;  %v1018_v47 = vsel %vm1008_vm14, %v1004_v25, 1326507024 }
 0x408   :  { %v1015_v31 = vsel %vm1007_vm11, %v998_v22, %v1014_v11  ;;  %v932_v18 = vshll.u32 %v931_v7, 30  ;;  %v1011_v48 = vsel %vm1007_vm11, %v995_v33, %v1010_v39  ;;  %v1019_v10 = vsel %vm1007_vm11, %v1001_v26, %v1018_v47 }
 0x409   :  { %v1016_v49 = vsel %vm1006_vm9, %v1013_v40, %v1015_v31  ;;  %v1020_v50 = vsel %vm1006_vm9, %v1017_v46, %v1019_v10  ;;  %v1012_v53 = vsel %vm1006_vm9, %v1009_v42, %v1011_v48  ;;  %v925_v2 = vadd.s32 %v4101_v56, %v4099_v29 }
 0x40a   :  { %v4123_v41 = vmul.u32.u64.low %v1021_v55, %v1016_v49  ;;  %v4124_v12 = vmul.u32.u64.high %v1021_v55, %v1016_v49, %v4123_v41  ;;  %v933_v19 = vsub.s32 %v929_v16, %v932_v18  ;;  %v1028_v30 = vmul.u32 %v1021_v55, %v1012_v53 }
 0x40b   :  { %v4126_v51 = vmul.u32.u64.low %v1021_v55, %v1020_v50  ;;  %v4127_v52 = vmul.u32.u64.high %v1021_v55, %v1020_v50, %v4126_v51  ;;  %v955_v26 = vsub.s32 4, %v931_v7  ;;  %vm4138_vm4 = vcmp.le.f32.partialorder %v869_v44, 0.7853982 }
 0x40c   :  { %v935_v54 = vsub.s32 0, %v933_v19  ;;  %v1031_v57 = vadd.s32 1, %v4124_v12  ;;  %vm975_vm5 = vcmp.lt.s32.totalorder %v4076_v63, 0  ;;  %vm4151_vm6 = vcmp.le.f32.partialorder %v973_v9, 0.7853982 }
 0x40d   :  { %vm1030_vm0 = vc.u32 %v4127_v52, %v4123_v41  ;;  %v956_v11 = vsel %vm871_vm2, %v955_v26, %v931_v7  ;;  %v1029_v31 = vadd.s32 %v4123_v41, %v4127_v52  ;;  %vm961_vm11 = vweird.f32 %v4064_v14 }
 0x40e   :  { %v3117_v58 = vmin.u32 %v935_v54, %v933_v19  ;;  %v1032_v8 = vsel %vm1030_vm0, %v1031_v57, %v4124_v12  ;;  %v958_v44 = vsel %vm4138_vm4, 0, %v956_v11 }
 0x40f   :  { %v1033_v61 = vadd.s32 %v1032_v8, %v1028_v30 }
 0x410   :  { %v937_v59 = vclz %v3117_v58 }
 0x411   :  { %v1034_v5 = vadd.s32 536870912, %v1033_v61 }
 0x412   :  { %v3118_v62 = vadd.s32 4294967294, %v937_v59 }
 0x413   :  { %v1035_v43 = vshrl.u32 %v1034_v5, 30 }
 0x414   :  { %vm3119_vm1 = vcmp.lt.s32.totalorder %v3118_v62, 0 }
 0x415   :  { %v940_v13 = vsel %vm3119_vm1, 0, %v3118_v62  ;;  %v1036_v15 = vshll.u32 %v1035_v43, 30  ;;  %v1059_v53 = vsub.s32 4, %v1035_v43 }
 0x416   :  { %v941_v20 = vsub.s32 32, %v940_v13  ;;  %v945_v1 = vsub.s32 4294967266, %v940_v13  ;;  %v942_v0 = vshll.u32 %v933_v19, %v940_v13  ;;  %v962_v19 = vadd.s32 3, %v958_v44 }
 0x417   :  { %v1037_v17 = vsub.s32 %v1033_v61, %v1036_v15  ;;  %v1060_v62 = vsel %vm975_vm5, %v1059_v53, %v1035_v43 }
 0x418   :  { %v943_v16 = vshrl.u32 %v925_v2, %v941_v20  ;;  %v946_v55 = vadd.s32 127, %v945_v1  ;;  %v963_v54 = vand.u32 3, %v962_v19  ;;  %v1062_v9 = vsel %vm4151_vm6, 0, %v1060_v62 }
 0x419   :  { %v1039_v6 = vsub.s32 0, %v1037_v17 }
 0x41a   :  { %v944_v21 = vor.u32 %v943_v16, %v942_v0  ;;  %v947_v23 = vshll.u32 %v946_v55, 23  ;;  %vm968_vm7 = vcmp.eq.s32.totalorder %v963_v54, 2  ;;  %vm965_vm8 = vcmp.eq.s32.totalorder %v963_v54, 0  ;;  %v1082_v0 = vpop.permute.xlu0 %1081 }
 0x41b   :  { %v3121_v35 = vmin.u32 %v1039_v6, %v1037_v17  ;;  %vm964_vm9 = vcmp.lt.s32.totalorder %v963_v54, 2  ;;  %v1066_v16 = vadd.s32 3, %v1062_v9  ;;  %v3124_v9 = vld [vmem:[%s4707_s3 + $0x8] sm:$0xff] }
 0x41c   :  { %v948_v33 = vor.u32 4788187, %v947_v23  ;;  %v951_v24 = vcvt.s32.f32 %v944_v21 }
 0x41d   :  { %v1041_v22 = vclz %v3121_v35  ;;  %v1067_v21 = vand.u32 3, %v1066_v16 }
 0x41e   :  { %v949_v3 = vand.u32 2147483647, %v948_v33 }
 0x41f   :  { %v3122_v39 = vadd.s32 4294967294, %v1041_v22  ;;  %vm1072_vm14 = vcmp.eq.s32.totalorder %v1067_v21, 2  ;;  %vm1069_vm0 = vcmp.eq.s32.totalorder %v1067_v21, 0  ;;  %vm1068_vm1 = vcmp.lt.s32.totalorder %v1067_v21, 2 }
 0x420   :  { %v952_v25 = vmul.f32 %v951_v24, %v949_v3 }
 0x421   :  { %vm3123_vm3 = vcmp.lt.s32.totalorder %v3122_v39, 0 }
 0x422   :  { %v953_v29 = vxor.u32 2147483648, %v952_v25  ;;  %v1044_v56 = vsel %vm3123_vm3, 0, %v3122_v39  ;;  %vm1096_vm3 = vcmask 72704  }
 0x423   :  { %v1045_v46 = vsub.s32 32, %v1044_v56  ;;  %v1049_v47 = vsub.s32 4294967266, %v1044_v56  ;;  %v1046_v48 = vshll.u32 %v1037_v17, %v1044_v56 }
 0x424   :  { %v954_v42 = vsel %vm871_vm2, %v953_v29, %v952_v25  ;;  %vm1065_vm2 = vweird.f32 %v4076_v63 }
 0x425   :  { %v957_v18 = vsel %vm4138_vm4, %v4064_v14, %v954_v42  ;;  %v1047_v49 = vshrl.u32 %v1029_v31, %v1045_v46  ;;  %v1050_v10 = vadd.s32 127, %v1049_v47  ;;  %vm1099_vm4 = vcmask 203776   ;;  %v3131_v47 = vld [vmem:[%s4706_s6 + $0x8] sm:$0xff] }
 0x426   :  { %3663 = vcosq.f32 %v957_v18 }
 0x427   :  { %3665 = vsinq.f32 %v957_v18  ;;  %v1048_v50 = vor.u32 %v1047_v49, %v1046_v48  ;;  %v1051_v12 = vshll.u32 %v1050_v10, 23  ;;  %v3130_v18 = vld [vmem:[%s4703_s5 + $0x8] sm:$0xff]  ;;  %v3144_v48 = vld [vmem:[%s4700_s1 + $0x10] sm:$0xff] }
 0x428   :  { %v3141_v49 = vld [vmem:[%s4704_s8 + $0x8] sm:$0xff]  ;;  %v3145_v10 = vld [vmem:[%s4701_s2 + $0x10] sm:$0xff] }
 0x429   :  { %v1052_v7 = vor.u32 4788187, %v1051_v12  ;;  %v1055_v41 = vcvt.s32.f32 %v1048_v50 }
 0x42b   :  { %v1053_v51 = vand.u32 2147483647, %v1052_v7 }
 0x42d   :  { %v1056_v52 = vmul.f32 %v1055_v41, %v1053_v51 }
 0x42f   :  { %v1057_v58 = vxor.u32 2147483648, %v1056_v52 }
 0x430   :  { %v3664_v57 = vpop.eup %3663 }
 0x431   :  { %v3666_v30 = vpop.eup %3665  ;;  %v969_v59 = vxor.u32 2147483648, %v3664_v57  ;;  %v1058_v61 = vsel %vm975_vm5, %v1057_v58, %v1056_v52  ;;  %vm3433_vm5 = vmpackc.low %vm3722_vm13, %vm1099_vm4 }
 0x432   :  { %v966_v5 = vxor.u32 2147483648, %v3666_v30  ;;  %v1061_v13 = vsel %vm4151_vm6, %v4076_v63, %v1058_v61  ;;  %v3125_v63 = vld [vmem:[%s4705_s4 + $0x8] sm:$0xff] }
 0x433   :  { %v970_v2 = vsel %vm968_vm7, %v969_v59, %v3666_v30  ;;  %3667 = vcosq.f32 %v1061_v13 }
 0x434   :  { %v967_v20 = vsel %vm965_vm8, %v3664_v57, %v966_v5  ;;  %3669 = vsinq.f32 %v1061_v13 }
 0x435   :  { %v971_v1 = vsel %vm964_vm9, %v967_v20, %v970_v2 }
 0x436   :  { %v972_v15 = vsel %vm961_vm11, nan, %v971_v1 }
 0x437   :  { %v1077_v43 = vmul.f32 %v972_v15, %v972_v15 }
 0x439   :  { %v1084_v55 = vmul.f32 %v1082_v0, %v1077_v43 }
 0x43b   :  { %v1086_v17 = vadd.f32 %v1084_v55, %v4061_v27 }
 0x43d   :  { %1090 = vrot.lane.b32.xlu1 %v1086_v17, %s3723_s0  ;;  %v3668_v23 = vpop.eup %3667 }
 0x43e   :  { %v3670_v6 = vpop.eup %3669  ;;  %v1073_v33 = vxor.u32 2147483648, %v3668_v23 }
 0x43f   :  { %v1070_v35 = vxor.u32 2147483648, %v3670_v6 }
 0x440   :  { %v1074_v3 = vsel %vm1072_vm14, %v1073_v33, %v3670_v6 }
 0x441   :  { %v1071_v14 = vsel %vm1069_vm0, %v3668_v23, %v1070_v35 }
 0x442   :  { %v1075_v24 = vsel %vm1068_vm1, %v1071_v14, %v1074_v3 }
 0x443   :  { %v1076_v22 = vsel %vm1065_vm2, nan, %v1075_v24 }
 0x444   :  { %v1078_v26 = vmul.f32 %v1076_v22, %v1076_v22 }
 0x446   :  { %v1085_v25 = vmul.f32 %v1082_v0, %v1078_v26 }
 0x448   :  { %v1087_v39 = vadd.f32 %v1085_v25, %v4073_v60 }
 0x44a   :  { %1092 = vrot.lane.b32.xlu0 %v1087_v39, %s3723_s0 }
 0x4af   :  { %v1091_v29 = vpop.permute.xlu1 %1090 }
 0x4b0   :  { %v1097_v56 = vsel %vm1096_vm3, 0.0, %v1091_v29 }
 0x4b1   :  { %v1100_v11 = vsel %vm1099_vm4, %v1097_v56, 0.0 }
 0x4bc   :  { %v1093_v40 = vpop.permute.xlu0 %1092 }
 0x4bd   :  { %v1098_v42 = vsel %vm1096_vm3, 0.0, %v1093_v40 }
 0x4be   :  { %v1101_v31 = vsel %vm1099_vm4, %v1098_v42, 0.0 }
 0x4bf   :  { %v3602_v46 = vpack.i.bf16 %v1101_v31, %v1100_v11 }
 0x4c1   :  { %3603 = vrot.lane.b32.xlu0 %v3602_v46, %s3720_s21  ;;  %3598 = vrot.lane.b32.xlu1 %v3602_v46, %s3717_s20  ;;  %s3732_s21 = smov 83  }
 0x4c5   :  { %3613 = vrot.lane.b32.xlu0 %v3602_v46, %s3724_s28  ;;  %3608 = vrot.lane.b32.xlu1 %v3602_v46, %s3725_s29  ;;  %s3728_s28 = smov 27  }
 0x4c9   :  { %1134 = vrot.lane.b32.xlu0 %v1100_v11, %s3726_s30  ;;  %3618 = vrot.lane.b32.xlu1 %v3602_v46, %s3727_s14  ;;  %s3729_s14 = smov 92  }
 0x4cd   :  { %1146 = vperm.xlu0 %3570, %v3125_v63   ;;  %1136 = vrot.lane.b32.xlu1 %v1101_v31, %s3726_s30 }
 0x4d1   :  { %1515 = vperm.xlu0 %3570, %v3131_v47   ;;  %1298 = vperm.xlu1 %3596, %v3130_v18  }
 0x4d5   :  { %1682 = vperm.xlu0 %3570, %v3144_v48   ;;  %1528 = vperm.xlu1 %3596, %v3141_v49  }
 0x4d9   :  { %1899 = vperm.xlu1 %3596, %v3145_v10  }
 0x533   :  { %v3604_v44 = vpop.permute.xlu0 %3603  ;;  %v3599_v50 = vpop.permute.xlu1 %3598 }
 0x534   :  { %v3601_v12 = vunpack.i.h.bf16 %v3599_v50  ;;  %v3600_v7 = vunpack.i.l.bf16 %v3599_v50  ;;  %v3606_v52 = vunpack.i.h.bf16 %v3604_v44  ;;  %v3605_v53 = vunpack.i.l.bf16 %v3604_v44 }
 0x536   :  { %v3442_v19 = vpack.c.bf16 %v3601_v12, %v1098_v42  ;;  %v3432_v51 = vpack.c.bf16 %v3600_v7, %v1097_v56 }
 0x537   :  { %v3609_v41 = vpop.permute.xlu1 %3608  ;;  %v3614_v58 = vpop.permute.xlu0 %3613 }
 0x538   :  { %v3611_v54 = vunpack.i.h.bf16 %v3609_v41  ;;  %v3610_v57 = vunpack.i.l.bf16 %v3609_v41  ;;  %3434 = vmatpush3.bf16.msk.msra.mxu0 %vm3433_vm5, %v3432_v51  ;;  %3444 = vmatpush3.bf16.msk.msra.mxu1 %vm3433_vm5, %v3442_v19  ;;  %v3616_v61 = vunpack.i.h.bf16 %v3614_v58  ;;  %v3615_v62 = vunpack.i.l.bf16 %v3614_v58 }
 0x539   :  { %3435 = vmatprep.subr.bf16.mxu0 %v3713_v37  ;;  %3445 = vmatprep.subr.bf16.mxu1 %v3713_v37 }
 0x53a   :  { %v3446_v30 = vpack.c.bf16 %v3611_v54, %v3606_v52  ;;  %v3436_v8 = vpack.c.bf16 %v3610_v57, %v3605_v53 }
 0x53b   :  { %v3619_v59 = vpop.permute.xlu1 %3618  ;;  %v1135_v1 = vpop.permute.xlu0 %1134 }
 0x53c   :  { %v3621_v5 = vunpack.i.h.bf16 %v3619_v59  ;;  %v3620_v13 = vunpack.i.l.bf16 %v3619_v59  ;;  %3437 = vmatpush3.bf16.msra.mxu0 %v3436_v8  ;;  %3447 = vmatpush3.bf16.msra.mxu1 %v3446_v30 }
 0x53d   :  { %3438 = vmatprep.subr.bf16.mxu0 %v3713_v37  ;;  %3448 = vmatprep.subr.bf16.mxu1 %v3713_v37 }
 0x53e   :  { %v3449_v2 = vpack.c.bf16 %v3621_v5, %v3616_v61  ;;  %v3439_v20 = vpack.c.bf16 %v3620_v13, %v3615_v62 }
 0x53f   :  { %v1137_v15 = vpop.permute.xlu1 %1136 }
 0x540   :  { %3440 = vmatpush3.bf16.msra.mxu0 %v3439_v20  ;;  %3450 = vmatpush3.bf16.msra.mxu1 %v3449_v2 }
 0x541   :  { %3313 = vmatprep.subr.mxu0 %v3719_v4  ;;  %3330 = vmatprep.subr.mxu1 %v3719_v4 }
 0x544   :  { %3314 = vmatpush3.msra.mxu0 %v1135_v1  ;;  %3331 = vmatpush3.msra.mxu1 %v1137_v15 }
 0x545   :  { %3316 = vmatmul.mubr.msk.f32.vlgmr.msra.gmra.mrb[4].mxu0 %vm333_vm15, %v3124_v9  ;;  %3333 = vmatmul.mubr.msk.f32.vlgmr.msra.gmra.mrb[4].mxu1 %vm333_vm15, %v3124_v9 }
 0x546   :  { %3335 = vmatprep.subr.mxu0 %v3719_v4  ;;  %3340 = vmatprep.subr.mxu1 %v3719_v4 }
 0x547   :  { %3337 = vmatprep.mubr.msk.f32.mxu0 %vm3718_vm12, %v3719_v4  ;;  %3342 = vmatprep.mubr.msk.f32.mxu1 %vm3718_vm12, %v3719_v4 }
 0x54c   :  { %v1147_v43 = vpop.permute.xlu0 %1146 }
 0x550   :  { %v1299_v6 = vpop.permute.xlu1 %1298 }
 0x618   :  { %v1218_v0 = vpop.f32.mrb[4].mxu0  ;;  %v1288_v16 = vpop.f32.mrb[4].mxu1 }
 0x619   :  { %v4208_v55 = vadd.f32 %v1218_v0, %v1147_v43  ;;  %v4210_v17 = vadd.f32 %v1288_v16, %v1147_v43  ;;  %v3317_v21 = vpop.f32.mrb[5].mxu0  ;;  %v3334_v23 = vpop.f32.mrb[5].mxu1 }
 0x61b   :  { %v4213_v33 = vmul.f32 %v1299_v6, %v4208_v55  ;;  %v4216_v35 = vmul.f32 %v1299_v6, %v4210_v17 }
 0x61d   :  { %v1303_v3 = vand.u32 2147483647, %v4213_v33  ;;  %v1306_v14 = vand.u32 2139095040, %v4213_v33  ;;  %v1410_v24 = vand.u32 2139095040, %v4216_v35  ;;  %v1407_v25 = vand.u32 2147483647, %v4216_v35 }
 0x61f   :  { %v1307_v22 = vshrl.u32 %v1306_v14, 23  ;;  %v1310_v26 = vand.u32 8388607, %v1303_v3  ;;  %v1411_v39 = vshrl.u32 %v1410_v24, 23  ;;  %v1414_v42 = vand.u32 8388607, %v1407_v25 }
 0x621   :  { %v3132_v29 = vadd.s32 4294967169, %v1307_v22  ;;  %v3136_v56 = vadd.s32 4294967169, %v1411_v39  ;;  %v1311_v11 = vor.u32 8388608, %v1310_v26  ;;  %v1415_v49 = vor.u32 8388608, %v1414_v42 }
 0x623   :  { %v1313_v40 = vadd.s32 1, %v3132_v29  ;;  %v1417_v31 = vadd.s32 1, %v3136_v56  ;;  %v4226_v48 = vshll.u32 %v1311_v11, 8 }
 0x625   :  { %vm1314_vm6 = vcmp.gt.s32.totalorder %v1313_v40, 0  ;;  %vm1418_vm7 = vcmp.gt.s32.totalorder %v1417_v31, 0 }
 0x626   :  { %v1315_v46 = vsel %vm1314_vm6, %v1313_v40, 0  ;;  %v1419_v18 = vsel %vm1418_vm7, %v1417_v31, 0 }
 0x627   :  { %v1316_v63 = vshrl.u32 %v1315_v46, 5  ;;  %v1317_v47 = vand.u32 31, %v1315_v46  ;;  %v4229_v50 = vshrl.u32 %v1419_v18, 5  ;;  %v1421_v12 = vand.u32 31, %v1419_v18 }
 0x629   :  { %v1318_v10 = vsub.s32 32, %v1317_v47  ;;  %v1320_v44 = vshll.u32 %v3706_v28, %v1317_v47  ;;  %v1323_v7 = vshll.u32 %v3707_v32, %v1317_v47  ;;  %v1326_v19 = vshll.u32 %v3708_v34, %v1317_v47 }
 0x62a   :  { %v1329_v51 = vshll.u32 %v3709_v36, %v1317_v47  ;;  %v1332_v41 = vshll.u32 %v3710_v38, %v1317_v47  ;;  %vm1335_vm8 = vcmp.lt.s32.totalorder %v1316_v63, 1  ;;  %vm1336_vm9 = vcmp.lt.s32.totalorder %v1316_v63, 2 }
 0x62b   :  { %v1321_v52 = vshrl.u32 %v3707_v32, %v1318_v10  ;;  %v1324_v53 = vshrl.u32 %v3708_v34, %v1318_v10  ;;  %v1327_v54 = vshrl.u32 %v3709_v36, %v1318_v10  ;;  %v1319_v57 = vshrl.u32 %v3706_v28, %v1318_v10 }
 0x62c   :  { %v1330_v58 = vshrl.u32 %v3710_v38, %v1318_v10  ;;  %v1333_v30 = vshrl.u32 %v3711_v45, %v1318_v10  ;;  %v1422_v62 = vsub.s32 32, %v1421_v12  ;;  %vm1337_vm11 = vcmp.lt.s32.totalorder %v1316_v63, 3 }
 0x62d   :  { %v1322_v8 = vor.u32 %v1321_v52, %v1320_v44  ;;  %v1325_v59 = vor.u32 %v1324_v53, %v1323_v7  ;;  %v1328_v61 = vor.u32 %v1327_v54, %v1326_v19  ;;  %vm1338_vm14 = vcmp.lt.s32.totalorder %v1316_v63, 4 }
 0x62e   :  { %v1331_v5 = vor.u32 %v1330_v58, %v1329_v51  ;;  %v1334_v13 = vor.u32 %v1333_v30, %v1332_v41  ;;  %v1424_v16 = vshll.u32 %v3706_v28, %v1421_v12  ;;  %v1425_v6 = vshrl.u32 %v3707_v32, %v1422_v62 }
 0x62f   :  { %v1339_v2 = vsel %vm1335_vm8, %v1319_v57, %v1322_v8  ;;  %v1340_v20 = vsel %vm1338_vm14, %v1328_v61, 2102212464  ;;  %v1343_v9 = vsel %vm1335_vm8, %v1322_v8, %v1325_v59  ;;  %v1347_v1 = vsel %vm1335_vm8, %v1325_v59, %v1328_v61 }
 0x630   :  { %v1341_v15 = vsel %vm1337_vm11, %v1325_v59, %v1340_v20  ;;  %v1344_v43 = vsel %vm1338_vm14, %v1331_v5, 920167782  ;;  %v1348_v0 = vsel %vm1338_vm14, %v1334_v13, 1326507024  ;;  %v1427_v14 = vshll.u32 %v3707_v32, %v1421_v12 }
 0x631   :  { %v1345_v21 = vsel %vm1337_vm11, %v1328_v61, %v1344_v43  ;;  %v1349_v23 = vsel %vm1337_vm11, %v1331_v5, %v1348_v0  ;;  %v1342_v24 = vsel %vm1336_vm9, %v1339_v2, %v1341_v15  ;;  %v1428_v39 = vshrl.u32 %v3708_v34, %v1422_v62 }
 0x632   :  { %v1346_v22 = vsel %vm1336_vm9, %v1343_v9, %v1345_v21  ;;  %v1350_v26 = vsel %vm1336_vm9, %v1347_v1, %v1349_v23  ;;  %v1426_v42 = vor.u32 %v1425_v6, %v1424_v16  ;;  %v1430_v46 = vshll.u32 %v3708_v34, %v1421_v12 }
 0x633   :  { %v4252_v29 = vmul.u32.u64.low %v4226_v48, %v1350_v26  ;;  %v4253_v56 = vmul.u32.u64.high %v4226_v48, %v1350_v26, %v4252_v29  ;;  %v4256_v40 = vmul.u32.u64.low %v4226_v48, %v1346_v22  ;;  %v4257_v11 = vmul.u32.u64.high %v4226_v48, %v1346_v22, %v4256_v40 }
 0x634   :  { %v1429_v31 = vor.u32 %v1428_v39, %v1427_v14  ;;  %v1431_v47 = vshrl.u32 %v3709_v36, %v1422_v62  ;;  %v1433_v18 = vshll.u32 %v3709_v36, %v1421_v12  ;;  %v1434_v63 = vshrl.u32 %v3710_v38, %v1422_v62 }
 0x635   :  { %v1437_v10 = vshrl.u32 %v3711_v45, %v1422_v62  ;;  %v1455_v44 = vshll.u32 %v1415_v49, 8  ;;  %v1358_v7 = vmul.u32 %v4226_v48, %v1342_v24  ;;  %v1423_v19 = vshrl.u32 %v3706_v28, %v1422_v62 }
 0x636   :  { %v1432_v51 = vor.u32 %v1431_v47, %v1430_v46  ;;  %v1436_v41 = vshll.u32 %v3710_v38, %v1421_v12  ;;  %vm1360_vm0 = vc.u32 %v4253_v56, %v4256_v40  ;;  %v1361_v52 = vadd.s32 1, %v4257_v11 }
 0x637   :  { %v1435_v53 = vor.u32 %v1434_v63, %v1433_v18  ;;  %vm1439_vm1 = vcmp.lt.s32.totalorder %v4229_v50, 1  ;;  %vm1441_vm2 = vcmp.lt.s32.totalorder %v4229_v50, 3  ;;  %vm1442_vm3 = vcmp.lt.s32.totalorder %v4229_v50, 4 }
 0x638   :  { %v1438_v54 = vor.u32 %v1437_v10, %v1436_v41  ;;  %v1447_v49 = vsel %vm1439_vm1, %v1426_v42, %v1429_v31  ;;  %v1362_v48 = vsel %vm1360_vm0, %v1361_v52, %v4257_v11  ;;  %v1444_v57 = vsel %vm1442_vm3, %v1432_v51, 2102212464 }
 0x639   :  { %v1448_v58 = vsel %vm1442_vm3, %v1435_v53, 920167782  ;;  %v1451_v30 = vsel %vm1439_vm1, %v1429_v31, %v1432_v51  ;;  %v1363_v8 = vadd.s32 %v1362_v48, %v1358_v7  ;;  %vm1440_vm4 = vcmp.lt.s32.totalorder %v4229_v50, 2 }
 0x63a   :  { %v1449_v12 = vsel %vm1441_vm2, %v1432_v51, %v1448_v58  ;;  %v1452_v59 = vsel %vm1442_vm3, %v1438_v54, 1326507024  ;;  %v1443_v61 = vsel %vm1439_vm1, %v1423_v19, %v1426_v42  ;;  %v1445_v62 = vsel %vm1441_vm2, %v1429_v31, %v1444_v57 }
 0x63b   :  { %v1450_v5 = vsel %vm1440_vm4, %v1447_v49, %v1449_v12  ;;  %v1453_v13 = vsel %vm1441_vm2, %v1435_v53, %v1452_v59  ;;  %v1364_v2 = vadd.s32 536870912, %v1363_v8  ;;  %v1446_v16 = vsel %vm1440_vm4, %v1443_v61, %v1445_v62 }
 0x63c   :  { %v1454_v20 = vsel %vm1440_vm4, %v1451_v30, %v1453_v13  ;;  %v4274_v9 = vmul.u32.u64.low %v1455_v44, %v1450_v5  ;;  %v4275_v1 = vmul.u32.u64.high %v1455_v44, %v1450_v5, %v4274_v9  ;;  %v1462_v50 = vmul.u32 %v1455_v44, %v1446_v16 }
 0x63d   :  { %v4277_v15 = vmul.u32.u64.low %v1455_v44, %v1454_v20  ;;  %v4278_v43 = vmul.u32.u64.high %v1455_v44, %v1454_v20, %v4277_v15  ;;  %v1365_v0 = vshrl.u32 %v1364_v2, 30  ;;  %v1359_v63 = vadd.s32 %v4256_v40, %v4253_v56 }
 0x63e   :  { %v1465_v23 = vadd.s32 1, %v4275_v1  ;;  %vm1305_vm8 = vcmp.lt.s32.totalorder %v4213_v33, 0  ;;  %vm1304_vm9 = vcmp.le.f32.partialorder %v1303_v3, 0.7853982  ;;  %vm1409_vm11 = vcmp.lt.s32.totalorder %v4216_v35, 0 }
 0x63f   :  { %v1366_v21 = vshll.u32 %v1365_v0, 30  ;;  %vm1464_vm5 = vc.u32 %v4278_v43, %v4274_v9  ;;  %v1389_v40 = vsub.s32 4, %v1365_v0  ;;  %vm1408_vm14 = vcmp.le.f32.partialorder %v1407_v25, 0.7853982 }
 0x640   :  { %v1466_v14 = vsel %vm1464_vm5, %v1465_v23, %v4275_v1  ;;  %vm1395_vm3 = vweird.f32 %v4213_v33 }
 0x641   :  { %v1367_v6 = vsub.s32 %v1363_v8, %v1366_v21  ;;  %v1467_v24 = vadd.s32 %v1466_v14, %v1462_v50  ;;  %v1463_v8 = vadd.s32 %v4274_v9, %v4278_v43  ;;  %v1390_v15 = vsel %vm1305_vm8, %v1389_v40, %v1365_v0 }
 0x642   :  { %v1392_v43 = vsel %vm1304_vm9, 0, %v1390_v15 }
 0x643   :  { %v1369_v22 = vsub.s32 0, %v1367_v6  ;;  %v1468_v26 = vadd.s32 536870912, %v1467_v24  ;;  %v1396_v14 = vadd.s32 3, %v1392_v43 }
 0x645   :  { %v3133_v39 = vmin.u32 %v1369_v22, %v1367_v6  ;;  %v1469_v29 = vshrl.u32 %v1468_v26, 30  ;;  %v1397_v0 = vand.u32 3, %v1396_v14 }
 0x647   :  { %v1371_v11 = vclz %v3133_v39  ;;  %v1470_v42 = vshll.u32 %v1469_v29, 30  ;;  %vm1402_vm0 = vcmp.eq.s32.totalorder %v1397_v0, 2  ;;  %vm1399_vm1 = vcmp.eq.s32.totalorder %v1397_v0, 0 }
 0x648   :  { %vm1398_vm2 = vcmp.lt.s32.totalorder %v1397_v0, 2 }
 0x649   :  { %v3134_v31 = vadd.s32 4294967294, %v1371_v11  ;;  %v1471_v46 = vsub.s32 %v1467_v24, %v1470_v42 }
 0x64b   :  { %vm3135_vm6 = vcmp.lt.s32.totalorder %v3134_v31, 0  ;;  %v1473_v18 = vsub.s32 0, %v1471_v46 }
 0x64c   :  { %v1374_v47 = vsel %vm3135_vm6, 0, %v3134_v31 }
 0x64d   :  { %v1375_v10 = vsub.s32 32, %v1374_v47  ;;  %v1379_v44 = vsub.s32 4294967266, %v1374_v47  ;;  %v3137_v7 = vmin.u32 %v1473_v18, %v1471_v46  ;;  %v1376_v19 = vshll.u32 %v1367_v6, %v1374_v47 }
 0x64e   :  { %v1493_v6 = vsub.s32 4, %v1469_v29 }
 0x64f   :  { %v1377_v51 = vshrl.u32 %v1359_v63, %v1375_v10  ;;  %v1380_v41 = vadd.s32 127, %v1379_v44  ;;  %v1475_v52 = vclz %v3137_v7  ;;  %v1516_v7 = vpop.permute.xlu0 %1515 }
 0x650   :  { %v1494_v22 = vsel %vm1409_vm11, %v1493_v6, %v1469_v29 }
 0x651   :  { %v1378_v53 = vor.u32 %v1377_v51, %v1376_v19  ;;  %v1381_v54 = vshll.u32 %v1380_v41, 23  ;;  %v3138_v49 = vadd.s32 4294967294, %v1475_v52  ;;  %v1496_v11 = vsel %vm1408_vm14, 0, %v1494_v22 }
 0x652   :  { %v1500_v18 = vadd.s32 3, %v1496_v11 }
 0x653   :  { %v1382_v48 = vor.u32 4788187, %v1381_v54  ;;  %vm3139_vm7 = vcmp.lt.s32.totalorder %v3138_v49, 0  ;;  %v1385_v58 = vcvt.s32.f32 %v1378_v53 }
 0x654   :  { %v1478_v30 = vsel %vm3139_vm7, 0, %v3138_v49  ;;  %v1501_v44 = vand.u32 3, %v1500_v18  ;;  %v3140_v49 = vld [vmem:[%s4708_s7 + $0x8] sm:$0xff]  ;;  %vm1499_vm7 = vweird.f32 %v4216_v35 }
 0x655   :  { %v1383_v57 = vand.u32 2147483647, %v1382_v48  ;;  %v1479_v12 = vsub.s32 32, %v1478_v30  ;;  %v1483_v59 = vsub.s32 4294967266, %v1478_v30  ;;  %v1480_v61 = vshll.u32 %v1471_v46, %v1478_v30 }
 0x656   :  { %vm1506_vm4 = vcmp.eq.s32.totalorder %v1501_v44, 2  ;;  %vm1503_vm5 = vcmp.eq.s32.totalorder %v1501_v44, 0  ;;  %vm1502_vm6 = vcmp.lt.s32.totalorder %v1501_v44, 2 }
 0x657   :  { %v1386_v56 = vmul.f32 %v1385_v58, %v1383_v57  ;;  %v1481_v62 = vshrl.u32 %v1463_v8, %v1479_v12  ;;  %v1484_v5 = vadd.s32 127, %v1483_v59 }
 0x659   :  { %v1387_v13 = vxor.u32 2147483648, %v1386_v56  ;;  %v1482_v2 = vor.u32 %v1481_v62, %v1480_v61  ;;  %v1485_v20 = vshll.u32 %v1484_v5, 23  ;;  %v1683_v61 = vpop.permute.xlu0 %1682 }
 0x65b   :  { %v1388_v1 = vsel %vm1305_vm8, %v1387_v13, %v1386_v56  ;;  %v1486_v9 = vor.u32 4788187, %v1485_v20  ;;  %v1489_v23 = vcvt.s32.f32 %v1482_v2 }
 0x65c   :  { %v1391_v16 = vsel %vm1304_vm9, %v4213_v33, %v1388_v1 }
 0x65d   :  { %3671 = vcosq.f32 %v1391_v16  ;;  %v1487_v21 = vand.u32 2147483647, %v1486_v9 }
 0x65e   :  { %3673 = vsinq.f32 %v1391_v16 }
 0x65f   :  { %v1490_v50 = vmul.f32 %v1489_v23, %v1487_v21 }
 0x661   :  { %v1491_v24 = vxor.u32 2147483648, %v1490_v50 }
 0x663   :  { %v1492_v3 = vsel %vm1409_vm11, %v1491_v24, %v1490_v50 }
 0x664   :  { %v1495_v26 = vsel %vm1408_vm14, %v4216_v35, %v1492_v3  ;;  %v1529_v35 = vpop.permute.xlu1 %1528 }
 0x665   :  { %3675 = vcosq.f32 %v1495_v26 }
 0x666   :  { %3677 = vsinq.f32 %v1495_v26 }
 0x667   :  { %v3672_v39 = vpop.eup %3671 }
 0x668   :  { %v3674_v42 = vpop.eup %3673  ;;  %v1403_v31 = vxor.u32 2147483648, %v3672_v39 }
 0x669   :  { %v1400_v46 = vxor.u32 2147483648, %v3674_v42 }
 0x66a   :  { %v1404_v47 = vsel %vm1402_vm0, %v1403_v31, %v3674_v42 }
 0x66b   :  { %v1401_v63 = vsel %vm1399_vm1, %v3672_v39, %v1400_v46 }
 0x66c   :  { %v1405_v25 = vsel %vm1398_vm2, %v1401_v63, %v1404_v47 }
 0x66d   :  { %v1406_v29 = vsel %vm1395_vm3, nan, %v1405_v25 }
 0x66e   :  { %v1511_v10 = vmul.f32 %v1406_v29, %v1406_v29 }
 0x66f   :  { %v3676_v19 = vpop.eup %3675 }
 0x670   :  { %v1518_v51 = vmul.f32 %v1516_v7, %v1511_v10  ;;  %v3678_v41 = vpop.eup %3677  ;;  %v1507_v52 = vxor.u32 2147483648, %v3676_v19 }
 0x671   :  { %v1504_v54 = vxor.u32 2147483648, %v3678_v41 }
 0x672   :  { %v1520_v53 = vadd.f32 %v1518_v51, %v4208_v55  ;;  %v1508_v48 = vsel %vm1506_vm4, %v1507_v52, %v3678_v41 }
 0x673   :  { %v1505_v33 = vsel %vm1503_vm5, %v3676_v19, %v1504_v54 }
 0x674   :  { %3336 = vmatpush3.msra.mxu0 %v1520_v53  ;;  %v1509_v57 = vsel %vm1502_vm6, %v1505_v33, %v1508_v48 }
 0x675   :  { %3338 = vmatmul.mubr.msk.f32.vlgmr.msra.gmra.mrb[6].mxu0 %vm712_vm10, %v3140_v49  ;;  %3451 = vmatprep.subr.bf16.mxu0 %v3713_v37  ;;  %v1510_v58 = vsel %vm1499_vm7, nan, %v1509_v57 }
 0x676   :  { %3359 = vmatprep.mubr.msk.f32.mxu0 %vm3718_vm12, %v3719_v4  ;;  %v1512_v55 = vmul.f32 %v1510_v58, %v1510_v58 }
 0x678   :  { %v1519_v30 = vmul.f32 %v1516_v7, %v1512_v55 }
 0x67a   :  { %v1521_v8 = vadd.f32 %v1519_v30, %v4210_v17 }
 0x67c   :  { %3341 = vmatpush3.msra.mxu1 %v1521_v8 }
 0x67d   :  { %3343 = vmatmul.mubr.msk.f32.vlgmr.msra.gmra.mrb[6].mxu1 %vm712_vm10, %v3140_v49  ;;  %3461 = vmatprep.subr.bf16.mxu1 %v3713_v37 }
 0x67e   :  { %3376 = vmatprep.mubr.msk.f32.mxu1 %vm3718_vm12, %v3719_v4 }
 0x748   :  { %v1600_v12 = vpop.f32.mrb[6].mxu0 }
 0x749   :  { %v1601_v59 = vadd.f32 %v1600_v12, %v1529_v35  ;;  %v3339_v56 = vpop.f32.mrb[7].mxu0 }
 0x74b   :  { %v4309_v40 = vadd.f32 %v1601_v59, %v4061_v27 }
 0x74d   :  { %v4312_v62 = vmul.f32 %v1683_v61, %v4309_v40 }
 0x74f   :  { %v1687_v17 = vand.u32 2147483647, %v4312_v62  ;;  %v1690_v5 = vand.u32 2139095040, %v4312_v62 }
 0x750   :  { %v1670_v2 = vpop.f32.mrb[6].mxu1 }
 0x751   :  { %v1691_v13 = vshrl.u32 %v1690_v5, 23  ;;  %v1671_v20 = vadd.f32 %v1670_v2, %v1529_v35  ;;  %v3344_v1 = vpop.f32.mrb[7].mxu1  ;;  %v1694_v16 = vand.u32 8388607, %v1687_v17 }
 0x753   :  { %v3146_v15 = vadd.s32 4294967169, %v1691_v13  ;;  %v4319_v9 = vadd.f32 %v1671_v20, %v4073_v60  ;;  %v1695_v21 = vor.u32 8388608, %v1694_v16 }
 0x755   :  { %v1697_v27 = vadd.s32 1, %v3146_v15  ;;  %v4322_v43 = vmul.f32 %v1683_v61, %v4319_v9  ;;  %v1735_v22 = vshll.u32 %v1695_v21, 8 }
 0x757   :  { %vm1698_vm8 = vcmp.gt.s32.totalorder %v1697_v27, 0  ;;  %v1791_v50 = vand.u32 2147483647, %v4322_v43  ;;  %v1794_v6 = vand.u32 2139095040, %v4322_v43 }
 0x758   :  { %v1699_v23 = vsel %vm1698_vm8, %v1697_v27, 0 }
 0x759   :  { %v1701_v14 = vand.u32 31, %v1699_v23  ;;  %v1700_v24 = vshrl.u32 %v1699_v23, 5  ;;  %v1795_v0 = vshrl.u32 %v1794_v6, 23  ;;  %v1798_v11 = vand.u32 8388607, %v1791_v50 }
 0x75b   :  { %v1702_v3 = vsub.s32 32, %v1701_v14  ;;  %v1704_v26 = vshll.u32 %v3706_v28, %v1701_v14  ;;  %v1707_v60 = vshll.u32 %v3707_v32, %v1701_v14  ;;  %v1710_v39 = vshll.u32 %v3708_v34, %v1701_v14 }
 0x75c   :  { %v1713_v47 = vshll.u32 %v3709_v36, %v1701_v14  ;;  %v1716_v63 = vshll.u32 %v3710_v38, %v1701_v14  ;;  %vm1719_vm9 = vcmp.lt.s32.totalorder %v1700_v24, 1  ;;  %v3150_v7 = vadd.s32 4294967169, %v1795_v0 }
 0x75d   :  { %v1705_v42 = vshrl.u32 %v3707_v32, %v1702_v3  ;;  %v1708_v31 = vshrl.u32 %v3708_v34, %v1702_v3  ;;  %v1711_v46 = vshrl.u32 %v3709_v36, %v1702_v3  ;;  %v1714_v18 = vshrl.u32 %v3710_v38, %v1702_v3 }
 0x75e   :  { %v1717_v25 = vshrl.u32 %v3711_v45, %v1702_v3  ;;  %vm1720_vm11 = vcmp.lt.s32.totalorder %v1700_v24, 2  ;;  %vm1722_vm14 = vcmp.lt.s32.totalorder %v1700_v24, 4  ;;  %v1703_v41 = vshrl.u32 %v3706_v28, %v1702_v3 }
 0x75f   :  { %v1706_v29 = vor.u32 %v1705_v42, %v1704_v26  ;;  %v1709_v10 = vor.u32 %v1708_v31, %v1707_v60  ;;  %v1712_v44 = vor.u32 %v1711_v46, %v1710_v39  ;;  %v1715_v19 = vor.u32 %v1714_v18, %v1713_v47 }
 0x760   :  { %v1718_v51 = vor.u32 %v1717_v25, %v1716_v63  ;;  %vm1721_vm0 = vcmp.lt.s32.totalorder %v1700_v24, 3  ;;  %v1801_v33 = vadd.s32 1, %v3150_v7  ;;  %v1799_v12 = vor.u32 8388608, %v1798_v11 }
 0x761   :  { %v1724_v52 = vsel %vm1722_vm14, %v1712_v44, 2102212464  ;;  %v1727_v53 = vsel %vm1719_vm9, %v1706_v29, %v1709_v10  ;;  %v1731_v54 = vsel %vm1719_vm9, %v1709_v10, %v1712_v44  ;;  %v1728_v49 = vsel %vm1722_vm14, %v1715_v19, 920167782 }
 0x762   :  { %v1732_v48 = vsel %vm1722_vm14, %v1718_v51, 1326507024  ;;  %v1723_v57 = vsel %vm1719_vm9, %v1703_v41, %v1706_v29  ;;  %v1725_v58 = vsel %vm1721_vm0, %v1709_v10, %v1724_v52  ;;  %v1729_v55 = vsel %vm1721_vm0, %v1712_v44, %v1728_v49 }
 0x763   :  { %v1733_v30 = vsel %vm1721_vm0, %v1715_v19, %v1732_v48  ;;  %v1730_v8 = vsel %vm1720_vm11, %v1727_v53, %v1729_v55  ;;  %vm1802_vm1 = vcmp.gt.s32.totalorder %v1801_v33, 0  ;;  %v1726_v13 = vsel %vm1720_vm11, %v1723_v57, %v1725_v58 }
 0x764   :  { %v1734_v35 = vsel %vm1720_vm11, %v1731_v54, %v1733_v30  ;;  %v4347_v61 = vmul.u32.u64.low %v1735_v22, %v1730_v8  ;;  %v4348_v5 = vmul.u32.u64.high %v1735_v22, %v1730_v8, %v4347_v61  ;;  %v1803_v2 = vsel %vm1802_vm1, %v1801_v33, 0 }
 0x765   :  { %v4344_v59 = vmul.u32.u64.low %v1735_v22, %v1734_v35  ;;  %v4345_v56 = vmul.u32.u64.high %v1735_v22, %v1734_v35, %v4344_v59  ;;  %v1805_v20 = vand.u32 31, %v1803_v2  ;;  %v1839_v1 = vshll.u32 %v1799_v12, 8 }
 0x766   :  { %v1742_v15 = vmul.u32 %v1735_v22, %v1726_v13  ;;  %v1745_v16 = vadd.s32 1, %v4348_v5  ;;  %v1804_v21 = vshrl.u32 %v1803_v2, 5  ;;  %vm1689_vm9 = vcmp.lt.s32.totalorder %v4312_v62, 0 }
 0x767   :  { %vm1744_vm2 = vc.u32 %v4345_v56, %v4347_v61  ;;  %v1806_v27 = vsub.s32 32, %v1805_v20  ;;  %v1808_v23 = vshll.u32 %v3706_v28, %v1805_v20  ;;  %v1811_v6 = vshll.u32 %v3707_v32, %v1805_v20 }
 0x768   :  { %v1814_v14 = vshll.u32 %v3708_v34, %v1805_v20  ;;  %v1746_v24 = vsel %vm1744_vm2, %v1745_v16, %v4348_v5  ;;  %v1817_v22 = vshll.u32 %v3709_v36, %v1805_v20  ;;  %v1820_v46 = vshll.u32 %v3710_v38, %v1805_v20 }
 0x769   :  { %v1809_v3 = vshrl.u32 %v3707_v32, %v1806_v27  ;;  %v1812_v0 = vshrl.u32 %v3708_v34, %v1806_v27  ;;  %v1747_v26 = vadd.s32 %v1746_v24, %v1742_v15  ;;  %v1807_v60 = vshrl.u32 %v3706_v28, %v1806_v27 }
 0x76a   :  { %v1815_v39 = vshrl.u32 %v3709_v36, %v1806_v27  ;;  %v1818_v11 = vshrl.u32 %v3710_v38, %v1806_v27  ;;  %v1821_v47 = vshrl.u32 %v3711_v45, %v1806_v27  ;;  %vm1823_vm3 = vcmp.lt.s32.totalorder %v1804_v21, 1 }
 0x76b   :  { %v1810_v42 = vor.u32 %v1809_v3, %v1808_v23  ;;  %v1813_v31 = vor.u32 %v1812_v0, %v1811_v6  ;;  %v1748_v18 = vadd.s32 536870912, %v1747_v26  ;;  %vm1824_vm4 = vcmp.lt.s32.totalorder %v1804_v21, 2 }
 0x76c   :  { %v1816_v63 = vor.u32 %v1815_v39, %v1814_v14  ;;  %v1819_v25 = vor.u32 %v1818_v11, %v1817_v22  ;;  %v1822_v29 = vor.u32 %v1821_v47, %v1820_v46  ;;  %vm1825_vm5 = vcmp.lt.s32.totalorder %v1804_v21, 3 }
 0x76d   :  { %vm1826_vm6 = vcmp.lt.s32.totalorder %v1804_v21, 4  ;;  %v1749_v10 = vshrl.u32 %v1748_v18, 30  ;;  %v1831_v7 = vsel %vm1823_vm3, %v1810_v42, %v1813_v31  ;;  %v1827_v51 = vsel %vm1823_vm3, %v1807_v60, %v1810_v42 }
 0x76e   :  { %v1828_v44 = vsel %vm1826_vm6, %v1816_v63, 2102212464  ;;  %v1832_v19 = vsel %vm1826_vm6, %v1819_v25, 920167782  ;;  %v1835_v52 = vsel %vm1823_vm3, %v1813_v31, %v1816_v63  ;;  %v1836_v53 = vsel %vm1826_vm6, %v1822_v29, 1326507024 }
 0x76f   :  { %v1833_v41 = vsel %vm1825_vm5, %v1816_v63, %v1832_v19  ;;  %v1750_v54 = vshll.u32 %v1749_v10, 30  ;;  %v1829_v49 = vsel %vm1825_vm5, %v1813_v31, %v1828_v44  ;;  %v1837_v33 = vsel %vm1825_vm5, %v1819_v25, %v1836_v53 }
 0x770   :  { %v1834_v48 = vsel %vm1824_vm4, %v1831_v7, %v1833_v41  ;;  %v1838_v57 = vsel %vm1824_vm4, %v1835_v52, %v1837_v33  ;;  %v1830_v12 = vsel %vm1824_vm4, %v1827_v51, %v1829_v49  ;;  %v1743_v21 = vadd.s32 %v4347_v61, %v4345_v56 }
 0x771   :  { %v4369_v58 = vmul.u32.u64.low %v1839_v1, %v1834_v48  ;;  %v4370_v55 = vmul.u32.u64.high %v1839_v1, %v1834_v48, %v4369_v58  ;;  %v1751_v30 = vsub.s32 %v1747_v26, %v1750_v54  ;;  %v1846_v2 = vmul.u32 %v1839_v1, %v1830_v12 }
 0x772   :  { %v4372_v8 = vmul.u32.u64.low %v1839_v1, %v1838_v57  ;;  %v4373_v35 = vmul.u32.u64.high %v1839_v1, %v1838_v57, %v4372_v8  ;;  %v1773_v25 = vsub.s32 4, %v1749_v10  ;;  %vm4384_vm14 = vcmp.le.f32.partialorder %v1687_v17, 0.7853982 }
 0x773   :  { %v1753_v59 = vsub.s32 0, %v1751_v30  ;;  %v1849_v5 = vadd.s32 1, %v4370_v55  ;;  %vm1793_vm0 = vcmp.lt.s32.totalorder %v4322_v43, 0  ;;  %vm4397_vm1 = vcmp.le.f32.partialorder %v1791_v50, 0.7853982 }
 0x774   :  { %vm1848_vm7 = vc.u32 %v4373_v35, %v4369_v58  ;;  %v1774_v19 = vsel %vm1689_vm9, %v1773_v25, %v1749_v10  ;;  %v1847_v41 = vadd.s32 %v4369_v58, %v4373_v35  ;;  %vm1779_vm5 = vweird.f32 %v4312_v62 }
 0x775   :  { %v3147_v13 = vmin.u32 %v1753_v59, %v1751_v30  ;;  %v1850_v20 = vsel %vm1848_vm7, %v1849_v5, %v4370_v55  ;;  %v1776_v17 = vsel %vm4384_vm14, 0, %v1774_v19 }
 0x776   :  { %v1851_v16 = vadd.s32 %v1850_v20, %v1846_v2 }
 0x777   :  { %v1755_v15 = vclz %v3147_v13 }
 0x778   :  { %v1852_v23 = vadd.s32 536870912, %v1851_v16 }
 0x779   :  { %v3148_v27 = vadd.s32 4294967294, %v1755_v15 }
 0x77a   :  { %v1853_v6 = vshrl.u32 %v1852_v23, 30 }
 0x77b   :  { %vm3149_vm8 = vcmp.lt.s32.totalorder %v3148_v27, 0 }
 0x77c   :  { %v1758_v14 = vsel %vm3149_vm8, 0, %v3148_v27  ;;  %v1854_v0 = vshll.u32 %v1853_v6, 30  ;;  %v1877_v12 = vsub.s32 4, %v1853_v6 }
 0x77d   :  { %v1759_v24 = vsub.s32 32, %v1758_v14  ;;  %v1763_v3 = vsub.s32 4294967266, %v1758_v14  ;;  %v1760_v22 = vshll.u32 %v1751_v30, %v1758_v14  ;;  %v1780_v30 = vadd.s32 3, %v1776_v17 }
 0x77e   :  { %v1855_v60 = vsub.s32 %v1851_v16, %v1854_v0  ;;  %v1878_v27 = vsel %vm1793_vm0, %v1877_v12, %v1853_v6 }
 0x77f   :  { %v1761_v26 = vshrl.u32 %v1743_v21, %v1759_v24  ;;  %v1764_v1 = vadd.s32 127, %v1763_v3  ;;  %v1781_v59 = vand.u32 3, %v1780_v30  ;;  %v1880_v50 = vsel %vm4397_vm1, 0, %v1878_v27 }
 0x780   :  { %v1857_v42 = vsub.s32 0, %v1855_v60 }
 0x781   :  { %v1762_v39 = vor.u32 %v1761_v26, %v1760_v22  ;;  %v1765_v11 = vshll.u32 %v1764_v1, 23  ;;  %vm1786_vm2 = vcmp.eq.s32.totalorder %v1781_v59, 2  ;;  %vm1783_vm3 = vcmp.eq.s32.totalorder %v1781_v59, 0  ;;  %v1900_v22 = vpop.permute.xlu1 %1899 }
 0x782   :  { %v3151_v46 = vmin.u32 %v1857_v42, %v1855_v60  ;;  %vm1782_vm4 = vcmp.lt.s32.totalorder %v1781_v59, 2  ;;  %v1884_v26 = vadd.s32 3, %v1880_v50  ;;  %v3154_v50 = vld [vmem:[%s4707_s3 + $0x10] sm:$0xff] }
 0x783   :  { %v1766_v31 = vor.u32 4788187, %v1765_v11  ;;  %v1769_v18 = vcvt.s32.f32 %v1762_v39 }
 0x784   :  { %v1859_v63 = vclz %v3151_v46  ;;  %v1885_v39 = vand.u32 3, %v1884_v26 }
 0x785   :  { %v1767_v47 = vand.u32 2147483647, %v1766_v31 }
 0x786   :  { %v3152_v44 = vadd.s32 4294967294, %v1859_v63  ;;  %vm1890_vm6 = vcmp.eq.s32.totalorder %v1885_v39, 2  ;;  %vm1887_vm7 = vcmp.eq.s32.totalorder %v1885_v39, 0  ;;  %vm1886_vm8 = vcmp.lt.s32.totalorder %v1885_v39, 2 }
 0x787   :  { %v1770_v29 = vmul.f32 %v1769_v18, %v1767_v47 }
 0x788   :  { %vm3153_vm11 = vcmp.lt.s32.totalorder %v3152_v44, 0 }
 0x789   :  { %v1771_v56 = vxor.u32 2147483648, %v1770_v29  ;;  %v1862_v61 = vsel %vm3153_vm11, 0, %v3152_v44  ;;  %vm1914_vm11 = vcmask 220160  }
 0x78a   :  { %v1863_v52 = vsub.s32 32, %v1862_v61  ;;  %v1867_v53 = vsub.s32 4294967266, %v1862_v61  ;;  %v1864_v49 = vshll.u32 %v1855_v60, %v1862_v61 }
 0x78b   :  { %v1772_v51 = vsel %vm1689_vm9, %v1771_v56, %v1770_v29  ;;  %vm1883_vm9 = vweird.f32 %v4322_v43 }
 0x78c   :  { %v1775_v54 = vsel %vm4384_vm14, %v4312_v62, %v1772_v51  ;;  %v1865_v48 = vshrl.u32 %v1847_v41, %v1863_v52  ;;  %v1868_v33 = vadd.s32 127, %v1867_v53  ;;  %vm1917_vm14 = vcmask 351232   ;;  %v3161_v53 = vld [vmem:[%s4706_s6 + $0x10] sm:$0xff] }
 0x78d   :  { %3679 = vcosq.f32 %v1775_v54 }
 0x78e   :  { %3681 = vsinq.f32 %v1775_v54  ;;  %v1866_v57 = vor.u32 %v1865_v48, %v1864_v49  ;;  %v1869_v55 = vshll.u32 %v1868_v33, 23  ;;  %v3160_v54 = vld [vmem:[%s4703_s5 + $0x10] sm:$0xff]  ;;  %v2494_v49 = vld [vmem:[%s4709_s9] sm:$0xff] }
 0x78f   :  { %v3171_v48 = vld [vmem:[%s4704_s8 + $0x10] sm:$0xff]  ;;  %v2495_v33 = vld [vmem:[%s4710_s10] sm:$0xff] }
 0x790   :  { %v1870_v10 = vor.u32 4788187, %v1869_v55  ;;  %v1873_v58 = vcvt.s32.f32 %v1866_v57 }
 0x792   :  { %v1871_v8 = vand.u32 2147483647, %v1870_v10 }
 0x794   :  { %v1874_v35 = vmul.f32 %v1873_v58, %v1871_v8 }
 0x796   :  { %v1875_v13 = vxor.u32 2147483648, %v1874_v35 }
 0x797   :  { %v3680_v5 = vpop.eup %3679 }
 0x798   :  { %v3682_v2 = vpop.eup %3681  ;;  %v1787_v15 = vxor.u32 2147483648, %v3680_v5  ;;  %v1876_v16 = vsel %vm1793_vm0, %v1875_v13, %v1874_v35  ;;  %vm3453_vm0 = vmpackc.low %vm3722_vm13, %vm1917_vm14 }
 0x799   :  { %v1784_v23 = vxor.u32 2147483648, %v3682_v2  ;;  %v1879_v14 = vsel %vm4397_vm1, %v4322_v43, %v1876_v16  ;;  %v3155_v43 = vld [vmem:[%s4705_s4 + $0x10] sm:$0xff] }
 0x79a   :  { %v1788_v21 = vsel %vm1786_vm2, %v1787_v15, %v3682_v2  ;;  %3683 = vcosq.f32 %v1879_v14 }
 0x79b   :  { %v1785_v24 = vsel %vm1783_vm3, %v3680_v5, %v1784_v23  ;;  %3685 = vsinq.f32 %v1879_v14 }
 0x79c   :  { %v1789_v3 = vsel %vm1782_vm4, %v1785_v24, %v1788_v21 }
 0x79d   :  { %v1790_v0 = vsel %vm1779_vm5, nan, %v1789_v3 }
 0x79e   :  { %v1895_v6 = vmul.f32 %v1790_v0, %v1790_v0 }
 0x7a0   :  { %v1902_v1 = vmul.f32 %v1900_v22, %v1895_v6 }
 0x7a2   :  { %v1904_v60 = vadd.f32 %v1902_v1, %v4309_v40 }
 0x7a4   :  { %1908 = vrot.lane.b32.xlu0 %v1904_v60, %s3728_s28  ;;  %v3684_v11 = vpop.eup %3683 }
 0x7a5   :  { %v3686_v42 = vpop.eup %3685  ;;  %v1891_v31 = vxor.u32 2147483648, %v3684_v11 }
 0x7a6   :  { %v1888_v46 = vxor.u32 2147483648, %v3686_v42 }
 0x7a7   :  { %v1892_v47 = vsel %vm1890_vm6, %v1891_v31, %v3686_v42 }
 0x7a8   :  { %v1889_v62 = vsel %vm1887_vm7, %v3684_v11, %v1888_v46 }
 0x7a9   :  { %v1893_v18 = vsel %vm1886_vm8, %v1889_v62, %v1892_v47 }
 0x7aa   :  { %v1894_v63 = vsel %vm1883_vm9, nan, %v1893_v18 }
 0x7ab   :  { %v1896_v25 = vmul.f32 %v1894_v63, %v1894_v63 }
 0x7ad   :  { %v1903_v29 = vmul.f32 %v1900_v22, %v1896_v25 }
 0x7af   :  { %v1905_v44 = vadd.f32 %v1903_v29, %v4319_v9 }
 0x7b1   :  { %1910 = vrot.lane.b32.xlu1 %v1905_v44, %s3728_s28 }
 0x816   :  { %v1909_v56 = vpop.permute.xlu0 %1908 }
 0x817   :  { %v1915_v61 = vsel %vm1914_vm11, 0.0, %v1909_v56 }
 0x818   :  { %v1918_v19 = vsel %vm1917_vm14, %v1915_v61, 0.0 }
 0x823   :  { %v1911_v7 = vpop.permute.xlu1 %1910 }
 0x824   :  { %v1916_v51 = vsel %vm1914_vm11, 0.0, %v1911_v7 }
 0x825   :  { %v1919_v41 = vsel %vm1917_vm14, %v1916_v51, 0.0 }
 0x826   :  { %v3627_v52 = vpack.i.bf16 %v1919_v41, %v1918_v19 }
 0x828   :  { %3628 = vrot.lane.b32.xlu1 %v3627_v52, %s3726_s30  ;;  %3623 = vrot.lane.b32.xlu0 %v3627_v52, %s3725_s29 }
 0x82c   :  { %3638 = vrot.lane.b32.xlu1 %v3627_v52, %s3729_s14  ;;  %3633 = vrot.lane.b32.xlu0 %v3627_v52, %s3730_s15  ;;  %s3734_s15 = smov 16  }
 0x830   :  { %1952 = vrot.lane.b32.xlu1 %v1918_v19, %s3731_s16  ;;  %3643 = vrot.lane.b32.xlu0 %v3627_v52, %s3732_s21 }
 0x834   :  { %1964 = vperm.xlu1 %3596, %v3155_v43   ;;  %1954 = vrot.lane.b32.xlu0 %v1919_v41, %s3731_s16 }
 0x838   :  { %2333 = vperm.xlu1 %3596, %v3161_v53   ;;  %2116 = vperm.xlu0 %3570, %v3160_v54  }
 0x83c   :  { %2498 = vperm.xlu1 %3596, %v2494_v49   ;;  %2346 = vperm.xlu0 %3570, %v3171_v48  }
 0x840   :  { %2715 = vperm.xlu0 %3570, %v2495_v33  }
 0x89a   :  { %v3629_v17 = vpop.permute.xlu1 %3628  ;;  %v3624_v57 = vpop.permute.xlu0 %3623 }
 0x89b   :  { %v3626_v55 = vunpack.i.h.bf16 %v3624_v57  ;;  %v3625_v10 = vunpack.i.l.bf16 %v3624_v57  ;;  %v3631_v35 = vunpack.i.h.bf16 %v3629_v17  ;;  %v3630_v12 = vunpack.i.l.bf16 %v3629_v17 }
 0x89d   :  { %v3462_v30 = vpack.c.bf16 %v3626_v55, %v1916_v51  ;;  %v3452_v8 = vpack.c.bf16 %v3625_v10, %v1915_v61 }
 0x89e   :  { %v3634_v58 = vpop.permute.xlu0 %3633  ;;  %v3639_v13 = vpop.permute.xlu1 %3638 }
 0x89f   :  { %v3636_v59 = vunpack.i.h.bf16 %v3634_v58  ;;  %v3635_v5 = vunpack.i.l.bf16 %v3634_v58  ;;  %3454 = vmatpush3.bf16.msk.msra.mxu0 %vm3453_vm0, %v3452_v8  ;;  %3464 = vmatpush3.bf16.msk.msra.mxu1 %vm3453_vm0, %v3462_v30  ;;  %v3641_v16 = vunpack.i.h.bf16 %v3639_v13  ;;  %v3640_v27 = vunpack.i.l.bf16 %v3639_v13 }
 0x8a0   :  { %3455 = vmatprep.subr.bf16.mxu0 %v3713_v37  ;;  %3465 = vmatprep.subr.bf16.mxu1 %v3713_v37 }
 0x8a1   :  { %v3466_v2 = vpack.c.bf16 %v3636_v59, %v3631_v35  ;;  %v3456_v20 = vpack.c.bf16 %v3635_v5, %v3630_v12 }
 0x8a2   :  { %v3644_v15 = vpop.permute.xlu0 %3643  ;;  %v1953_v3 = vpop.permute.xlu1 %1952 }
 0x8a3   :  { %v3646_v23 = vunpack.i.h.bf16 %v3644_v15  ;;  %v3645_v14 = vunpack.i.l.bf16 %v3644_v15  ;;  %3457 = vmatpush3.bf16.msra.mxu0 %v3456_v20  ;;  %3467 = vmatpush3.bf16.msra.mxu1 %v3466_v2 }
 0x8a4   :  { %3458 = vmatprep.subr.bf16.mxu0 %v3713_v37  ;;  %3468 = vmatprep.subr.bf16.mxu1 %v3713_v37 }
 0x8a5   :  { %v3469_v21 = vpack.c.bf16 %v3646_v23, %v3641_v16  ;;  %v3459_v24 = vpack.c.bf16 %v3645_v14, %v3640_v27 }
 0x8a6   :  { %v1955_v0 = vpop.permute.xlu0 %1954 }
 0x8a7   :  { %3460 = vmatpush3.bf16.msra.mxu0 %v3459_v24  ;;  %3470 = vmatpush3.bf16.msra.mxu1 %v3469_v21 }
 0x8a8   :  { %3357 = vmatprep.subr.mxu0 %v3719_v4  ;;  %3374 = vmatprep.subr.mxu1 %v3719_v4 }
 0x8ab   :  { %3358 = vmatpush3.msra.mxu0 %v1953_v3  ;;  %3375 = vmatpush3.msra.mxu1 %v1955_v0 }
 0x8ac   :  { %3360 = vmatmul.mubr.msk.f32.vlgmr.msra.gmra.mrb[8].mxu0 %vm333_vm15, %v3154_v50  ;;  %3377 = vmatmul.mubr.msk.f32.vlgmr.msra.gmra.mrb[8].mxu1 %vm333_vm15, %v3154_v50 }
 0x8ad   :  { %3379 = vmatprep.subr.mxu0 %v3719_v4  ;;  %3384 = vmatprep.subr.mxu1 %v3719_v4 }
 0x8ae   :  { %3381 = vmatprep.mubr.msk.f32.mxu0 %vm3718_vm12, %v3719_v4  ;;  %3386 = vmatprep.mubr.msk.f32.mxu1 %vm3718_vm12, %v3719_v4 }
 0x8b3   :  { %v1965_v6 = vpop.permute.xlu1 %1964 }
 0x8b7   :  { %v2117_v42 = vpop.permute.xlu0 %2116 }
 0x97f   :  { %v2036_v22 = vpop.f32.mrb[8].mxu0  ;;  %v2106_v26 = vpop.f32.mrb[8].mxu1 }
 0x980   :  { %v4451_v1 = vadd.f32 %v2036_v22, %v1965_v6  ;;  %v4453_v60 = vadd.f32 %v2106_v26, %v1965_v6  ;;  %v3361_v39 = vpop.f32.mrb[9].mxu0  ;;  %v3378_v11 = vpop.f32.mrb[9].mxu1 }
 0x982   :  { %v4456_v31 = vmul.f32 %v2117_v42, %v4451_v1  ;;  %v4459_v46 = vmul.f32 %v2117_v42, %v4453_v60 }
 0x984   :  { %v2121_v47 = vand.u32 2147483647, %v4456_v31  ;;  %v2124_v62 = vand.u32 2139095040, %v4456_v31  ;;  %v2228_v18 = vand.u32 2139095040, %v4459_v46  ;;  %v2225_v29 = vand.u32 2147483647, %v4459_v46 }
 0x986   :  { %v2125_v63 = vshrl.u32 %v2124_v62, 23  ;;  %v2128_v25 = vand.u32 8388607, %v2121_v47  ;;  %v2229_v44 = vshrl.u32 %v2228_v18, 23  ;;  %v2232_v51 = vand.u32 8388607, %v2225_v29 }
 0x988   :  { %v3162_v56 = vadd.s32 4294967169, %v2125_v63  ;;  %v3166_v61 = vadd.s32 4294967169, %v2229_v44  ;;  %v2129_v19 = vor.u32 8388608, %v2128_v25  ;;  %v2233_v48 = vor.u32 8388608, %v2232_v51 }
 0x98a   :  { %v2131_v7 = vadd.s32 1, %v3162_v56  ;;  %v2235_v41 = vadd.s32 1, %v3166_v61  ;;  %v4469_v49 = vshll.u32 %v2129_v19, 8 }
 0x98c   :  { %vm2132_vm13 = vcmp.gt.s32.totalorder %v2131_v7, 0  ;;  %vm2236_vm15 = vcmp.gt.s32.totalorder %v2235_v41, 0 }
 0x98d   :  { %v2133_v52 = vsel %vm2132_vm13, %v2131_v7, 0  ;;  %v2237_v54 = vsel %vm2236_vm15, %v2235_v41, 0  ;;  %vm2123_vm13 = vcmp.lt.s32.totalorder %v4456_v31, 0  ;;  %vm2122_vm15 = vcmp.le.f32.partialorder %v2121_v47, 0.7853982 }
 0x98e   :  { %v2134_v43 = vshrl.u32 %v2133_v52, 5  ;;  %v2135_v53 = vand.u32 31, %v2133_v52  ;;  %v4472_v57 = vshrl.u32 %v2237_v54, 5  ;;  %v2239_v55 = vand.u32 31, %v2237_v54 }
 0x990   :  { %v2136_v33 = vsub.s32 32, %v2135_v53  ;;  %v2138_v17 = vshll.u32 %v3706_v28, %v2135_v53  ;;  %v2141_v10 = vshll.u32 %v3707_v32, %v2135_v53  ;;  %v2144_v30 = vshll.u32 %v3708_v34, %v2135_v53 }
 0x991   :  { %v2147_v8 = vshll.u32 %v3709_v36, %v2135_v53  ;;  %v2150_v58 = vshll.u32 %v3710_v38, %v2135_v53  ;;  %vm2153_vm1 = vcmp.lt.s32.totalorder %v2134_v43, 1  ;;  %vm2154_vm2 = vcmp.lt.s32.totalorder %v2134_v43, 2 }
 0x992   :  { %v2139_v35 = vshrl.u32 %v3707_v32, %v2136_v33  ;;  %v2142_v12 = vshrl.u32 %v3708_v34, %v2136_v33  ;;  %v2145_v59 = vshrl.u32 %v3709_v36, %v2136_v33  ;;  %v2137_v5 = vshrl.u32 %v3706_v28, %v2136_v33 }
 0x993   :  { %v2148_v13 = vshrl.u32 %v3710_v38, %v2136_v33  ;;  %v2151_v2 = vshrl.u32 %v3711_v45, %v2136_v33  ;;  %v2240_v27 = vsub.s32 32, %v2239_v55  ;;  %vm2155_vm3 = vcmp.lt.s32.totalorder %v2134_v43, 3 }
 0x994   :  { %v2140_v20 = vor.u32 %v2139_v35, %v2138_v17  ;;  %v2143_v15 = vor.u32 %v2142_v12, %v2141_v10  ;;  %v2146_v16 = vor.u32 %v2145_v59, %v2144_v30  ;;  %vm2156_vm4 = vcmp.lt.s32.totalorder %v2134_v43, 4 }
 0x995   :  { %v2149_v23 = vor.u32 %v2148_v13, %v2147_v8  ;;  %v2152_v14 = vor.u32 %v2151_v2, %v2150_v58  ;;  %v2242_v26 = vshll.u32 %v3706_v28, %v2239_v55  ;;  %v2243_v42 = vshrl.u32 %v3707_v32, %v2240_v27 }
 0x996   :  { %v2157_v21 = vsel %vm2153_vm1, %v2137_v5, %v2140_v20  ;;  %v2158_v24 = vsel %vm2156_vm4, %v2146_v16, 2102212464  ;;  %v2161_v50 = vsel %vm2153_vm1, %v2140_v20, %v2143_v15  ;;  %v2165_v3 = vsel %vm2153_vm1, %v2143_v15, %v2146_v16 }
 0x997   :  { %v2159_v0 = vsel %vm2155_vm3, %v2143_v15, %v2158_v24  ;;  %v2162_v6 = vsel %vm2156_vm4, %v2149_v23, 920167782  ;;  %v2166_v22 = vsel %vm2156_vm4, %v2152_v14, 1326507024  ;;  %v2245_v62 = vshll.u32 %v3707_v32, %v2239_v55 }
 0x998   :  { %v2163_v39 = vsel %vm2155_vm3, %v2146_v16, %v2162_v6  ;;  %v2167_v11 = vsel %vm2155_vm3, %v2149_v23, %v2166_v22  ;;  %v2160_v18 = vsel %vm2154_vm2, %v2157_v21, %v2159_v0  ;;  %v2246_v44 = vshrl.u32 %v3708_v34, %v2240_v27 }
 0x999   :  { %v2164_v63 = vsel %vm2154_vm2, %v2161_v50, %v2163_v39  ;;  %v2168_v25 = vsel %vm2154_vm2, %v2165_v3, %v2167_v11  ;;  %v2244_v51 = vor.u32 %v2243_v42, %v2242_v26  ;;  %v2248_v52 = vshll.u32 %v3708_v34, %v2239_v55 }
 0x99a   :  { %v4495_v56 = vmul.u32.u64.low %v4469_v49, %v2168_v25  ;;  %v4496_v61 = vmul.u32.u64.high %v4469_v49, %v2168_v25, %v4495_v56  ;;  %v4499_v7 = vmul.u32.u64.low %v4469_v49, %v2164_v63  ;;  %v4500_v19 = vmul.u32.u64.high %v4469_v49, %v2164_v63, %v4499_v7 }
 0x99b   :  { %v2247_v41 = vor.u32 %v2246_v44, %v2245_v62  ;;  %v2249_v53 = vshrl.u32 %v3709_v36, %v2240_v27  ;;  %v2251_v54 = vshll.u32 %v3709_v36, %v2239_v55  ;;  %v2252_v43 = vshrl.u32 %v3710_v38, %v2240_v27 }
 0x99c   :  { %v2255_v33 = vshrl.u32 %v3711_v45, %v2240_v27  ;;  %v2273_v17 = vshll.u32 %v2233_v48, 8  ;;  %v2176_v10 = vmul.u32 %v4469_v49, %v2160_v18  ;;  %v2241_v30 = vshrl.u32 %v3706_v28, %v2240_v27 }
 0x99d   :  { %v2250_v8 = vor.u32 %v2249_v53, %v2248_v52  ;;  %v2254_v58 = vshll.u32 %v3710_v38, %v2239_v55  ;;  %vm2178_vm5 = vc.u32 %v4496_v61, %v4499_v7  ;;  %v2179_v35 = vadd.s32 1, %v4500_v19 }
 0x99e   :  { %v2253_v12 = vor.u32 %v2252_v43, %v2251_v54  ;;  %vm2257_vm6 = vcmp.lt.s32.totalorder %v4472_v57, 1  ;;  %vm2259_vm7 = vcmp.lt.s32.totalorder %v4472_v57, 3  ;;  %vm2260_vm8 = vcmp.lt.s32.totalorder %v4472_v57, 4 }
 0x99f   :  { %v2256_v59 = vor.u32 %v2255_v33, %v2254_v58  ;;  %v2265_v48 = vsel %vm2257_vm6, %v2244_v51, %v2247_v41  ;;  %v2180_v49 = vsel %vm2178_vm5, %v2179_v35, %v4500_v19  ;;  %v2262_v5 = vsel %vm2260_vm8, %v2250_v8, 2102212464 }
 0x9a0   :  { %v2266_v13 = vsel %vm2260_vm8, %v2253_v12, 920167782  ;;  %v2269_v2 = vsel %vm2257_vm6, %v2247_v41, %v2250_v8  ;;  %v2181_v20 = vadd.s32 %v2180_v49, %v2176_v10  ;;  %vm2258_vm9 = vcmp.lt.s32.totalorder %v4472_v57, 2 }
 0x9a1   :  { %v2267_v55 = vsel %vm2259_vm7, %v2250_v8, %v2266_v13  ;;  %v2270_v15 = vsel %vm2260_vm8, %v2256_v59, 1326507024  ;;  %v2261_v16 = vsel %vm2257_vm6, %v2241_v30, %v2244_v51  ;;  %v2263_v27 = vsel %vm2259_vm7, %v2247_v41, %v2262_v5 }
 0x9a2   :  { %v2268_v23 = vsel %vm2258_vm9, %v2265_v48, %v2267_v55  ;;  %v2271_v14 = vsel %vm2259_vm7, %v2253_v12, %v2270_v15  ;;  %v2182_v21 = vadd.s32 536870912, %v2181_v20  ;;  %v2264_v26 = vsel %vm2258_vm9, %v2261_v16, %v2263_v27 }
 0x9a3   :  { %v2272_v24 = vsel %vm2258_vm9, %v2269_v2, %v2271_v14  ;;  %v4517_v50 = vmul.u32.u64.low %v2273_v17, %v2268_v23  ;;  %v4518_v3 = vmul.u32.u64.high %v2273_v17, %v2268_v23, %v4517_v50  ;;  %v2280_v57 = vmul.u32 %v2273_v17, %v2264_v26 }
 0x9a4   :  { %v4520_v0 = vmul.u32.u64.low %v2273_v17, %v2272_v24  ;;  %v4521_v6 = vmul.u32.u64.high %v2273_v17, %v2272_v24, %v4520_v0  ;;  %v2183_v22 = vshrl.u32 %v2182_v21, 30  ;;  %v2177_v43 = vadd.s32 %v4499_v7, %v4496_v61 }
 0x9a5   :  { %v2283_v11 = vadd.s32 1, %v4518_v3  ;;  %vm2227_vm1 = vcmp.lt.s32.totalorder %v4459_v46, 0  ;;  %vm2226_vm2 = vcmp.le.f32.partialorder %v2225_v29, 0.7853982  ;;  %vm2213_vm6 = vweird.f32 %v4456_v31 }
 0x9a6   :  { %v2184_v39 = vshll.u32 %v2183_v22, 30  ;;  %vm2282_vm11 = vc.u32 %v4521_v6, %v4517_v50  ;;  %v2207_v7 = vsub.s32 4, %v2183_v22 }
 0x9a7   :  { %v2284_v62 = vsel %vm2282_vm11, %v2283_v11, %v4518_v3  ;;  %vm2317_vm11 = vweird.f32 %v4459_v46 }
 0x9a8   :  { %v2185_v42 = vsub.s32 %v2181_v20, %v2184_v39  ;;  %v2285_v18 = vadd.s32 %v2284_v62, %v2280_v57  ;;  %v2281_v20 = vadd.s32 %v4517_v50, %v4521_v6  ;;  %v2208_v0 = vsel %vm2123_vm13, %v2207_v7, %v2183_v22 }
 0x9a9   :  { %v2210_v6 = vsel %vm2122_vm15, 0, %v2208_v0 }
 0x9aa   :  { %v2187_v63 = vsub.s32 0, %v2185_v42  ;;  %v2286_v25 = vadd.s32 536870912, %v2285_v18  ;;  %v2214_v62 = vadd.s32 3, %v2210_v6 }
 0x9ac   :  { %v3163_v44 = vmin.u32 %v2187_v63, %v2185_v42  ;;  %v2287_v56 = vshrl.u32 %v2286_v25, 30  ;;  %v2215_v22 = vand.u32 3, %v2214_v62 }
 0x9ae   :  { %v2189_v19 = vclz %v3163_v44  ;;  %v2288_v51 = vshll.u32 %v2287_v56, 30  ;;  %vm2220_vm3 = vcmp.eq.s32.totalorder %v2215_v22, 2  ;;  %vm2217_vm4 = vcmp.eq.s32.totalorder %v2215_v22, 0 }
 0x9af   :  { %vm2216_vm5 = vcmp.lt.s32.totalorder %v2215_v22, 2 }
 0x9b0   :  { %v3164_v41 = vadd.s32 4294967294, %v2189_v19  ;;  %v2289_v52 = vsub.s32 %v2285_v18, %v2288_v51 }
 0x9b2   :  { %vm3165_vm14 = vcmp.lt.s32.totalorder %v3164_v41, 0  ;;  %v2291_v54 = vsub.s32 0, %v2289_v52 }
 0x9b3   :  { %v2192_v53 = vsel %vm3165_vm14, 0, %v3164_v41 }
 0x9b4   :  { %v2193_v33 = vsub.s32 32, %v2192_v53  ;;  %v2197_v17 = vsub.s32 4294967266, %v2192_v53  ;;  %v3167_v10 = vmin.u32 %v2291_v54, %v2289_v52  ;;  %v2194_v30 = vshll.u32 %v2185_v42, %v2192_v53 }
 0x9b5   :  { %v2311_v42 = vsub.s32 4, %v2287_v56 }
 0x9b6   :  { %v2195_v8 = vshrl.u32 %v2177_v43, %v2193_v33  ;;  %v2198_v58 = vadd.s32 127, %v2197_v17  ;;  %v2293_v35 = vclz %v3167_v10  ;;  %v2334_v10 = vpop.permute.xlu1 %2333 }
 0x9b7   :  { %v2312_v63 = vsel %vm2227_vm1, %v2311_v42, %v2287_v56 }
 0x9b8   :  { %v2196_v12 = vor.u32 %v2195_v8, %v2194_v30  ;;  %v2199_v59 = vshll.u32 %v2198_v58, 23  ;;  %v3168_v48 = vadd.s32 4294967294, %v2293_v35  ;;  %v2314_v19 = vsel %vm2226_vm2, 0, %v2312_v63 }
 0x9b9   :  { %v2318_v54 = vadd.s32 3, %v2314_v19 }
 0x9ba   :  { %v2200_v49 = vor.u32 4788187, %v2199_v59  ;;  %vm3169_vm0 = vcmp.lt.s32.totalorder %v3168_v48, 0  ;;  %v2203_v13 = vcvt.s32.f32 %v2196_v12 }
 0x9bb   :  { %v2296_v2 = vsel %vm3169_vm0, 0, %v3168_v48  ;;  %v2319_v17 = vand.u32 3, %v2318_v54  ;;  %v3170_v48 = vld [vmem:[%s4708_s7 + $0x10] sm:$0xff]  ;;  %s3733_s7 = smov 8  }
 0x9bc   :  { %v2201_v5 = vand.u32 2147483647, %v2200_v49  ;;  %v2297_v55 = vsub.s32 32, %v2296_v2  ;;  %v2301_v15 = vsub.s32 4294967266, %v2296_v2  ;;  %v2298_v16 = vshll.u32 %v2289_v52, %v2296_v2 }
 0x9bd   :  { %vm2324_vm7 = vcmp.eq.s32.totalorder %v2319_v17, 2  ;;  %vm2321_vm8 = vcmp.eq.s32.totalorder %v2319_v17, 0  ;;  %vm2320_vm9 = vcmp.lt.s32.totalorder %v2319_v17, 2 }
 0x9be   :  { %v2204_v61 = vmul.f32 %v2203_v13, %v2201_v5  ;;  %v2299_v27 = vshrl.u32 %v2281_v20, %v2297_v55  ;;  %v2302_v23 = vadd.s32 127, %v2301_v15 }
 0x9c0   :  { %v2205_v14 = vxor.u32 2147483648, %v2204_v61  ;;  %v2300_v21 = vor.u32 %v2299_v27, %v2298_v16  ;;  %v2303_v24 = vshll.u32 %v2302_v23, 23  ;;  %v2499_v16 = vpop.permute.xlu1 %2498 }
 0x9c2   :  { %v2206_v3 = vsel %vm2123_vm13, %v2205_v14, %v2204_v61  ;;  %v2304_v50 = vor.u32 4788187, %v2303_v24  ;;  %v2307_v11 = vcvt.s32.f32 %v2300_v21 }
 0x9c3   :  { %v2209_v26 = vsel %vm2122_vm15, %v4456_v31, %v2206_v3 }
 0x9c4   :  { %3687 = vcosq.f32 %v2209_v26  ;;  %v2305_v39 = vand.u32 2147483647, %v2304_v50 }
 0x9c5   :  { %3689 = vsinq.f32 %v2209_v26 }
 0x9c6   :  { %v2308_v57 = vmul.f32 %v2307_v11, %v2305_v39 }
 0x9c8   :  { %v2309_v18 = vxor.u32 2147483648, %v2308_v57 }
 0x9ca   :  { %v2310_v47 = vsel %vm2227_vm1, %v2309_v18, %v2308_v57 }
 0x9cb   :  { %v2313_v25 = vsel %vm2226_vm2, %v4459_v46, %v2310_v47  ;;  %v2347_v46 = vpop.permute.xlu0 %2346 }
 0x9cc   :  { %3691 = vcosq.f32 %v2313_v25 }
 0x9cd   :  { %3693 = vsinq.f32 %v2313_v25 }
 0x9ce   :  { %v3688_v44 = vpop.eup %3687 }
 0x9cf   :  { %v3690_v51 = vpop.eup %3689  ;;  %v2221_v41 = vxor.u32 2147483648, %v3688_v44 }
 0x9d0   :  { %v2218_v52 = vxor.u32 2147483648, %v3690_v51 }
 0x9d1   :  { %v2222_v53 = vsel %vm2220_vm3, %v2221_v41, %v3690_v51 }
 0x9d2   :  { %v2219_v43 = vsel %vm2217_vm4, %v3688_v44, %v2218_v52 }
 0x9d3   :  { %v2223_v29 = vsel %vm2216_vm5, %v2219_v43, %v2222_v53 }
 0x9d4   :  { %v2224_v56 = vsel %vm2213_vm6, nan, %v2223_v29 }
 0x9d5   :  { %v2329_v33 = vmul.f32 %v2224_v56, %v2224_v56 }
 0x9d6   :  { %v3692_v30 = vpop.eup %3691 }
 0x9d7   :  { %v2336_v8 = vmul.f32 %v2334_v10, %v2329_v33  ;;  %v3694_v58 = vpop.eup %3693  ;;  %v2325_v35 = vxor.u32 2147483648, %v3692_v30 }
 0x9d8   :  { %v2322_v59 = vxor.u32 2147483648, %v3694_v58 }
 0x9d9   :  { %v2338_v12 = vadd.f32 %v2336_v8, %v4451_v1  ;;  %v2326_v49 = vsel %vm2324_vm7, %v2325_v35, %v3694_v58 }
 0x9da   :  { %v2323_v31 = vsel %vm2321_vm8, %v3692_v30, %v2322_v59 }
 0x9db   :  { %3380 = vmatpush3.msra.mxu0 %v2338_v12  ;;  %v2327_v5 = vsel %vm2320_vm9, %v2323_v31, %v2326_v49 }
 0x9dc   :  { %3382 = vmatmul.mubr.msk.f32.vlgmr.msra.gmra.mrb[10].mxu0 %vm712_vm10, %v3170_v48  ;;  %3471 = vmatprep.subr.bf16.mxu0 %v3713_v37  ;;  %v2328_v13 = vsel %vm2317_vm11, nan, %v2327_v5 }
 0x9dd   :  { %3397 = vmatprep.mubr.msk.f32.mxu0 %vm3718_vm12, %v3719_v4  ;;  %v2330_v1 = vmul.f32 %v2328_v13, %v2328_v13 }
 0x9df   :  { %v2337_v2 = vmul.f32 %v2334_v10, %v2330_v1 }
 0x9e1   :  { %v2339_v20 = vadd.f32 %v2337_v2, %v4453_v60 }
 0x9e3   :  { %3385 = vmatpush3.msra.mxu1 %v2339_v20 }
 0x9e4   :  { %3387 = vmatmul.mubr.msk.f32.vlgmr.msra.gmra.mrb[10].mxu1 %vm712_vm10, %v3170_v48  ;;  %3477 = vmatprep.subr.bf16.mxu1 %v3713_v37 }
 0x9e5   :  { %3408 = vmatprep.mubr.msk.f32.mxu1 %vm3718_vm12, %v3719_v4 }
 0xaaf   :  { %v2418_v55 = vpop.f32.mrb[10].mxu0 }
 0xab0   :  { %v2419_v15 = vadd.f32 %v2418_v55, %v2347_v46  ;;  %v3383_v61 = vpop.f32.mrb[11].mxu0 }
 0xab2   :  { %v4552_v7 = vadd.f32 %v2419_v15, %v4309_v40 }
 0xab4   :  { %v4555_v27 = vmul.f32 %v2499_v16, %v4552_v7 }
 0xab6   :  { %v2503_v60 = vand.u32 2147483647, %v4555_v27  ;;  %v2506_v23 = vand.u32 2139095040, %v4555_v27  ;;  %vm2505_vm9 = vcmp.lt.s32.totalorder %v4555_v27, 0 }
 0xab7   :  { %v2488_v21 = vpop.f32.mrb[10].mxu1 }
 0xab8   :  { %v2507_v14 = vshrl.u32 %v2506_v23, 23  ;;  %v2489_v24 = vadd.f32 %v2488_v21, %v2347_v46  ;;  %v3388_v3 = vpop.f32.mrb[11].mxu1  ;;  %v2510_v0 = vand.u32 8388607, %v2503_v60 }
 0xaba   :  { %v3174_v4 = vadd.s32 4294967169, %v2507_v14  ;;  %v4562_v26 = vadd.f32 %v2489_v24, %v4319_v9  ;;  %v2511_v6 = vor.u32 8388608, %v2510_v0 }
 0xabc   :  { %v2513_v40 = vadd.s32 1, %v3174_v4  ;;  %v4565_v50 = vmul.f32 %v2499_v16, %v4562_v26  ;;  %v2551_v47 = vshll.u32 %v2511_v6, 8 }
 0xabe   :  { %vm2514_vm12 = vcmp.gt.s32.totalorder %v2513_v40, 0  ;;  %v2607_v11 = vand.u32 2147483647, %v4565_v50  ;;  %v2610_v57 = vand.u32 2139095040, %v4565_v50 }
 0xabf   :  { %v2515_v39 = vsel %vm2514_vm12, %v2513_v40, 0  ;;  %vm4627_vm12 = vcmp.le.f32.partialorder %v2503_v60, 0.7853982 }
 0xac0   :  { %v2517_v42 = vand.u32 31, %v2515_v39  ;;  %v2516_v62 = vshrl.u32 %v2515_v39, 5  ;;  %v2611_v63 = vshrl.u32 %v2610_v57, 23  ;;  %v2614_v44 = vand.u32 8388607, %v2607_v11 }
 0xac2   :  { %v2518_v18 = vsub.s32 32, %v2517_v42  ;;  %v2520_v22 = vshll.u32 %v3706_v28, %v2517_v42  ;;  %v2523_v9 = vshll.u32 %v3707_v32, %v2517_v42  ;;  %v2526_v25 = vshll.u32 %v3708_v34, %v2517_v42 }
 0xac3   :  { %v2529_v52 = vshll.u32 %v3709_v36, %v2517_v42  ;;  %v2532_v54 = vshll.u32 %v3710_v38, %v2517_v42  ;;  %vm2535_vm14 = vcmp.lt.s32.totalorder %v2516_v62, 1  ;;  %v3178_v17 = vadd.s32 4294967169, %v2611_v63 }
 0xac4   :  { %v2521_v19 = vshrl.u32 %v3707_v32, %v2518_v18  ;;  %v2524_v51 = vshrl.u32 %v3708_v34, %v2518_v18  ;;  %v2527_v41 = vshrl.u32 %v3709_v36, %v2518_v18  ;;  %v2530_v53 = vshrl.u32 %v3710_v38, %v2518_v18 }
 0xac5   :  { %v2533_v43 = vshrl.u32 %v3711_v45, %v2518_v18  ;;  %vm2536_vm0 = vcmp.lt.s32.totalorder %v2516_v62, 2  ;;  %vm2538_vm13 = vcmp.lt.s32.totalorder %v2516_v62, 4  ;;  %v2519_v8 = vshrl.u32 %v3706_v28, %v2518_v18 }
 0xac6   :  { %v2522_v29 = vor.u32 %v2521_v19, %v2520_v22  ;;  %v2525_v56 = vor.u32 %v2524_v51, %v2523_v9  ;;  %v2528_v33 = vor.u32 %v2527_v41, %v2526_v25  ;;  %v2531_v10 = vor.u32 %v2530_v53, %v2529_v52 }
 0xac7   :  { %v2534_v30 = vor.u32 %v2533_v43, %v2532_v54  ;;  %vm2537_vm15 = vcmp.lt.s32.totalorder %v2516_v62, 3  ;;  %v2617_v49 = vadd.s32 1, %v3178_v17  ;;  %v2615_v46 = vor.u32 8388608, %v2614_v44 }
 0xac8   :  { %v2540_v58 = vsel %vm2538_vm13, %v2528_v33, 2102212464  ;;  %v2543_v35 = vsel %vm2535_vm14, %v2522_v29, %v2525_v56  ;;  %v2547_v12 = vsel %vm2535_vm14, %v2525_v56, %v2528_v33  ;;  %v2544_v59 = vsel %vm2538_vm13, %v2531_v10, 920167782 }
 0xac9   :  { %v2548_v48 = vsel %vm2538_vm13, %v2534_v30, 1326507024  ;;  %v2539_v31 = vsel %vm2535_vm14, %v2519_v8, %v2522_v29  ;;  %v2541_v5 = vsel %vm2537_vm15, %v2525_v56, %v2540_v58  ;;  %v2545_v13 = vsel %vm2537_vm15, %v2528_v33, %v2544_v59 }
 0xaca   :  { %v2549_v1 = vsel %vm2537_vm15, %v2531_v10, %v2548_v48  ;;  %v2546_v2 = vsel %vm2536_vm0, %v2543_v35, %v2545_v13  ;;  %vm2618_vm1 = vcmp.gt.s32.totalorder %v2617_v49, 0  ;;  %v2542_v23 = vsel %vm2536_vm0, %v2539_v31, %v2541_v5 }
 0xacb   :  { %v2550_v20 = vsel %vm2536_vm0, %v2547_v12, %v2549_v1  ;;  %v4590_v61 = vmul.u32.u64.low %v2551_v47, %v2546_v2  ;;  %v4591_v16 = vmul.u32.u64.high %v2551_v47, %v2546_v2, %v4590_v61  ;;  %v2619_v14 = vsel %vm2618_vm1, %v2617_v49, 0 }
 0xacc   :  { %v4587_v55 = vmul.u32.u64.low %v2551_v47, %v2550_v20  ;;  %v4588_v15 = vmul.u32.u64.high %v2551_v47, %v2550_v20, %v4587_v55  ;;  %v2621_v21 = vand.u32 31, %v2619_v14  ;;  %v2655_v24 = vshll.u32 %v2615_v46, 8 }
 0xacd   :  { %v2558_v3 = vmul.u32 %v2551_v47, %v2542_v23  ;;  %v2561_v4 = vadd.s32 1, %v4591_v16  ;;  %v2620_v40 = vshrl.u32 %v2619_v14, 5  ;;  %vm4639_vm14 = vcmp.le.f32.partialorder %v2607_v11, 0.7853982 }
 0xace   :  { %vm2560_vm2 = vc.u32 %v4588_v15, %v4590_v61  ;;  %v2622_v0 = vsub.s32 32, %v2621_v21  ;;  %v2624_v6 = vshll.u32 %v3706_v28, %v2621_v21  ;;  %v2627_v39 = vshll.u32 %v3707_v32, %v2621_v21 }
 0xacf   :  { %v2630_v57 = vshll.u32 %v3708_v34, %v2621_v21  ;;  %v2562_v42 = vsel %vm2560_vm2, %v2561_v4, %v4591_v16  ;;  %v2633_v47 = vshll.u32 %v3709_v36, %v2621_v21  ;;  %v2636_v51 = vshll.u32 %v3710_v38, %v2621_v21 }
 0xad0   :  { %v2625_v62 = vshrl.u32 %v3707_v32, %v2622_v0  ;;  %v2628_v18 = vshrl.u32 %v3708_v34, %v2622_v0  ;;  %v2563_v63 = vadd.s32 %v2562_v42, %v2558_v3  ;;  %v2623_v22 = vshrl.u32 %v3706_v28, %v2622_v0 }
 0xad1   :  { %v2631_v9 = vshrl.u32 %v3709_v36, %v2622_v0  ;;  %v2634_v25 = vshrl.u32 %v3710_v38, %v2622_v0  ;;  %v2637_v41 = vshrl.u32 %v3711_v45, %v2622_v0  ;;  %vm2639_vm3 = vcmp.lt.s32.totalorder %v2620_v40, 1 }
 0xad2   :  { %v2626_v44 = vor.u32 %v2625_v62, %v2624_v6  ;;  %v2629_v19 = vor.u32 %v2628_v18, %v2627_v39  ;;  %v2564_v52 = vadd.s32 536870912, %v2563_v63  ;;  %vm2640_vm4 = vcmp.lt.s32.totalorder %v2620_v40, 2 }
 0xad3   :  { %v2632_v53 = vor.u32 %v2631_v9, %v2630_v57  ;;  %v2635_v32 = vor.u32 %v2634_v25, %v2633_v47  ;;  %v2638_v34 = vor.u32 %v2637_v41, %v2636_v51  ;;  %vm2641_vm5 = vcmp.lt.s32.totalorder %v2620_v40, 3 }
 0xad4   :  { %vm2642_vm6 = vcmp.lt.s32.totalorder %v2620_v40, 4  ;;  %v2565_v54 = vshrl.u32 %v2564_v52, 30  ;;  %v2647_v43 = vsel %vm2639_vm3, %v2626_v44, %v2629_v19  ;;  %v2643_v29 = vsel %vm2639_vm3, %v2623_v22, %v2626_v44 }
 0xad5   :  { %v2644_v28 = vsel %vm2642_vm6, %v2632_v53, 2102212464  ;;  %v2648_v36 = vsel %vm2642_vm6, %v2635_v32, 920167782  ;;  %v2651_v33 = vsel %vm2639_vm3, %v2629_v19, %v2632_v53  ;;  %v2652_v17 = vsel %vm2642_vm6, %v2638_v34, 1326507024 }
 0xad6   :  { %v2649_v56 = vsel %vm2641_vm5, %v2632_v53, %v2648_v36  ;;  %v2566_v10 = vshll.u32 %v2565_v54, 30  ;;  %v2645_v38 = vsel %vm2641_vm5, %v2629_v19, %v2644_v28  ;;  %v2653_v30 = vsel %vm2641_vm5, %v2635_v32, %v2652_v17 }
 0xad7   :  { %v2650_v45 = vsel %vm2640_vm4, %v2647_v43, %v2649_v56  ;;  %v2654_v8 = vsel %vm2640_vm4, %v2651_v33, %v2653_v30  ;;  %v2646_v49 = vsel %vm2640_vm4, %v2643_v29, %v2645_v38  ;;  %v2559_v21 = vadd.s32 %v4590_v61, %v4588_v15 }
 0xad8   :  { %v4612_v58 = vmul.u32.u64.low %v2655_v24, %v2650_v45  ;;  %v4613_v35 = vmul.u32.u64.high %v2655_v24, %v2650_v45, %v4612_v58  ;;  %v2567_v12 = vsub.s32 %v2563_v63, %v2566_v10  ;;  %v2662_v1 = vmul.u32 %v2655_v24, %v2646_v49 }
 0xad9   :  { %v4615_v59 = vmul.u32.u64.low %v2655_v24, %v2654_v8  ;;  %v4616_v48 = vmul.u32.u64.high %v2655_v24, %v2654_v8, %v4615_v59  ;;  %v2589_v25 = vsub.s32 4, %v2565_v54  ;;  %vm2609_vm0 = vcmp.lt.s32.totalorder %v4565_v50, 0 }
 0xada   :  { %v2569_v31 = vsub.s32 0, %v2567_v12  ;;  %v2665_v5 = vadd.s32 1, %v4613_v35  ;;  %vm2595_vm2 = vweird.f32 %v4555_v27  ;;  %vm2699_vm6 = vweird.f32 %v4565_v50 }
 0xadb   :  { %vm2664_vm7 = vc.u32 %v4616_v48, %v4612_v58  ;;  %v2590_v41 = vsel %vm2505_vm9, %v2589_v25, %v2565_v54  ;;  %v2663_v53 = vadd.s32 %v4612_v58, %v4616_v48 }
 0xadc   :  { %v3175_v13 = vmin.u32 %v2569_v31, %v2567_v12  ;;  %v2666_v2 = vsel %vm2664_vm7, %v2665_v5, %v4613_v35  ;;  %v2592_v60 = vsel %vm4627_vm12, 0, %v2590_v41  ;;  %vm2790_vm7 = vcmask 1040384   ;;  %v2862_v41 = vld [vmem:[%s4711_s11 + $0x8] sm:$0xff] }
 0xadd   :  { %v2667_v46 = vadd.s32 %v2666_v2, %v2662_v1  ;;  %v2596_v17 = vadd.s32 3, %v2592_v60 }
 0xade   :  { %v2571_v20 = vclz %v3175_v13 }
 0xadf   :  { %v2668_v16 = vadd.s32 536870912, %v2667_v46  ;;  %v2597_v8 = vand.u32 3, %v2596_v17 }
 0xae0   :  { %v3176_v55 = vadd.s32 4294967294, %v2571_v20 }
 0xae1   :  { %v2669_v23 = vshrl.u32 %v2668_v16, 30  ;;  %vm2602_vm13 = vcmp.eq.s32.totalorder %v2597_v8, 2  ;;  %vm2599_vm15 = vcmp.eq.s32.totalorder %v2597_v8, 0  ;;  %vm2598_vm1 = vcmp.lt.s32.totalorder %v2597_v8, 2  ;;  %v2716_v16 = vpop.permute.xlu0 %2715 }
 0xae2   :  { %vm3177_vm8 = vcmp.lt.s32.totalorder %v3176_v55, 0 }
 0xae3   :  { %v2574_v14 = vsel %vm3177_vm8, 0, %v3176_v55  ;;  %v2670_v0 = vshll.u32 %v2669_v23, 30  ;;  %v2693_v30 = vsub.s32 4, %v2669_v23  ;;  %vm2809_vm8 = vcmask 58368  }
 0xae4   :  { %v2575_v3 = vsub.s32 32, %v2574_v14  ;;  %v2579_v4 = vsub.s32 4294967266, %v2574_v14  ;;  %v2576_v40 = vshll.u32 %v2567_v12, %v2574_v14 }
 0xae5   :  { %v2671_v39 = vsub.s32 %v2667_v46, %v2670_v0  ;;  %v2694_v31 = vsel %vm2609_vm0, %v2693_v30, %v2669_v23 }
 0xae6   :  { %v2577_v6 = vshrl.u32 %v2559_v21, %v2575_v3  ;;  %v2580_v24 = vadd.s32 127, %v2579_v4  ;;  %v2696_v11 = vsel %vm4639_vm14, 0, %v2694_v31 }
 0xae7   :  { %v2673_v62 = vsub.s32 0, %v2671_v39  ;;  %v2700_v23 = vadd.s32 3, %v2696_v11 }
 0xae8   :  { %v2578_v57 = vor.u32 %v2577_v6, %v2576_v40  ;;  %v2581_v42 = vshll.u32 %v2580_v24, 23 }
 0xae9   :  { %v3179_v47 = vmin.u32 %v2673_v62, %v2671_v39  ;;  %v2701_v3 = vand.u32 3, %v2700_v23 }
 0xaea   :  { %v2582_v18 = vor.u32 4788187, %v2581_v42  ;;  %v2585_v22 = vcvt.s32.f32 %v2578_v57 }
 0xaeb   :  { %v2675_v9 = vclz %v3179_v47  ;;  %vm2706_vm3 = vcmp.eq.s32.totalorder %v2701_v3, 2  ;;  %vm2703_vm4 = vcmp.eq.s32.totalorder %v2701_v3, 0  ;;  %vm2702_vm5 = vcmp.lt.s32.totalorder %v2701_v3, 2 }
 0xaec   :  { %v2583_v63 = vand.u32 2147483647, %v2582_v18 }
 0xaed   :  { %v3180_v19 = vadd.s32 4294967294, %v2675_v9 }
 0xaee   :  { %v2586_v44 = vmul.f32 %v2585_v22, %v2583_v63 }
 0xaef   :  { %vm3181_vm11 = vcmp.lt.s32.totalorder %v3180_v19, 0 }
 0xaf0   :  { %v2587_v15 = vxor.u32 2147483648, %v2586_v44  ;;  %v2678_v51 = vsel %vm3181_vm11, 0, %v3180_v19  ;;  %vm2858_vm11 = vcmask 195584  }
 0xaf1   :  { %v2679_v32 = vsub.s32 32, %v2678_v51  ;;  %v2683_v34 = vsub.s32 4294967266, %v2678_v51  ;;  %v2680_v43 = vshll.u32 %v2671_v39, %v2678_v51  ;;  %v2861_v51 = vld [vmem:[%s4711_s11] sm:$0xff] }
 0xaf2   :  { %v2588_v52 = vsel %vm2505_vm9, %v2587_v15, %v2586_v44  ;;  %vm2855_vm9 = vcmask 130048  }
 0xaf3   :  { %v2591_v28 = vsel %vm4627_vm12, %v4555_v27, %v2588_v52  ;;  %v2681_v36 = vshrl.u32 %v2663_v53, %v2679_v32  ;;  %v2684_v29 = vadd.s32 127, %v2683_v34  ;;  %v3472_v53 = vpack.c.bf16 %v2862_v41, %v2861_v51 }
 0xaf4   :  { %3695 = vcosq.f32 %v2591_v28  ;;  %vm2872_vm12 = vcmask 261120  }
 0xaf5   :  { %3697 = vsinq.f32 %v2591_v28  ;;  %v2682_v56 = vor.u32 %v2681_v36, %v2680_v43  ;;  %v2685_v33 = vshll.u32 %v2684_v29, 23  ;;  %3473 = vmatpush3.bf16.msra.mxu0 %v3472_v53  ;;  %3479 = vmatpush3.bf16.msra.mxu1 %v3472_v53  ;;  %v2863_v28 = vld [vmem:[%s4711_s11 + $0x10] sm:$0xff]  ;;  %v2864_v43 = vld [vmem:[%s4711_s11 + $0x18] sm:$0xff]  ;;  %s3735_s11 = smov 24  }
 0xaf6   :  { %3474 = vmatprep.subr.bf16.mxu0 %v3713_v37  ;;  %3480 = vmatprep.subr.bf16.mxu1 %v3713_v37  ;;  %v3475_v36 = vpack.c.bf16 %v2864_v43, %v2863_v28 }
 0xaf7   :  { %v2686_v54 = vor.u32 4788187, %v2685_v33  ;;  %v2689_v38 = vcvt.s32.f32 %v2682_v56 }
 0xaf9   :  { %v2687_v10 = vand.u32 2147483647, %v2686_v54  ;;  %3476 = vmatpush3.bf16.msra.mxu0 %v3475_v36  ;;  %3482 = vmatpush3.bf16.msra.mxu1 %v3475_v36 }
 0xafb   :  { %v2690_v45 = vmul.f32 %v2689_v38, %v2687_v10 }
 0xafd   :  { %v2691_v35 = vxor.u32 2147483648, %v2690_v45 }
 0xafe   :  { %v3696_v58 = vpop.eup %3695 }
 0xaff   :  { %v3698_v12 = vpop.eup %3697  ;;  %v2603_v48 = vxor.u32 2147483648, %v3696_v58  ;;  %v2692_v49 = vsel %vm2609_vm0, %v2691_v35, %v2690_v45 }
 0xb00   :  { %v2600_v5 = vxor.u32 2147483648, %v3698_v12  ;;  %v2695_v13 = vsel %vm4639_vm14, %v4565_v50, %v2692_v49 }
 0xb01   :  { %v2604_v1 = vsel %vm2602_vm13, %v2603_v48, %v3698_v12  ;;  %3699 = vcosq.f32 %v2695_v13 }
 0xb02   :  { %v2601_v2 = vsel %vm2599_vm15, %v3696_v58, %v2600_v5  ;;  %3701 = vsinq.f32 %v2695_v13  ;;  %v3182_v5 = vld [vmem:[%s4712_s12] ss:$0 sm:$0xff] }
 0xb03   :  { %v2605_v20 = vsel %vm2598_vm1, %v2601_v2, %v2604_v1 }
 0xb04   :  { %v2606_v46 = vsel %vm2595_vm2, nan, %v2605_v20 }
 0xb05   :  { %v2711_v55 = vmul.f32 %v2606_v46, %v2606_v46 }
 0xb07   :  { %v2718_v14 = vmul.f32 %v2716_v16, %v2711_v55 }
 0xb09   :  { %v2720_v21 = vadd.f32 %v2718_v14, %v4552_v7 }
 0xb0b   :  { %2722 = vxpose.xlu1.b32.start.end [1/1] (short) (narrow) %v2720_v21, 16  ;;  %v3700_v4 = vpop.eup %3699 }
 0xb0c   :  { %v3702_v0 = vpop.eup %3701  ;;  %v2707_v40 = vxor.u32 2147483648, %v3700_v4 }
 0xb0d   :  { %v2704_v6 = vxor.u32 2147483648, %v3702_v0 }
 0xb0e   :  { %v2708_v24 = vsel %vm2706_vm3, %v2707_v40, %v3702_v0 }
 0xb0f   :  { %v2705_v39 = vsel %vm2703_vm4, %v3700_v4, %v2704_v6 }
 0xb10   :  { %v2709_v27 = vsel %vm2702_vm5, %v2705_v39, %v2708_v24 }
 0xb11   :  { %v2710_v57 = vsel %vm2699_vm6, nan, %v2709_v27 }
 0xb12   :  { %v2712_v42 = vmul.f32 %v2710_v57, %v2710_v57 }
 0xb14   :  { %v2719_v62 = vmul.f32 %v2716_v16, %v2712_v42 }
 0xb16   :  { %v2721_v18 = vadd.f32 %v2719_v62, %v4562_v26 }
 0xb18   :  { %2754 = vxpose.xlu0.b32.start.end [1/1] (short) (narrow) %v2721_v18, 16 }
 0xb8b   :  { %v2738_v7 = vpop.trf.xlu1 }
 0xb8c   :  { %v2791_v47 = vrot.slane %v2738_v7, 7 }
 0xb8e   :  { %v2803_v63 = vsel %vm2790_vm7, 0.0, %v2791_v47 }
 0xb8f   :  { %2807 = vst.msk [vmem:[#allocation2] sm:$0xff] %vm712_vm10, %v2803_v63  ;;  %v2739_v22 = vpop.trf.xlu1 }
 0xb90   :  { %v2792_v9 = vrot.slane %v2739_v22, 7 }
 0xb92   :  { %v2793_v25 = vsel %vm2790_vm7, %v2791_v47, %v2792_v9  ;;  %v2805_v50 = vsel %vm2790_vm7, %v2792_v9, 0.0 }
 0xb93   :  { %2808 = vst.msk [vmem:[#allocation2 + $0x8] sm:$0xff] %vm712_vm10, %v2793_v25 }
 0xb94   :  { %2810 = vst.msk [vmem:[#allocation2 + $0x10] sm:$0x3] %vm2809_vm8, %v2805_v50 }
 0xb98   :  { %v2770_v26 = vpop.trf.xlu0 }
 0xb99   :  { %v2794_v44 = vrot.slane %v2770_v26, 7 }
 0xb9a   :  { %v2818_v19 = vld [vmem:[#allocation2 + $0x1] ss:$2 sm:$0xff]  ;;  %v2814_v12 = vld [vmem:[#allocation2] ss:$2 sm:$0xff] }
 0xb9b   :  { %2831 = vrot.lane.b32.xlu0 %v2818_v19, %s3733_s7  ;;  %v2804_v15 = vsel %vm2790_vm7, 0.0, %v2794_v44  ;;  %v2822_v56 = vld [vmem:[#allocation2 + $0x2] ss:$2 sm:$0xff]  ;;  %v2826_v54 = vld [vmem:[#allocation2 + $0x3] ss:$2 sm:$0xff] }
 0xb9c   :  { %2811 = vst.msk [vmem:[#allocation2 + $0x18] sm:$0xff] %vm712_vm10, %v2804_v15  ;;  %v2771_v61 = vpop.trf.xlu0 }
 0xb9d   :  { %v2795_v52 = vrot.slane %v2771_v61, 7 }
 0xb9f   :  { %v2796_v32 = vsel %vm2790_vm7, %v2794_v44, %v2795_v52  ;;  %v2806_v34 = vsel %vm2790_vm7, %v2795_v52, 0.0 }
 0xba0   :  { %2812 = vst.msk [vmem:[#allocation2 + $0x20] sm:$0xff] %vm712_vm10, %v2796_v32 }
 0xba1   :  { %2813 = vst.msk [vmem:[#allocation2 + $0x28] sm:$0x3] %vm2809_vm8, %v2806_v34 }
 0xba7   :  { %v2820_v29 = vld [vmem:[#allocation2 + $0x19] ss:$2 sm:$0xff]  ;;  %v2816_v37 = vld [vmem:[#allocation2 + $0x18] ss:$2 sm:$0xff] }
 0xba8   :  { %v2824_v60 = vld [vmem:[#allocation2 + $0x1a] ss:$2 sm:$0xff]  ;;  %2833 = vrot.lane.b32.xlu1 %v2820_v29, %s3733_s7  ;;  %v2828_v33 = vld [vmem:[#allocation2 + $0x1b] ss:$2 sm:$0xff] }
 0xba9   :  { %2841 = vrot.lane.b32.xlu0 %v2824_v60, %s3734_s15 }
 0xbac   :  { %2839 = vrot.lane.b32.xlu1 %v2822_v56, %s3734_s15 }
 0xbad   :  { %2849 = vrot.lane.b32.xlu0 %v2828_v33, %s3735_s11 }
 0xbb0   :  { %2847 = vrot.lane.b32.xlu1 %v2826_v54, %s3735_s11 }
 0xc0d   :  { %v2832_v17 = vpop.permute.xlu0 %2831 }
 0xc0e   :  { %v2853_v59 = vsel %vm712_vm10, %v2814_v12, %v2832_v17 }
 0xc1a   :  { %v2834_v10 = vpop.permute.xlu1 %2833 }
 0xc1b   :  { %v2842_v38 = vpop.permute.xlu0 %2841  ;;  %v2854_v45 = vsel %vm712_vm10, %v2816_v37, %v2834_v10 }
 0xc1c   :  { %v2857_v30 = vsel %vm2855_vm9, %v2854_v45, %v2842_v38 }
 0xc1e   :  { %v2840_v8 = vpop.permute.xlu1 %2839 }
 0xc1f   :  { %v2850_v58 = vpop.permute.xlu0 %2849  ;;  %v2856_v48 = vsel %vm2855_vm9, %v2853_v59, %v2840_v8 }
 0xc20   :  { %v2860_v35 = vsel %vm2858_vm11, %v2857_v30, %v2850_v58 }
 0xc21   :  { %3409 = vmatmul.mubr.msk.f32.vlgmr.msra.gmra.mrb[12].mxu1 %vm2872_vm12, %v2860_v35 }
 0xc22   :  { %v2848_v49 = vpop.permute.xlu1 %2847 }
 0xc23   :  { %v2859_v31 = vsel %vm2858_vm11, %v2856_v48, %v2848_v49 }
 0xc24   :  { %3398 = vmatmul.mubr.msk.f32.vlgmr.msra.gmra.mrb[12].mxu0 %vm2872_vm12, %v2859_v31 }
 0xcf4   :  { %v3015_v13 = vpop.f32.mrb[12].mxu1 }
 0xcf5   :  { %v3016_v1 = vadd.f32 %v3182_v5, %v3015_v13  ;;  %v3410_v2 = vpop.f32.mrb[13].mxu1 }
 0xcf7   :  { %3053 = vxpose.xlu0.b32.start.end [1/1] (short) (narrow) %v3016_v1, 16  ;;  %v2942_v11 = vpop.f32.mrb[12].mxu0 }
 0xcf8   :  { %v2943_v20 = vadd.f32 %v3182_v5, %v2942_v11  ;;  %v3399_v46 = vpop.f32.mrb[13].mxu0 }
 0xcfa   :  { %3019 = vxpose.xlu1.b32.start.end [1/1] (short) (narrow) %v2943_v20, 16 }
 0xd77   :  { %v3069_v55 = vpop.trf.xlu0 }
 0xd78   :  { %3185 = vst.msk [vmem:[%s4713_s13 + $0x10] sm:$0xff] %vm712_vm10, %v3069_v55 }
 0xd7a   :  { %v3035_v16 = vpop.trf.xlu1 }
 0xd7b   :  { %v3070_v23 = vpop.trf.xlu0  ;;  %3051 = vst.msk [vmem:[%s4713_s13] sm:$0xff] %vm712_vm10, %v3035_v16 }
 0xd7c   :  { %3186 = vst.msk [vmem:[%s4713_s13 + $0x18] sm:$0xff] %vm712_vm10, %v3070_v23 }
 0xd7e   :  { %v3036_v14 = vpop.trf.xlu1 }
 0xd7f   :  { %3052 = vst.msk [vmem:[%s4713_s13 + $0x8] sm:$0xff] %vm712_vm10, %v3036_v14 }

</bundles_post_ra>
